<compile_context>
chip_gen: v7x
topology: tpu7x:2x2x1
jax: 0.10.0
libtpu: 0.0.40
codegen_flags: <defaults>
</compile_context>

<pallas_src>
import functools

import jax
import jax.numpy as jnp
from jax.experimental import pallas as pl
from jax.experimental.pallas import tpu as pltpu

LN_EPS = 1e-6  # norm_layer = partial(nn.LayerNorm, eps=1e-6)


# ---------------------------- small helpers ----------------------------

def _round_up(n, m):
    return ((n + m - 1) // m) * m


def _layernorm(x, w, b):
    mu = jnp.mean(x, axis=-1, keepdims=True)
    var = jnp.mean(jnp.square(x - mu), axis=-1, keepdims=True)
    return (x - mu) * jax.lax.rsqrt(var + LN_EPS) * w + b


def _gelu_exact(x):
    # exact (erf-based) GELU, matching torch.nn.GELU() default
    return 0.5 * x * (1.0 + jax.lax.erf(x * (1.0 / jnp.sqrt(2.0))))


# ---------------------------- hardware-aware configuration ----------------------------

_HW_CFG = None


def _probe_single_buffering():
    """Runtime probe: does pipeline_mode=pl.Buffered(1) construct AND lower cleanly?"""
    def k(x_ref, o_ref):
        o_ref[...] = x_ref[...]
    try:
        fn = pl.pallas_call(
            k,
            out_shape=jax.ShapeDtypeStruct((16, 128), jnp.float32),
            grid=(2,),
            in_specs=[pl.BlockSpec((8, 128), lambda i: (0, 0),
                                   pipeline_mode=pl.Buffered(1))],
            out_specs=pl.BlockSpec((8, 128), lambda i: (i, 0)),
        )
        jax.block_until_ready(fn(jnp.zeros((8, 128), jnp.float32)))
        return True
    except Exception:
        return False


def _hw_config():
    """Per-generation VMEM limit / core-count heuristics (computed once, outside jit)."""
    global _HW_CFG
    if _HW_CFG is not None:
        return _HW_CFG
    vmem_cap = 64 * 1024 * 1024                     # conservative default (v7x per-TC)
    try:
        cap = getattr(pltpu.get_tpu_info(), "vmem_capacity_bytes", None)
        if cap:
            vmem_cap = int(cap)
    except Exception:
        pass
    if vmem_cap >= 100 * 1024 * 1024:               # v5e / v6e: 128 MiB, single TC
        vmem_limit = 100 * 1024 * 1024
        multi_core = False
    else:                                           # v7x: 64 MiB per TC, 2 TCs
        vmem_limit = max(32 * 1024 * 1024, vmem_cap - 16 * 1024 * 1024)
        multi_core = True
    _HW_CFG = {
        "vmem_limit": vmem_limit,
        "multi_core": multi_core,
        "single_buffer": _probe_single_buffering(),
    }
    return _HW_CFG


def _const_spec(p, single_buffer):
    """BlockSpec for a grid-invariant (weight/bias) input.

    The index_map is constant, so the second pipeline buffer is pure waste;
    request single buffering when the runtime supports it."""
    nd = p.ndim
    imap = lambda i, _nd=nd: (0,) * _nd
    if single_buffer:
        try:
            return pl.BlockSpec(p.shape, imap, pipeline_mode=pl.Buffered(1))
        except Exception:
            pass
    return pl.BlockSpec(p.shape, imap)


def _pick_batch_tile(batch, n_tok, c, hidden, heads, hw):
    """Largest divisor of `batch` whose per-tile VMEM estimate fits the budget.

    On 2-TensorCore chips (v7x) prefer tiles that leave >=2 grid steps so the
    'parallel' grid axis can be sharded across cores; on single-TC chips a
    bigger tile simply means a bigger MXU M and fewer per-step overheads."""
    hd = c // heads
    weight_b = (4 * c * c + 2 * c * hidden) * 2     # bf16 matmul weights per block
    if not hw["single_buffer"]:
        weight_b *= 2                               # double-buffered if Buffered(1) n/a
    budget = hw["vmem_limit"] - weight_b - 8 * 1024 * 1024

    def tile_bytes(bt):
        io = 4 * bt * n_tok * c * 4                               # x in + out, 2 bufs, f32
        stage = 3 * heads * bt * n_tok * _round_up(hd, 128) * 2   # q/k/v head-major scratch
        acc = bt * n_tok * c * 4                                  # attention accumulator
        scores = 2 * bt * n_tok * _round_up(n_tok, 128) * 4       # per-head scores + exp
        live = 5 * bt * n_tok * c * 4                             # bf16 q/k/v, xn, mlp chunk
        return io + stage + acc + scores + live

    divisors = [d for d in range(1, batch + 1) if batch % d == 0 and d <= 64]
    feasible = [d for d in divisors if tile_bytes(d) <= budget] or [1]
    if hw["multi_core"]:
        two_step = [d for d in feasible if batch // d >= 2]
        if two_step:
            return max(two_step)
    return max(feasible)


# ---------------------------- patch embedding kernel ----------------------------

def _patch_embed_kernel(x_ref, w_ref, b_ref, o_ref):
    bt = x_ref.shape[0]
    w = w_ref[...]
    b = b_ref[...]
    for i in range(bt):                              # static loop over the batch tile
        o_ref[i] = jnp.dot(x_ref[i], w, preferred_element_type=jnp.float32) + b


def patch_embed_pallas(patches, w_t, b, *, batch_tile, single_buffer, vmem_limit):
    """patches: (B, P, K) bf16, w_t: (K, E) bf16, b: (1, E) f32 -> (B, P, E) f32."""
    B, P, K = patches.shape
    E = w_t.shape[1]
    Bt = batch_tile
    return pl.pallas_call(
        _patch_embed_kernel,
        out_shape=jax.ShapeDtypeStruct((B, P, E), jnp.float32),
        grid=(B // Bt,),
        in_specs=[pl.BlockSpec((Bt, P, K), lambda i: (i, 0, 0)),
                  _const_spec(w_t, single_buffer),
                  _const_spec(b, single_buffer)],
        out_specs=pl.BlockSpec((Bt, P, E), lambda i: (i, 0, 0)),
        compiler_params=pltpu.CompilerParams(
            dimension_semantics=("parallel",),
            vmem_limit_bytes=vmem_limit),
    )(patches, w_t, b)


# ---------------------------- transformer block kernel ----------------------------

_BLOCK_PARAM_KEYS = ["ln1_w", "ln1_b", "q_w_t", "q_b", "k_w_t", "k_b", "v_w_t", "v_b",
                     "proj_w_t", "proj_b", "ln2_w", "ln2_b",
                     "fc1_w_t", "fc1_b", "fc2_w_t", "fc2_b"]


def _mlp_residual(z, ln_w, ln_b, fc1w_ref, fc1b_ref, fc2w_ref, fc2b_ref, chunk):
    """z + fc2(GELU(fc1(LN(z)))) computed in `chunk`-wide slabs of the hidden dim,
    so the full (rows, hidden) f32 activation is never live."""
    zn = _layernorm(z, ln_w, ln_b).astype(jnp.bfloat16)
    hidden = fc1w_ref.shape[1]
    acc = z + fc2b_ref[...]
    for c0 in range(0, hidden, chunk):
        h = (jnp.dot(zn, fc1w_ref[:, c0:c0 + chunk],
                     preferred_element_type=jnp.float32)
             + fc1b_ref[:, c0:c0 + chunk])
        h = _gelu_exact(h).astype(jnp.bfloat16)
        acc = acc + jnp.dot(h, fc2w_ref[c0:c0 + chunk, :],
                            preferred_element_type=jnp.float32)
    return acc


def _block_body(x_ref, pos_ref, p, o_ref, q_scr, k_scr, v_scr, acc_scr, *,
                num_heads, scale, n_valid, cls_only, mlp_chunk):
    (ln1w, ln1b, qw, qb, kw, kb, vw, vb, projw, projb,
     ln2w, ln2b, fc1w, fc1b, fc2w, fc2b) = p[:16]
    Bt, Np, C = x_ref.shape
    H = num_heads
    hd = C // H
    M = Bt * Np

    x = x_ref[...]                                   # (Bt, Np, C) f32
    if pos_ref is not None:                          # fused pos-embed add (block 0 only)
        x = x + pos_ref[...]
    x = x.reshape(M, C)                              # fold batch tile into M

    # ---- attention branch ----
    xn = _layernorm(x, ln1w[...], ln1b[...]).astype(jnp.bfloat16)
    # three separate matmuls: the (M, 3C) f32 QKV intermediate never materializes
    q = ((jnp.dot(xn, qw[...], preferred_element_type=jnp.float32) + qb[...])
         * scale).astype(jnp.bfloat16)               # softmax scale folded into q
    k = (jnp.dot(xn, kw[...], preferred_element_type=jnp.float32)
         + kb[...]).astype(jnp.bfloat16)
    v = (jnp.dot(xn, vw[...], preferred_element_type=jnp.float32)
         + vb[...]).astype(jnp.bfloat16)

    # stage q/k/v head-major so the per-head loop is a fori_loop (bounded live
    # ranges) with cheap dynamic leading-axis indexing.
    for h in range(H):
        sl = slice(h * hd, (h + 1) * hd)
        q_scr[h] = q[:, sl].reshape(Bt, Np, hd)
        k_scr[h] = k[:, sl].reshape(Bt, Np, hd)
        v_scr[h] = v[:, sl].reshape(Bt, Np, hd)

    if n_valid < Np:                                 # mask padded key columns
        col = jax.lax.broadcasted_iota(jnp.int32, (1, 1, Np), 2)
        key_bias = jnp.where(col < n_valid, 0.0, -1e30).astype(jnp.float32)
    else:
        key_bias = None

    # residual + proj bias; per-head proj contributions accumulate into this, so
    # the head concat (and its sub-128-lane column stores) disappears entirely.
    acc_scr[...] = x + projb[...]

    def head_body(h, carry):
        off = pl.multiple_of(h * hd, hd)
        qh = q_scr[h]                                # (Bt, Np, hd) bf16
        kh = k_scr[h]
        vh = v_scr[h]
        s = jnp.einsum("bnd,bmd->bnm", qh, kh, preferred_element_type=jnp.float32)
        if key_bias is not None:
            s = s + key_bias
        s = s - jnp.max(s, axis=-1, keepdims=True)
        e = jnp.exp(s)
        pa = e * pl.reciprocal(jnp.sum(e, axis=-1, keepdims=True), approx=True)
        oh = jnp.einsum("bnm,bmd->bnd", pa.astype(jnp.bfloat16), vh,
                        preferred_element_type=jnp.float32)          # (Bt, Np, hd) f32
        acc_scr[...] += jnp.dot(oh.reshape(M, hd).astype(jnp.bfloat16),
                                projw[pl.ds(off, hd), :],
                                preferred_element_type=jnp.float32)
        return carry

    jax.lax.fori_loop(0, H, head_body, 0)
    x2 = acc_scr[...]                                # x + attn(LN1(x)), (M, C) f32

    # ---- MLP branch (chunked over the hidden dim) ----
    if cls_only:
        nw, nb, hw_, hb_ = p[16:20]
        # only the cls-token rows feed the classification head; LN2 / MLP / final
        # LN / head are all row-wise, so restrict them to those rows.
        x2c = x2.reshape(Bt, Np, C)[:, 0, :]                          # (Bt, C)
        y = _mlp_residual(x2c, ln2w[...], ln2b[...], fc1w, fc1b, fc2w, fc2b, mlp_chunk)
        y = _layernorm(y, nw[...], nb[...])
        logits = (jnp.dot(y.astype(jnp.bfloat16), hw_[...],
                          preferred_element_type=jnp.float32) + hb_[...])
        o_ref[...] = logits.reshape(Bt, 1, logits.shape[-1])
    else:
        y = _mlp_residual(x2, ln2w[...], ln2b[...], fc1w, fc1b, fc2w, fc2b, mlp_chunk)
        o_ref[...] = y.reshape(Bt, Np, C)


def _make_block_kernel(*, num_heads, scale, n_valid, add_pos, cls_only,
                       n_params, mlp_chunk):
    def kernel(*refs):
        i = 0
        x_ref = refs[i]; i += 1
        pos_ref = None
        if add_pos:
            pos_ref = refs[i]; i += 1
        params = refs[i:i + n_params]; i += n_params
        o_ref = refs[i]; i += 1
        q_scr, k_scr, v_scr, acc_scr = refs[i:i + 4]
        _block_body(x_ref, pos_ref, params, o_ref, q_scr, k_scr, v_scr, acc_scr,
                    num_heads=num_heads, scale=scale, n_valid=n_valid,
                    cls_only=cls_only, mlp_chunk=mlp_chunk)
    return kernel


def block_pallas(x, blk, *, num_heads, n_valid, pos=None, head=None,
                 batch_tile, single_buffer, vmem_limit):
    """x: (B, Np, C) f32 (Np padded to mult. of 8); returns (B, Np, C) or (B, 1, ncls)."""
    B, Np, C = x.shape
    Bt = batch_tile
    H = num_heads
    hd = C // H
    hidden = blk["fc1_b"].shape[-1]
    mlp_chunk = C if hidden % C == 0 else hidden
    scale = float(hd ** -0.5)
    cls_only = head is not None

    params = [blk[k] for k in _BLOCK_PARAM_KEYS]
    if cls_only:
        params += [head["norm_w"], head["norm_b"], head["head_w_t"], head["head_b"]]

    in_arrays = [x]
    in_specs = [pl.BlockSpec((Bt, Np, C), lambda b: (b, 0, 0))]
    if pos is not None:
        in_arrays.append(pos)
        in_specs.append(_const_spec(pos, single_buffer))
    in_arrays += params
    in_specs += [_const_spec(p, single_buffer) for p in params]

    if cls_only:
        ncls = head["head_b"].shape[-1]
        out_shape = jax.ShapeDtypeStruct((B, 1, ncls), jnp.float32)
        out_spec = pl.BlockSpec((Bt, 1, ncls), lambda b: (b, 0, 0))
    else:
        out_shape = jax.ShapeDtypeStruct((B, Np, C), jnp.float32)
        out_spec = pl.BlockSpec((Bt, Np, C), lambda b: (b, 0, 0))

    kernel = _make_block_kernel(num_heads=H, scale=scale, n_valid=n_valid,
                                add_pos=pos is not None, cls_only=cls_only,
                                n_params=len(params), mlp_chunk=mlp_chunk)
    # TODO(synk): cross-pallas_call prefetch of the next block's weights (semaphore
    # future) would hide the per-block weight prologue DMA at small batch.
    return pl.pallas_call(
        kernel,
        out_shape=out_shape,
        grid=(B // Bt,),
        in_specs=in_specs,
        out_specs=out_spec,
        scratch_shapes=[pltpu.VMEM((H, Bt, Np, hd), jnp.bfloat16),   # q (head-major)
                        pltpu.VMEM((H, Bt, Np, hd), jnp.bfloat16),   # k
                        pltpu.VMEM((H, Bt, Np, hd), jnp.bfloat16),   # v
                        pltpu.VMEM((Bt * Np, C), jnp.float32)],      # attn accumulator
        compiler_params=pltpu.CompilerParams(
            dimension_semantics=("parallel",),
            vmem_limit_bytes=vmem_limit),
    )(*in_arrays)


# ---------------------------- glue / params ----------------------------

def extract_patches_nchw(x, p):
    # NCHW -> (B, num_patches, C*p*p); patch flatten order (C, ph, pw)
    # matches Conv2d weight (E, C, ph, pw) flattened row-major.
    B, C, H, W = x.shape
    gh, gw = H // p, W // p
    x = x.reshape(B, C, gh, p, gw, p)
    x = jnp.transpose(x, (0, 2, 4, 1, 3, 5))       # (B, gh, gw, C, p, p)
    return x.reshape(B, gh * gw, C * p * p)


def trunc_normal(key, shape, std):
    return (std * jax.random.truncated_normal(key, -2.0, 2.0, shape)).astype(jnp.float32)


def init_params(key, *, img_size, patch_size, in_c, embed_dim, depth,
                num_heads, mlp_ratio, num_classes):
    del num_heads
    num_patches = (img_size // patch_size) ** 2
    N = num_patches + 1
    hidden = int(embed_dim * mlp_ratio)
    keys = jax.random.split(key, 4 + depth)

    # Conv2d patch proj: kaiming normal, fan_out = out_channels * kh * kw
    fan_out = embed_dim * patch_size * patch_size
    patch_w = jax.random.normal(
        keys[0], (embed_dim, in_c, patch_size, patch_size), jnp.float32
    ) * jnp.sqrt(2.0 / fan_out)

    params = {
        "patch_w_t": patch_w.reshape(embed_dim, -1).T,        # (C*p*p, E)
        "patch_b": jnp.zeros((1, embed_dim), jnp.float32),
        "cls_token": trunc_normal(keys[1], (1, 1, embed_dim), 0.02),
        "pos_embed": trunc_normal(keys[2], (1, N, embed_dim), 0.02),
        "norm_w": jnp.ones((1, embed_dim), jnp.float32),
        "norm_b": jnp.zeros((1, embed_dim), jnp.float32),
        "head_w_t": trunc_normal(keys[3], (num_classes, embed_dim), 0.01).T,
        "head_b": jnp.zeros((1, num_classes), jnp.float32),
        "blocks": [],
    }
    for i in range(depth):
        bk = jax.random.split(keys[4 + i], 4)
        params["blocks"].append({
            "ln1_w": jnp.ones((1, embed_dim), jnp.float32),
            "ln1_b": jnp.zeros((1, embed_dim), jnp.float32),
            "qkv_w_t": trunc_normal(bk[0], (3 * embed_dim, embed_dim), 0.01).T,
            "qkv_b": jnp.zeros((1, 3 * embed_dim), jnp.float32),
            "proj_w_t": trunc_normal(bk[1], (embed_dim, embed_dim), 0.01).T,
            "proj_b": jnp.zeros((1, embed_dim), jnp.float32),
            "ln2_w": jnp.ones((1, embed_dim), jnp.float32),
            "ln2_b": jnp.zeros((1, embed_dim), jnp.float32),
            "fc1_w_t": trunc_normal(bk[2], (hidden, embed_dim), 0.01).T,
            "fc1_b": jnp.zeros((1, hidden), jnp.float32),
            "fc2_w_t": trunc_normal(bk[3], (embed_dim, hidden), 0.01).T,
            "fc2_b": jnp.zeros((1, embed_dim), jnp.float32),
        })
    return params


def prepare_params(params):
    """Cast matmul weights to bf16 (MXU inputs) and split the fused QKV weight so the
    kernel never materializes the (M, 3C) f32 QKV intermediate.  LN params / biases
    stay fp32."""
    out = {k: v for k, v in params.items() if k != "blocks"}
    out["patch_w_t"] = params["patch_w_t"].astype(jnp.bfloat16)
    out["head_w_t"] = params["head_w_t"].astype(jnp.bfloat16)
    out["blocks"] = []
    for blk in params["blocks"]:
        C = blk["ln1_w"].shape[-1]
        qkv_w, qkv_b = blk["qkv_w_t"], blk["qkv_b"]
        out["blocks"].append({
            "ln1_w": blk["ln1_w"], "ln1_b": blk["ln1_b"],
            "q_w_t": qkv_w[:, 0 * C:1 * C].astype(jnp.bfloat16), "q_b": qkv_b[:, 0 * C:1 * C],
            "k_w_t": qkv_w[:, 1 * C:2 * C].astype(jnp.bfloat16), "k_b": qkv_b[:, 1 * C:2 * C],
            "v_w_t": qkv_w[:, 2 * C:3 * C].astype(jnp.bfloat16), "v_b": qkv_b[:, 2 * C:3 * C],
            "proj_w_t": blk["proj_w_t"].astype(jnp.bfloat16), "proj_b": blk["proj_b"],
            "ln2_w": blk["ln2_w"], "ln2_b": blk["ln2_b"],
            "fc1_w_t": blk["fc1_w_t"].astype(jnp.bfloat16), "fc1_b": blk["fc1_b"],
            "fc2_w_t": blk["fc2_w_t"].astype(jnp.bfloat16), "fc2_b": blk["fc2_b"],
        })
    return out


# ---------------------------- forward pass ----------------------------

def vit_forward(x_img, params, *, patch_size, num_heads):
    hw = _hw_config()
    B = x_img.shape[0]
    E = params["pos_embed"].shape[-1]
    hidden = params["blocks"][0]["fc1_b"].shape[-1]

    patches = extract_patches_nchw(x_img, patch_size).astype(jnp.bfloat16)  # glue + bf16 cast
    P = patches.shape[1]
    N = P + 1
    Np = _round_up(N, 8)                                                    # sublane-align tokens

    Bt = _pick_batch_tile(B, Np, E, hidden, num_heads, hw)
    tok = patch_embed_pallas(patches, params["patch_w_t"], params["patch_b"],
                             batch_tile=Bt, single_buffer=hw["single_buffer"],
                             vmem_limit=hw["vmem_limit"])
    cls = jnp.broadcast_to(params["cls_token"], (B, 1, E))                  # glue
    x = jnp.concatenate([cls, tok], axis=1)                                 # glue (B, N, E)

    pos = params["pos_embed"]
    if Np > N:
        x = jnp.pad(x, ((0, 0), (0, Np - N), (0, 0)))
        pos = jnp.pad(pos, ((0, 0), (0, Np - N), (0, 0)))

    # TODO(synk): pos_drop / attn_drop / proj_drop / DropPath are exact identities
    # here (all ratios 0.0, eval mode) and therefore omitted.
    head = {"norm_w": params["norm_w"], "norm_b": params["norm_b"],
            "head_w_t": params["head_w_t"], "head_b": params["head_b"]}
    nblocks = len(params["blocks"])
    for i, blk in enumerate(params["blocks"]):
        x = block_pallas(x, blk, num_heads=num_heads, n_valid=N,
                         pos=pos if i == 0 else None,            # pos-add fused into block 0
                         head=head if i == nblocks - 1 else None,  # last block: LN+head fused
                         batch_tile=Bt, single_buffer=hw["single_buffer"],
                         vmem_limit=hw["vmem_limit"])
    return x[:, 0, :]                                            # (B, num_classes)


# ---------------------------- pure-JAX reference (fp32 math) ----------------------------

def vit_reference(x_img, params, *, patch_size, num_heads):
    f32 = lambda a: a.astype(jnp.float32)
    B = x_img.shape[0]
    E = params["pos_embed"].shape[-1]
    patches = extract_patches_nchw(x_img, patch_size)
    tok = patches @ f32(params["patch_w_t"]) + params["patch_b"]
    cls = jnp.broadcast_to(params["cls_token"], (B, 1, E))
    x = jnp.concatenate([cls, tok], axis=1) + params["pos_embed"]
    hd = E // num_heads
    scale = hd ** -0.5
    for blk in params["blocks"]:
        xn = _layernorm(x, blk["ln1_w"], blk["ln1_b"])
        q = xn @ f32(blk["q_w_t"]) + blk["q_b"]
        k = xn @ f32(blk["k_w_t"]) + blk["k_b"]
        v = xn @ f32(blk["v_w_t"]) + blk["v_b"]
        q = q.reshape(B, -1, num_heads, hd).transpose(0, 2, 1, 3)
        k = k.reshape(B, -1, num_heads, hd).transpose(0, 2, 1, 3)
        v = v.reshape(B, -1, num_heads, hd).transpose(0, 2, 1, 3)
        a = jax.nn.softmax(jnp.einsum("bhnd,bhmd->bhnm", q, k) * scale, axis=-1)
        o = jnp.einsum("bhnm,bhmd->bhnd", a, v).transpose(0, 2, 1, 3).reshape(B, -1, E)
        x = x + (o @ f32(blk["proj_w_t"]) + blk["proj_b"])
        xn = _layernorm(x, blk["ln2_w"], blk["ln2_b"])
        h1 = _gelu_exact(xn @ f32(blk["fc1_w_t"]) + blk["fc1_b"])
        x = x + (h1 @ f32(blk["fc2_w_t"]) + blk["fc2_b"])
    xn = _layernorm(x[:, 0, :], params["norm_w"], params["norm_b"])
    return xn @ f32(params["head_w_t"]) + params["head_b"]


if __name__ == "__main__":
    # small config consistent with the module: 16x16 image, 8x8 patches
    # -> 4 patches (+cls = 5 tokens, padded to 8 inside the kernels)
    B, in_c, img_size, patch_size = 4, 3, 16, 8
    embed_dim, depth, num_heads, mlp_ratio, num_classes = 32, 2, 4, 4.0, 10

    key = jax.random.PRNGKey(0)
    k_img, k_par = jax.random.split(key)
    x_img = jax.random.normal(k_img, (B, in_c, img_size, img_size), jnp.float32)
    master = init_params(k_par, img_size=img_size, patch_size=patch_size,
                         in_c=in_c, embed_dim=embed_dim, depth=depth,
                         num_heads=num_heads, mlp_ratio=mlp_ratio,
                         num_classes=num_classes)
    params = prepare_params(master)   # bf16 matmul weights (split QKV), fp32 rest

    _hw_config()   # probe TPU VMEM / single-buffering support once, outside jit

    fwd = jax.jit(functools.partial(vit_forward, patch_size=patch_size,
                                    num_heads=num_heads))
    out = jax.block_until_ready(fwd(x_img, params))

    ref = vit_reference(x_img, params, patch_size=patch_size, num_heads=num_heads)
    assert out.shape == (B, num_classes)
    err = float(jnp.max(jnp.abs(out - ref)))
    assert err < 3e-3, f"mismatch vs pure-JAX reference: {err}"
    print("KERNEL_OK")
</pallas_src>

<mosaic_0001>
module attributes {stable_mosaic.version = 11 : i64} {
  func.func @k(%arg0: i32, %arg1: memref<8x128xf32, #tpu.memory_space<vmem>>, %arg2: memref<8x128xf32, #tpu.memory_space<vmem>>) attributes {dimension_semantics = [#tpu.dimension_semantics<arbitrary>], iteration_bounds = array<i64: 2>, scalar_prefetch = 0 : i64, scratch_operands = 0 : i64, tpu.core_type = #tpu.core_type<tc>, window_params = [{pipeline_mode = #tpu.pipeline_mode<synchronous>, transform_indices = @transform_0, window_bounds = array<i64: 8, 128>}, {transform_indices = @transform_1, window_bounds = array<i64: 8, 128>}]} {
    %c0 = arith.constant 0 : index
    %c0_0 = arith.constant 0 : index
    %0 = vector.load %arg1[%c0, %c0_0] : memref<8x128xf32, #tpu.memory_space<vmem>>, vector<8x128xf32>
    %c0_1 = arith.constant 0 : index
    %c0_2 = arith.constant 0 : index
    %1 = vector.load %arg2[%c0_1, %c0_2] : memref<8x128xf32, #tpu.memory_space<vmem>>, vector<8x128xf32>
    tpu.vector_store %arg2[%c0_1, %c0_2], %0 {strides = array<i32>} : memref<8x128xf32, #tpu.memory_space<vmem>>, vector<8x128xf32>,
    return
  }
  func.func @transform_0(%arg0: i32) -> (i32, i32) {
    %c0_i32 = arith.constant 0 : i32
    %c0_i32_0 = arith.constant 0 : i32
    %c0_i32_1 = arith.constant 0 : i32
    return %c0_i32, %c0_i32_0 : i32, i32
  }
  func.func @transform_1(%arg0: i32) -> (i32, i32) {
    %c0_i32 = arith.constant 0 : i32
    %c0_i32_0 = arith.constant 0 : i32
    return %arg0, %c0_i32 : i32, i32
  }
}

module attributes {stable_mosaic.version = 11 : i64} {
  func.func @_patch_embed_kernel(%arg0: i32, %arg1: memref<2x4x192xbf16, #tpu.memory_space<vmem>>, %arg2: memref<192x32xbf16, #tpu.memory_space<vmem>>, %arg3: memref<1x32xf32, #tpu.memory_space<vmem>>, %arg4: memref<2x4x32xf32, #tpu.memory_space<vmem>>) attributes {dimension_semantics = [#tpu.dimension_semantics<parallel>], iteration_bounds = array<i64: 2>, scalar_prefetch = 0 : i64, scratch_operands = 0 : i64, tpu.core_type = #tpu.core_type<tc>, window_params = [{transform_indices = @transform_0, window_bounds = array<i64: 2, 4, 192>}, {pipeline_mode = #tpu.pipeline_mode<synchronous>, transform_indices = @transform_1, window_bounds = array<i64: 192, 32>}, {pipeline_mode = #tpu.pipeline_mode<synchronous>, transform_indices = @transform_2, window_bounds = array<i64: 1, 32>}, {transform_indices = @transform_3, window_bounds = array<i64: 2, 4, 32>}]} {
    %c0 = arith.constant 0 : index
    %c0_0 = arith.constant 0 : index
    %0 = vector.load %arg2[%c0, %c0_0] : memref<192x32xbf16, #tpu.memory_space<vmem>>, vector<192x32xbf16>
    %c0_1 = arith.constant 0 : index
    %c0_2 = arith.constant 0 : index
    %1 = vector.load %arg3[%c0_1, %c0_2] : memref<1x32xf32, #tpu.memory_space<vmem>>, vector<1x32xf32>
    %c0_3 = arith.constant 0 : index
    %c0_4 = arith.constant 0 : index
    %c0_5 = arith.constant 0 : index
    %2 = vector.load %arg1[%c0_3, %c0_4, %c0_5] : memref<2x4x192xbf16, #tpu.memory_space<vmem>>, vector<1x4x192xbf16>
    %3 = vector.shape_cast %2 : vector<1x4x192xbf16> to vector<4x192xbf16>
    %cst = arith.constant dense<0.000000e+00> : vector<4x32xf32>
    %4 = tpu.matmul %3, %0, %cst {dimension_numbers = #tpu.dot_dimension_numbers<[1], [0], [0], [1], [0, 0, 1, 1], [], []>} : vector<4x192xbf16>, vector<192x32xbf16>, vector<4x32xf32> -> vector<4x32xf32>
    %5 = vector.broadcast %1 : vector<1x32xf32> to vector<4x32xf32>
    %6 = arith.addf %4, %5 : vector<4x32xf32>
    %c0_6 = arith.constant 0 : index
    %c0_7 = arith.constant 0 : index
    %c0_8 = arith.constant 0 : index
    %7 = vector.load %arg4[%c0_6, %c0_7, %c0_8] : memref<2x4x32xf32, #tpu.memory_space<vmem>>, vector<1x4x32xf32>
    %8 = vector.shape_cast %7 : vector<1x4x32xf32> to vector<4x32xf32>
    %9 = vector.shape_cast %6 : vector<4x32xf32> to vector<1x4x32xf32>
    tpu.vector_store %arg4[%c0_6, %c0_7, %c0_8], %9 {strides = array<i32>} : memref<2x4x32xf32, #tpu.memory_space<vmem>>, vector<1x4x32xf32>,
    %c1 = arith.constant 1 : index
    %c0_9 = arith.constant 0 : index
    %c0_10 = arith.constant 0 : index
    %10 = vector.load %arg1[%c1, %c0_9, %c0_10] : memref<2x4x192xbf16, #tpu.memory_space<vmem>>, vector<1x4x192xbf16>
    %11 = vector.shape_cast %10 : vector<1x4x192xbf16> to vector<4x192xbf16>
    %cst_11 = arith.constant dense<0.000000e+00> : vector<4x32xf32>
    %12 = tpu.matmul %11, %0, %cst_11 {dimension_numbers = #tpu.dot_dimension_numbers<[1], [0], [0], [1], [0, 0, 1, 1], [], []>} : vector<4x192xbf16>, vector<192x32xbf16>, vector<4x32xf32> -> vector<4x32xf32>
    %13 = vector.broadcast %1 : vector<1x32xf32> to vector<4x32xf32>
    %14 = arith.addf %12, %13 : vector<4x32xf32>
    %c1_12 = arith.constant 1 : index
    %c0_13 = arith.constant 0 : index
    %c0_14 = arith.constant 0 : index
    %15 = vector.load %arg4[%c1_12, %c0_13, %c0_14] : memref<2x4x32xf32, #tpu.memory_space<vmem>>, vector<1x4x32xf32>
    %16 = vector.shape_cast %15 : vector<1x4x32xf32> to vector<4x32xf32>
    %17 = vector.shape_cast %14 : vector<4x32xf32> to vector<1x4x32xf32>
    tpu.vector_store %arg4[%c1_12, %c0_13, %c0_14], %17 {strides = array<i32>} : memref<2x4x32xf32, #tpu.memory_space<vmem>>, vector<1x4x32xf32>,
    return
  }
  func.func @transform_0(%arg0: i32) -> (i32, i32, i32) {
    %c0_i32 = arith.constant 0 : i32
    %c0_i32_0 = arith.constant 0 : i32
    %c0_i32_1 = arith.constant 0 : i32
    return %arg0, %c0_i32, %c0_i32_0 : i32, i32, i32
  }
  func.func @transform_1(%arg0: i32) -> (i32, i32) {
    %c0_i32 = arith.constant 0 : i32
    %c0_i32_0 = arith.constant 0 : i32
    %c0_i32_1 = arith.constant 0 : i32
    return %c0_i32, %c0_i32_0 : i32, i32
  }
  func.func @transform_2(%arg0: i32) -> (i32, i32) {
    %c0_i32 = arith.constant 0 : i32
    %c0_i32_0 = arith.constant 0 : i32
    %c0_i32_1 = arith.constant 0 : i32
    return %c0_i32, %c0_i32_0 : i32, i32
  }
  func.func @transform_3(%arg0: i32) -> (i32, i32, i32) {
    %c0_i32 = arith.constant 0 : i32
    %c0_i32_0 = arith.constant 0 : i32
    %c0_i32_1 = arith.constant 0 : i32
    return %arg0, %c0_i32, %c0_i32_0 : i32, i32, i32
  }
}

module attributes {stable_mosaic.version = 11 : i64} {
  func.func @kernel(%arg0: i32, %arg1: memref<2x8x32xf32, #tpu.memory_space<vmem>>, %arg2: memref<1x32xf32, #tpu.memory_space<vmem>>, %arg3: memref<1x32xf32, #tpu.memory_space<vmem>>, %arg4: memref<32x32xbf16, #tpu.memory_space<vmem>>, %arg5: memref<1x32xf32, #tpu.memory_space<vmem>>, %arg6: memref<32x32xbf16, #tpu.memory_space<vmem>>, %arg7: memref<1x32xf32, #tpu.memory_space<vmem>>, %arg8: memref<32x32xbf16, #tpu.memory_space<vmem>>, %arg9: memref<1x32xf32, #tpu.memory_space<vmem>>, %arg10: memref<32x32xbf16, #tpu.memory_space<vmem>>, %arg11: memref<1x32xf32, #tpu.memory_space<vmem>>, %arg12: memref<1x32xf32, #tpu.memory_space<vmem>>, %arg13: memref<1x32xf32, #tpu.memory_space<vmem>>, %arg14: memref<32x128xbf16, #tpu.memory_space<vmem>>, %arg15: memref<1x128xf32, #tpu.memory_space<vmem>>, %arg16: memref<128x32xbf16, #tpu.memory_space<vmem>>, %arg17: memref<1x32xf32, #tpu.memory_space<vmem>>, %arg18: memref<1x32xf32, #tpu.memory_space<vmem>>, %arg19: memref<1x32xf32, #tpu.memory_space<vmem>>, %arg20: memref<32x10xbf16, #tpu.memory_space<vmem>>, %arg21: memref<1x10xf32, #tpu.memory_space<vmem>>, %arg22: memref<2x1x10xf32, #tpu.memory_space<vmem>>, %arg23: memref<4x2x8x8xbf16, #tpu.memory_space<vmem>>, %arg24: memref<4x2x8x8xbf16, #tpu.memory_space<vmem>>, %arg25: memref<4x2x8x8xbf16, #tpu.memory_space<vmem>>, %arg26: memref<16x32xf32, #tpu.memory_space<vmem>>) attributes {dimension_semantics = [#tpu.dimension_semantics<parallel>], iteration_bounds = array<i64: 2>, scalar_prefetch = 0 : i64, scratch_operands = 4 : i64, tpu.core_type = #tpu.core_type<tc>, window_params = [{transform_indices = @transform_0, window_bounds = array<i64: 2, 8, 32>}, {pipeline_mode = #tpu.pipeline_mode<synchronous>, transform_indices = @transform_1, window_bounds = array<i64: 1, 32>}, {pipeline_mode = #tpu.pipeline_mode<synchronous>, transform_indices = @transform_2, window_bounds = array<i64: 1, 32>}, {pipeline_mode = #tpu.pipeline_mode<synchronous>, transform_indices = @transform_3, window_bounds = array<i64: 32, 32>}, {pipeline_mode = #tpu.pipeline_mode<synchronous>, transform_indices = @transform_4, window_bounds = array<i64: 1, 32>}, {pipeline_mode = #tpu.pipeline_mode<synchronous>, transform_indices = @transform_5, window_bounds = array<i64: 32, 32>}, {pipeline_mode = #tpu.pipeline_mode<synchronous>, transform_indices = @transform_6, window_bounds = array<i64: 1, 32>}, {pipeline_mode = #tpu.pipeline_mode<synchronous>, transform_indices = @transform_7, window_bounds = array<i64: 32, 32>}, {pipeline_mode = #tpu.pipeline_mode<synchronous>, transform_indices = @transform_8, window_bounds = array<i64: 1, 32>}, {pipeline_mode = #tpu.pipeline_mode<synchronous>, transform_indices = @transform_9, window_bounds = array<i64: 32, 32>}, {pipeline_mode = #tpu.pipeline_mode<synchronous>, transform_indices = @transform_10, window_bounds = array<i64: 1, 32>}, {pipeline_mode = #tpu.pipeline_mode<synchronous>, transform_indices = @transform_11, window_bounds = array<i64: 1, 32>}, {pipeline_mode = #tpu.pipeline_mode<synchronous>, transform_indices = @transform_12, window_bounds = array<i64: 1, 32>}, {pipeline_mode = #tpu.pipeline_mode<synchronous>, transform_indices = @transform_13, window_bounds = array<i64: 32, 128>}, {pipeline_mode = #tpu.pipeline_mode<synchronous>, transform_indices = @transform_14, window_bounds = array<i64: 1, 128>}, {pipeline_mode = #tpu.pipeline_mode<synchronous>, transform_indices = @transform_15, window_bounds = array<i64: 128, 32>}, {pipeline_mode = #tpu.pipeline_mode<synchronous>, transform_indices = @transform_16, window_bounds = array<i64: 1, 32>}, {pipeline_mode = #tpu.pipeline_mode<synchronous>, transform_indices = @transform_17, window_bounds = array<i64: 1, 32>}, {pipeline_mode = #tpu.pipeline_mode<synchronous>, transform_indices = @transform_18, window_bounds = array<i64: 1, 32>}, {pipeline_mode = #tpu.pipeline_mode<synchronous>, transform_indices = @transform_19, window_bounds = array<i64: 32, 10>}, {pipeline_mode = #tpu.pipeline_mode<synchronous>, transform_indices = @transform_20, window_bounds = array<i64: 1, 10>}, {transform_indices = @transform_21, window_bounds = array<i64: 2, 1, 10>}]} {
    %c0 = arith.constant 0 : index
    %c0_0 = arith.constant 0 : index
    %c0_1 = arith.constant 0 : index
    %0 = vector.load %arg1[%c0, %c0_0, %c0_1] : memref<2x8x32xf32, #tpu.memory_space<vmem>>, vector<2x8x32xf32>
    %1 = vector.shape_cast %0 : vector<2x8x32xf32> to vector<16x32xf32>
    %c0_2 = arith.constant 0 : index
    %c0_3 = arith.constant 0 : index
    %2 = vector.load %arg2[%c0_2, %c0_3] : memref<1x32xf32, #tpu.memory_space<vmem>>, vector<1x32xf32>
    %c0_4 = arith.constant 0 : index
    %c0_5 = arith.constant 0 : index
    %3 = vector.load %arg3[%c0_4, %c0_5] : memref<1x32xf32, #tpu.memory_space<vmem>>, vector<1x32xf32>
    %cst = arith.constant dense<0.000000e+00> : vector<16xf32>
    %4 = vector.multi_reduction <add>, %1, %cst [1] : vector<16x32xf32> to vector<16xf32>
    %5 = vector.shape_cast %4 : vector<16xf32> to vector<16x1xf32>
    %cst_6 = arith.constant 3.200000e+01 : f32
    %6 = vector.broadcast %cst_6 : f32 to vector<16x1xf32>
    %7 = arith.divf %5, %6 : vector<16x1xf32>
    %8 = vector.broadcast %7 : vector<16x1xf32> to vector<16x32xf32>
    %9 = arith.subf %1, %8 : vector<16x32xf32>
    %10 = arith.mulf %9, %9 : vector<16x32xf32>
    %cst_7 = arith.constant dense<0.000000e+00> : vector<16xf32>
    %11 = vector.multi_reduction <add>, %10, %cst_7 [1] : vector<16x32xf32> to vector<16xf32>
    %12 = vector.shape_cast %11 : vector<16xf32> to vector<16x1xf32>
    %cst_8 = arith.constant 3.200000e+01 : f32
    %13 = vector.broadcast %cst_8 : f32 to vector<16x1xf32>
    %14 = arith.divf %12, %13 : vector<16x1xf32>
    %15 = vector.broadcast %7 : vector<16x1xf32> to vector<16x32xf32>
    %16 = arith.subf %1, %15 : vector<16x32xf32>
    %cst_9 = arith.constant 9.99999997E-7 : f32
    %17 = vector.broadcast %cst_9 : f32 to vector<16x1xf32>
    %18 = arith.addf %14, %17 : vector<16x1xf32>
    %19 = math.rsqrt %18 : vector<16x1xf32>
    %20 = vector.broadcast %19 : vector<16x1xf32> to vector<16x32xf32>
    %21 = arith.mulf %16, %20 : vector<16x32xf32>
    %22 = vector.broadcast %2 : vector<1x32xf32> to vector<16x32xf32>
    %23 = arith.mulf %21, %22 : vector<16x32xf32>
    %24 = vector.broadcast %3 : vector<1x32xf32> to vector<16x32xf32>
    %25 = arith.addf %23, %24 : vector<16x32xf32>
    %26 = arith.truncf %25 : vector<16x32xf32> to vector<16x32xbf16>
    %c0_10 = arith.constant 0 : index
    %c0_11 = arith.constant 0 : index
    %27 = vector.load %arg4[%c0_10, %c0_11] : memref<32x32xbf16, #tpu.memory_space<vmem>>, vector<32x32xbf16>
    %cst_12 = arith.constant dense<0.000000e+00> : vector<16x32xf32>
    %28 = tpu.matmul %26, %27, %cst_12 {dimension_numbers = #tpu.dot_dimension_numbers<[1], [0], [0], [1], [0, 0, 1, 1], [], []>} : vector<16x32xbf16>, vector<32x32xbf16>, vector<16x32xf32> -> vector<16x32xf32>
    %c0_13 = arith.constant 0 : index
    %c0_14 = arith.constant 0 : index
    %29 = vector.load %arg5[%c0_13, %c0_14] : memref<1x32xf32, #tpu.memory_space<vmem>>, vector<1x32xf32>
    %30 = vector.broadcast %29 : vector<1x32xf32> to vector<16x32xf32>
    %31 = arith.addf %28, %30 : vector<16x32xf32>
    %cst_15 = arith.constant 0.353553385 : f32
    %32 = vector.broadcast %cst_15 : f32 to vector<16x32xf32>
    %33 = arith.mulf %31, %32 : vector<16x32xf32>
    %34 = arith.truncf %33 : vector<16x32xf32> to vector<16x32xbf16>
    %c0_16 = arith.constant 0 : index
    %c0_17 = arith.constant 0 : index
    %35 = vector.load %arg6[%c0_16, %c0_17] : memref<32x32xbf16, #tpu.memory_space<vmem>>, vector<32x32xbf16>
    %cst_18 = arith.constant dense<0.000000e+00> : vector<16x32xf32>
    %36 = tpu.matmul %26, %35, %cst_18 {dimension_numbers = #tpu.dot_dimension_numbers<[1], [0], [0], [1], [0, 0, 1, 1], [], []>} : vector<16x32xbf16>, vector<32x32xbf16>, vector<16x32xf32> -> vector<16x32xf32>
    %c0_19 = arith.constant 0 : index
    %c0_20 = arith.constant 0 : index
    %37 = vector.load %arg7[%c0_19, %c0_20] : memref<1x32xf32, #tpu.memory_space<vmem>>, vector<1x32xf32>
    %38 = vector.broadcast %37 : vector<1x32xf32> to vector<16x32xf32>
    %39 = arith.addf %36, %38 : vector<16x32xf32>
    %40 = arith.truncf %39 : vector<16x32xf32> to vector<16x32xbf16>
    %c0_21 = arith.constant 0 : index
    %c0_22 = arith.constant 0 : index
    %41 = vector.load %arg8[%c0_21, %c0_22] : memref<32x32xbf16, #tpu.memory_space<vmem>>, vector<32x32xbf16>
    %cst_23 = arith.constant dense<0.000000e+00> : vector<16x32xf32>
    %42 = tpu.matmul %26, %41, %cst_23 {dimension_numbers = #tpu.dot_dimension_numbers<[1], [0], [0], [1], [0, 0, 1, 1], [], []>} : vector<16x32xbf16>, vector<32x32xbf16>, vector<16x32xf32> -> vector<16x32xf32>
    %c0_24 = arith.constant 0 : index
    %c0_25 = arith.constant 0 : index
    %43 = vector.load %arg9[%c0_24, %c0_25] : memref<1x32xf32, #tpu.memory_space<vmem>>, vector<1x32xf32>
    %44 = vector.broadcast %43 : vector<1x32xf32> to vector<16x32xf32>
    %45 = arith.addf %42, %44 : vector<16x32xf32>
    %46 = arith.truncf %45 : vector<16x32xf32> to vector<16x32xbf16>
    %47 = vector.extract_strided_slice %34 {offsets = [0, 0], sizes = [16, 8], strides = [1, 1]} : vector<16x32xbf16> to vector<16x8xbf16>
    %48 = vector.shape_cast %47 : vector<16x8xbf16> to vector<2x8x8xbf16>
    %c0_26 = arith.constant 0 : index
    %c0_27 = arith.constant 0 : index
    %c0_28 = arith.constant 0 : index
    %c0_29 = arith.constant 0 : index
    %49 = vector.load %arg23[%c0_26, %c0_27, %c0_28, %c0_29] : memref<4x2x8x8xbf16, #tpu.memory_space<vmem>>, vector<1x2x8x8xbf16>
    %50 = vector.shape_cast %49 : vector<1x2x8x8xbf16> to vector<2x8x8xbf16>
    %51 = vector.shape_cast %48 : vector<2x8x8xbf16> to vector<1x2x8x8xbf16>
    tpu.vector_store %arg23[%c0_26, %c0_27, %c0_28, %c0_29], %51 {strides = array<i32>} : memref<4x2x8x8xbf16, #tpu.memory_space<vmem>>, vector<1x2x8x8xbf16>,
    %52 = vector.extract_strided_slice %40 {offsets = [0, 0], sizes = [16, 8], strides = [1, 1]} : vector<16x32xbf16> to vector<16x8xbf16>
    %53 = vector.shape_cast %52 : vector<16x8xbf16> to vector<2x8x8xbf16>
    %c0_30 = arith.constant 0 : index
    %c0_31 = arith.constant 0 : index
    %c0_32 = arith.constant 0 : index
    %c0_33 = arith.constant 0 : index
    %54 = vector.load %arg24[%c0_30, %c0_31, %c0_32, %c0_33] : memref<4x2x8x8xbf16, #tpu.memory_space<vmem>>, vector<1x2x8x8xbf16>
    %55 = vector.shape_cast %54 : vector<1x2x8x8xbf16> to vector<2x8x8xbf16>
    %56 = vector.shape_cast %53 : vector<2x8x8xbf16> to vector<1x2x8x8xbf16>
    tpu.vector_store %arg24[%c0_30, %c0_31, %c0_32, %c0_33], %56 {strides = array<i32>} : memref<4x2x8x8xbf16, #tpu.memory_space<vmem>>, vector<1x2x8x8xbf16>,
    %57 = vector.extract_strided_slice %46 {offsets = [0, 0], sizes = [16, 8], strides = [1, 1]} : vector<16x32xbf16> to vector<16x8xbf16>
    %58 = vector.shape_cast %57 : vector<16x8xbf16> to vector<2x8x8xbf16>
    %c0_34 = arith.constant 0 : index
    %c0_35 = arith.constant 0 : index
    %c0_36 = arith.constant 0 : index
    %c0_37 = arith.constant 0 : index
    %59 = vector.load %arg25[%c0_34, %c0_35, %c0_36, %c0_37] : memref<4x2x8x8xbf16, #tpu.memory_space<vmem>>, vector<1x2x8x8xbf16>
    %60 = vector.shape_cast %59 : vector<1x2x8x8xbf16> to vector<2x8x8xbf16>
    %61 = vector.shape_cast %58 : vector<2x8x8xbf16> to vector<1x2x8x8xbf16>
    tpu.vector_store %arg25[%c0_34, %c0_35, %c0_36, %c0_37], %61 {strides = array<i32>} : memref<4x2x8x8xbf16, #tpu.memory_space<vmem>>, vector<1x2x8x8xbf16>,
    %62 = vector.extract_strided_slice %34 {offsets = [0, 8], sizes = [16, 8], strides = [1, 1]} : vector<16x32xbf16> to vector<16x8xbf16>
    %63 = vector.shape_cast %62 : vector<16x8xbf16> to vector<2x8x8xbf16>
    %c1 = arith.constant 1 : index
    %c0_38 = arith.constant 0 : index
    %c0_39 = arith.constant 0 : index
    %c0_40 = arith.constant 0 : index
    %64 = vector.load %arg23[%c1, %c0_38, %c0_39, %c0_40] : memref<4x2x8x8xbf16, #tpu.memory_space<vmem>>, vector<1x2x8x8xbf16>
    %65 = vector.shape_cast %64 : vector<1x2x8x8xbf16> to vector<2x8x8xbf16>
    %66 = vector.shape_cast %63 : vector<2x8x8xbf16> to vector<1x2x8x8xbf16>
    tpu.vector_store %arg23[%c1, %c0_38, %c0_39, %c0_40], %66 {strides = array<i32>} : memref<4x2x8x8xbf16, #tpu.memory_space<vmem>>, vector<1x2x8x8xbf16>,
    %67 = vector.extract_strided_slice %40 {offsets = [0, 8], sizes = [16, 8], strides = [1, 1]} : vector<16x32xbf16> to vector<16x8xbf16>
    %68 = vector.shape_cast %67 : vector<16x8xbf16> to vector<2x8x8xbf16>
    %c1_41 = arith.constant 1 : index
    %c0_42 = arith.constant 0 : index
    %c0_43 = arith.constant 0 : index
    %c0_44 = arith.constant 0 : index
    %69 = vector.load %arg24[%c1_41, %c0_42, %c0_43, %c0_44] : memref<4x2x8x8xbf16, #tpu.memory_space<vmem>>, vector<1x2x8x8xbf16>
    %70 = vector.shape_cast %69 : vector<1x2x8x8xbf16> to vector<2x8x8xbf16>
    %71 = vector.shape_cast %68 : vector<2x8x8xbf16> to vector<1x2x8x8xbf16>
    tpu.vector_store %arg24[%c1_41, %c0_42, %c0_43, %c0_44], %71 {strides = array<i32>} : memref<4x2x8x8xbf16, #tpu.memory_space<vmem>>, vector<1x2x8x8xbf16>,
    %72 = vector.extract_strided_slice %46 {offsets = [0, 8], sizes = [16, 8], strides = [1, 1]} : vector<16x32xbf16> to vector<16x8xbf16>
    %73 = vector.shape_cast %72 : vector<16x8xbf16> to vector<2x8x8xbf16>
    %c1_45 = arith.constant 1 : index
    %c0_46 = arith.constant 0 : index
    %c0_47 = arith.constant 0 : index
    %c0_48 = arith.constant 0 : index
    %74 = vector.load %arg25[%c1_45, %c0_46, %c0_47, %c0_48] : memref<4x2x8x8xbf16, #tpu.memory_space<vmem>>, vector<1x2x8x8xbf16>
    %75 = vector.shape_cast %74 : vector<1x2x8x8xbf16> to vector<2x8x8xbf16>
    %76 = vector.shape_cast %73 : vector<2x8x8xbf16> to vector<1x2x8x8xbf16>
    tpu.vector_store %arg25[%c1_45, %c0_46, %c0_47, %c0_48], %76 {strides = array<i32>} : memref<4x2x8x8xbf16, #tpu.memory_space<vmem>>, vector<1x2x8x8xbf16>,
    %77 = vector.extract_strided_slice %34 {offsets = [0, 16], sizes = [16, 8], strides = [1, 1]} : vector<16x32xbf16> to vector<16x8xbf16>
    %78 = vector.shape_cast %77 : vector<16x8xbf16> to vector<2x8x8xbf16>
    %c2 = arith.constant 2 : index
    %c0_49 = arith.constant 0 : index
    %c0_50 = arith.constant 0 : index
    %c0_51 = arith.constant 0 : index
    %79 = vector.load %arg23[%c2, %c0_49, %c0_50, %c0_51] : memref<4x2x8x8xbf16, #tpu.memory_space<vmem>>, vector<1x2x8x8xbf16>
    %80 = vector.shape_cast %79 : vector<1x2x8x8xbf16> to vector<2x8x8xbf16>
    %81 = vector.shape_cast %78 : vector<2x8x8xbf16> to vector<1x2x8x8xbf16>
    tpu.vector_store %arg23[%c2, %c0_49, %c0_50, %c0_51], %81 {strides = array<i32>} : memref<4x2x8x8xbf16, #tpu.memory_space<vmem>>, vector<1x2x8x8xbf16>,
    %82 = vector.extract_strided_slice %40 {offsets = [0, 16], sizes = [16, 8], strides = [1, 1]} : vector<16x32xbf16> to vector<16x8xbf16>
    %83 = vector.shape_cast %82 : vector<16x8xbf16> to vector<2x8x8xbf16>
    %c2_52 = arith.constant 2 : index
    %c0_53 = arith.constant 0 : index
    %c0_54 = arith.constant 0 : index
    %c0_55 = arith.constant 0 : index
    %84 = vector.load %arg24[%c2_52, %c0_53, %c0_54, %c0_55] : memref<4x2x8x8xbf16, #tpu.memory_space<vmem>>, vector<1x2x8x8xbf16>
    %85 = vector.shape_cast %84 : vector<1x2x8x8xbf16> to vector<2x8x8xbf16>
    %86 = vector.shape_cast %83 : vector<2x8x8xbf16> to vector<1x2x8x8xbf16>
    tpu.vector_store %arg24[%c2_52, %c0_53, %c0_54, %c0_55], %86 {strides = array<i32>} : memref<4x2x8x8xbf16, #tpu.memory_space<vmem>>, vector<1x2x8x8xbf16>,
    %87 = vector.extract_strided_slice %46 {offsets = [0, 16], sizes = [16, 8], strides = [1, 1]} : vector<16x32xbf16> to vector<16x8xbf16>
    %88 = vector.shape_cast %87 : vector<16x8xbf16> to vector<2x8x8xbf16>
    %c2_56 = arith.constant 2 : index
    %c0_57 = arith.constant 0 : index
    %c0_58 = arith.constant 0 : index
    %c0_59 = arith.constant 0 : index
    %89 = vector.load %arg25[%c2_56, %c0_57, %c0_58, %c0_59] : memref<4x2x8x8xbf16, #tpu.memory_space<vmem>>, vector<1x2x8x8xbf16>
    %90 = vector.shape_cast %89 : vector<1x2x8x8xbf16> to vector<2x8x8xbf16>
    %91 = vector.shape_cast %88 : vector<2x8x8xbf16> to vector<1x2x8x8xbf16>
    tpu.vector_store %arg25[%c2_56, %c0_57, %c0_58, %c0_59], %91 {strides = array<i32>} : memref<4x2x8x8xbf16, #tpu.memory_space<vmem>>, vector<1x2x8x8xbf16>,
    %92 = vector.extract_strided_slice %34 {offsets = [0, 24], sizes = [16, 8], strides = [1, 1]} : vector<16x32xbf16> to vector<16x8xbf16>
    %93 = vector.shape_cast %92 : vector<16x8xbf16> to vector<2x8x8xbf16>
    %c3 = arith.constant 3 : index
    %c0_60 = arith.constant 0 : index
    %c0_61 = arith.constant 0 : index
    %c0_62 = arith.constant 0 : index
    %94 = vector.load %arg23[%c3, %c0_60, %c0_61, %c0_62] : memref<4x2x8x8xbf16, #tpu.memory_space<vmem>>, vector<1x2x8x8xbf16>
    %95 = vector.shape_cast %94 : vector<1x2x8x8xbf16> to vector<2x8x8xbf16>
    %96 = vector.shape_cast %93 : vector<2x8x8xbf16> to vector<1x2x8x8xbf16>
    tpu.vector_store %arg23[%c3, %c0_60, %c0_61, %c0_62], %96 {strides = array<i32>} : memref<4x2x8x8xbf16, #tpu.memory_space<vmem>>, vector<1x2x8x8xbf16>,
    %97 = vector.extract_strided_slice %40 {offsets = [0, 24], sizes = [16, 8], strides = [1, 1]} : vector<16x32xbf16> to vector<16x8xbf16>
    %98 = vector.shape_cast %97 : vector<16x8xbf16> to vector<2x8x8xbf16>
    %c3_63 = arith.constant 3 : index
    %c0_64 = arith.constant 0 : index
    %c0_65 = arith.constant 0 : index
    %c0_66 = arith.constant 0 : index
    %99 = vector.load %arg24[%c3_63, %c0_64, %c0_65, %c0_66] : memref<4x2x8x8xbf16, #tpu.memory_space<vmem>>, vector<1x2x8x8xbf16>
    %100 = vector.shape_cast %99 : vector<1x2x8x8xbf16> to vector<2x8x8xbf16>
    %101 = vector.shape_cast %98 : vector<2x8x8xbf16> to vector<1x2x8x8xbf16>
    tpu.vector_store %arg24[%c3_63, %c0_64, %c0_65, %c0_66], %101 {strides = array<i32>} : memref<4x2x8x8xbf16, #tpu.memory_space<vmem>>, vector<1x2x8x8xbf16>,
    %102 = vector.extract_strided_slice %46 {offsets = [0, 24], sizes = [16, 8], strides = [1, 1]} : vector<16x32xbf16> to vector<16x8xbf16>
    %103 = vector.shape_cast %102 : vector<16x8xbf16> to vector<2x8x8xbf16>
    %c3_67 = arith.constant 3 : index
    %c0_68 = arith.constant 0 : index
    %c0_69 = arith.constant 0 : index
    %c0_70 = arith.constant 0 : index
    %104 = vector.load %arg25[%c3_67, %c0_68, %c0_69, %c0_70] : memref<4x2x8x8xbf16, #tpu.memory_space<vmem>>, vector<1x2x8x8xbf16>
    %105 = vector.shape_cast %104 : vector<1x2x8x8xbf16> to vector<2x8x8xbf16>
    %106 = vector.shape_cast %103 : vector<2x8x8xbf16> to vector<1x2x8x8xbf16>
    tpu.vector_store %arg25[%c3_67, %c0_68, %c0_69, %c0_70], %106 {strides = array<i32>} : memref<4x2x8x8xbf16, #tpu.memory_space<vmem>>, vector<1x2x8x8xbf16>,
    %107 = tpu.iota {dimensions = array<i32: 2>} : vector<1x1x8xi32>
    %c5_i32 = arith.constant 5 : i32
    %108 = vector.broadcast %c5_i32 : i32 to vector<1x1x8xi32>
    %109 = arith.cmpi slt, %107, %108 : vector<1x1x8xi32>
    %cst_71 = arith.constant 0.000000e+00 : f32
    %cst_72 = arith.constant -1.000000e+30 : f32
    %110 = vector.broadcast %cst_71 : f32 to vector<1x1x8xf32>
    %111 = vector.broadcast %cst_72 : f32 to vector<1x1x8xf32>
    %112 = arith.select %109, %110, %111 : vector<1x1x8xi1>, vector<1x1x8xf32>
    %c0_73 = arith.constant 0 : index
    %c0_74 = arith.constant 0 : index
    %113 = vector.load %arg11[%c0_73, %c0_74] : memref<1x32xf32, #tpu.memory_space<vmem>>, vector<1x32xf32>
    %114 = vector.broadcast %113 : vector<1x32xf32> to vector<16x32xf32>
    %115 = arith.addf %1, %114 : vector<16x32xf32>
    %c0_75 = arith.constant 0 : index
    %c0_76 = arith.constant 0 : index
    %116 = vector.load %arg26[%c0_75, %c0_76] : memref<16x32xf32, #tpu.memory_space<vmem>>, vector<16x32xf32>
    tpu.vector_store %arg26[%c0_75, %c0_76], %115 {strides = array<i32>} : memref<16x32xf32, #tpu.memory_space<vmem>>, vector<16x32xf32>,
    %c0_i32 = arith.constant 0 : i32
    %c4_i32 = arith.constant 4 : i32
    %117 = arith.addi %c0_i32, %c4_i32 : i32
    %c1_i32 = arith.constant 1 : i32
    scf.for %arg27 = %c0_i32 to %117 step %c1_i32  : i32 {
      %c8_i32 = arith.constant 8 : i32
      %258 = arith.muli %arg27, %c8_i32 : i32
      %259 = tpu.assume_multiple %258, 8 : i32
      %260 = arith.index_cast %arg27 : i32 to index
      %c0_153 = arith.constant 0 : index
      %c0_154 = arith.constant 0 : index
      %c0_155 = arith.constant 0 : index
      %261 = vector.load %arg23[%260, %c0_153, %c0_154, %c0_155] : memref<4x2x8x8xbf16, #tpu.memory_space<vmem>>, vector<1x2x8x8xbf16>
      %262 = vector.shape_cast %261 : vector<1x2x8x8xbf16> to vector<2x8x8xbf16>
      %263 = arith.index_cast %arg27 : i32 to index
      %c0_156 = arith.constant 0 : index
      %c0_157 = arith.constant 0 : index
      %c0_158 = arith.constant 0 : index
      %264 = vector.load %arg24[%263, %c0_156, %c0_157, %c0_158] : memref<4x2x8x8xbf16, #tpu.memory_space<vmem>>, vector<1x2x8x8xbf16>
      %265 = vector.shape_cast %264 : vector<1x2x8x8xbf16> to vector<2x8x8xbf16>
      %266 = arith.index_cast %arg27 : i32 to index
      %c0_159 = arith.constant 0 : index
      %c0_160 = arith.constant 0 : index
      %c0_161 = arith.constant 0 : index
      %267 = vector.load %arg25[%266, %c0_159, %c0_160, %c0_161] : memref<4x2x8x8xbf16, #tpu.memory_space<vmem>>, vector<1x2x8x8xbf16>
      %268 = vector.shape_cast %267 : vector<1x2x8x8xbf16> to vector<2x8x8xbf16>
      "tpu.trace_start"() <{level = 10 : i32, message = "bnd,bmd->bnm"}> : () -> ()
      %cst_162 = arith.constant dense<0.000000e+00> : vector<2x8x8xf32>
      %269 = tpu.matmul %262, %265, %cst_162 {dimension_numbers = #tpu.dot_dimension_numbers<[2], [2], [1], [1], [0, 0, 0, 1, 1, 1], [0], [0]>} : vector<2x8x8xbf16>, vector<2x8x8xbf16>, vector<2x8x8xf32> -> vector<2x8x8xf32>
      "tpu.trace_stop"() : () -> ()
      %270 = vector.broadcast %112 : vector<1x1x8xf32> to vector<2x8x8xf32>
      %271 = arith.addf %269, %270 : vector<2x8x8xf32>
      %cst_163 = arith.constant dense<0xFF800000> : vector<2x8xf32>
      %272 = vector.multi_reduction <maximumf>, %271, %cst_163 [2] : vector<2x8x8xf32> to vector<2x8xf32>
      %273 = vector.shape_cast %272 : vector<2x8xf32> to vector<2x8x1xf32>
      %274 = vector.broadcast %273 : vector<2x8x1xf32> to vector<2x8x8xf32>
      %275 = arith.subf %271, %274 : vector<2x8x8xf32>
      %276 = math.exp %275 : vector<2x8x8xf32>
      %cst_164 = arith.constant dense<0.000000e+00> : vector<2x8xf32>
      %277 = vector.multi_reduction <add>, %276, %cst_164 [2] : vector<2x8x8xf32> to vector<2x8xf32>
      %278 = vector.shape_cast %277 : vector<2x8xf32> to vector<2x8x1xf32>
      %279 = tpu.reciprocal %278 {approx = true} : vector<2x8x1xf32> -> vector<2x8x1xf32>
      %280 = vector.broadcast %279 : vector<2x8x1xf32> to vector<2x8x8xf32>
      %281 = arith.mulf %276, %280 : vector<2x8x8xf32>
      %282 = arith.truncf %281 : vector<2x8x8xf32> to vector<2x8x8xbf16>
      "tpu.trace_start"() <{level = 10 : i32, message = "bnm,bmd->bnd"}> : () -> ()
      %cst_165 = arith.constant dense<0.000000e+00> : vector<2x8x8xf32>
      %283 = tpu.matmul %282, %268, %cst_165 {dimension_numbers = #tpu.dot_dimension_numbers<[2], [1], [1], [2], [0, 0, 0, 1, 1, 2], [0], [0]>} : vector<2x8x8xbf16>, vector<2x8x8xbf16>, vector<2x8x8xf32> -> vector<2x8x8xf32>
      "tpu.trace_stop"() : () -> ()
      %c0_166 = arith.constant 0 : index
      %c0_167 = arith.constant 0 : index
      %284 = vector.load %arg26[%c0_166, %c0_167] : memref<16x32xf32, #tpu.memory_space<vmem>>, vector<16x32xf32>
      %285 = vector.shape_cast %283 : vector<2x8x8xf32> to vector<16x8xf32>
      %286 = arith.truncf %285 : vector<16x8xf32> to vector<16x8xbf16>
      %287 = arith.index_cast %259 : i32 to index
      %c0_168 = arith.constant 0 : index
      %288 = vector.load %arg10[%287, %c0_168] : memref<32x32xbf16, #tpu.memory_space<vmem>>, vector<8x32xbf16>
      %cst_169 = arith.constant dense<0.000000e+00> : vector<16x32xf32>
      %289 = tpu.matmul %286, %288, %cst_169 {dimension_numbers = #tpu.dot_dimension_numbers<[1], [0], [0], [1], [0, 0, 1, 1], [], []>} : vector<16x8xbf16>, vector<8x32xbf16>, vector<16x32xf32> -> vector<16x32xf32>
      %290 = arith.addf %284, %289 : vector<16x32xf32>
      %c0_170 = arith.constant 0 : index
      %c0_171 = arith.constant 0 : index
      %291 = vector.load %arg26[%c0_170, %c0_171] : memref<16x32xf32, #tpu.memory_space<vmem>>, vector<16x32xf32>
      tpu.vector_store %arg26[%c0_170, %c0_171], %290 {strides = array<i32>} : memref<16x32xf32, #tpu.memory_space<vmem>>, vector<16x32xf32>,
    }
    %c4_i32_77 = arith.constant 4 : i32
    %c0_78 = arith.constant 0 : index
    %c0_79 = arith.constant 0 : index
    %118 = vector.load %arg26[%c0_78, %c0_79] : memref<16x32xf32, #tpu.memory_space<vmem>>, vector<16x32xf32>
    %119 = vector.shape_cast %118 : vector<16x32xf32> to vector<2x8x32xf32>
    %120 = vector.extract_strided_slice %119 {offsets = [0, 0, 0], sizes = [2, 1, 32], strides = [1, 1, 1]} : vector<2x8x32xf32> to vector<2x1x32xf32>
    %121 = vector.shape_cast %120 : vector<2x1x32xf32> to vector<2x32xf32>
    %c0_80 = arith.constant 0 : index
    %c0_81 = arith.constant 0 : index
    %122 = vector.load %arg12[%c0_80, %c0_81] : memref<1x32xf32, #tpu.memory_space<vmem>>, vector<1x32xf32>
    %c0_82 = arith.constant 0 : index
    %c0_83 = arith.constant 0 : index
    %123 = vector.load %arg13[%c0_82, %c0_83] : memref<1x32xf32, #tpu.memory_space<vmem>>, vector<1x32xf32>
    %cst_84 = arith.constant dense<0.000000e+00> : vector<2xf32>
    %124 = vector.multi_reduction <add>, %121, %cst_84 [1] : vector<2x32xf32> to vector<2xf32>
    %125 = vector.shape_cast %124 : vector<2xf32> to vector<2x1xf32>
    %cst_85 = arith.constant 3.200000e+01 : f32
    %126 = vector.broadcast %cst_85 : f32 to vector<2x1xf32>
    %127 = arith.divf %125, %126 : vector<2x1xf32>
    %128 = vector.broadcast %127 : vector<2x1xf32> to vector<2x32xf32>
    %129 = arith.subf %121, %128 : vector<2x32xf32>
    %130 = arith.mulf %129, %129 : vector<2x32xf32>
    %cst_86 = arith.constant dense<0.000000e+00> : vector<2xf32>
    %131 = vector.multi_reduction <add>, %130, %cst_86 [1] : vector<2x32xf32> to vector<2xf32>
    %132 = vector.shape_cast %131 : vector<2xf32> to vector<2x1xf32>
    %cst_87 = arith.constant 3.200000e+01 : f32
    %133 = vector.broadcast %cst_87 : f32 to vector<2x1xf32>
    %134 = arith.divf %132, %133 : vector<2x1xf32>
    %135 = vector.broadcast %127 : vector<2x1xf32> to vector<2x32xf32>
    %136 = arith.subf %121, %135 : vector<2x32xf32>
    %cst_88 = arith.constant 9.99999997E-7 : f32
    %137 = vector.broadcast %cst_88 : f32 to vector<2x1xf32>
    %138 = arith.addf %134, %137 : vector<2x1xf32>
    %139 = math.rsqrt %138 : vector<2x1xf32>
    %140 = vector.broadcast %139 : vector<2x1xf32> to vector<2x32xf32>
    %141 = arith.mulf %136, %140 : vector<2x32xf32>
    %142 = vector.broadcast %122 : vector<1x32xf32> to vector<2x32xf32>
    %143 = arith.mulf %141, %142 : vector<2x32xf32>
    %144 = vector.broadcast %123 : vector<1x32xf32> to vector<2x32xf32>
    %145 = arith.addf %143, %144 : vector<2x32xf32>
    %146 = arith.truncf %145 : vector<2x32xf32> to vector<2x32xbf16>
    %c0_89 = arith.constant 0 : index
    %c0_90 = arith.constant 0 : index
    %147 = vector.load %arg17[%c0_89, %c0_90] : memref<1x32xf32, #tpu.memory_space<vmem>>, vector<1x32xf32>
    %148 = vector.broadcast %147 : vector<1x32xf32> to vector<2x32xf32>
    %149 = arith.addf %121, %148 : vector<2x32xf32>
    %c0_91 = arith.constant 0 : index
    %c0_92 = arith.constant 0 : index
    %150 = vector.load %arg14[%c0_91, %c0_92] : memref<32x128xbf16, #tpu.memory_space<vmem>>, vector<32x32xbf16>
    %cst_93 = arith.constant dense<0.000000e+00> : vector<2x32xf32>
    %151 = tpu.matmul %146, %150, %cst_93 {dimension_numbers = #tpu.dot_dimension_numbers<[1], [0], [0], [1], [0, 0, 1, 1], [], []>} : vector<2x32xbf16>, vector<32x32xbf16>, vector<2x32xf32> -> vector<2x32xf32>
    %c0_94 = arith.constant 0 : index
    %c0_95 = arith.constant 0 : index
    %152 = vector.load %arg15[%c0_94, %c0_95] : memref<1x128xf32, #tpu.memory_space<vmem>>, vector<1x32xf32>
    %153 = vector.broadcast %152 : vector<1x32xf32> to vector<2x32xf32>
    %154 = arith.addf %151, %153 : vector<2x32xf32>
    %cst_96 = arith.constant 5.000000e-01 : f32
    %155 = vector.broadcast %cst_96 : f32 to vector<2x32xf32>
    %156 = arith.mulf %155, %154 : vector<2x32xf32>
    %cst_97 = arith.constant 2.000000e+00 : f32
    %157 = math.sqrt %cst_97 : f32
    %cst_98 = arith.constant 1.000000e+00 : f32
    %158 = arith.divf %cst_98, %157 : f32
    %159 = vector.broadcast %158 : f32 to vector<2x32xf32>
    %160 = arith.mulf %154, %159 : vector<2x32xf32>
    %161 = math.erf %160 : vector<2x32xf32>
    %cst_99 = arith.constant 1.000000e+00 : f32
    %162 = vector.broadcast %cst_99 : f32 to vector<2x32xf32>
    %163 = arith.addf %162, %161 : vector<2x32xf32>
    %164 = arith.mulf %156, %163 : vector<2x32xf32>
    %165 = arith.truncf %164 : vector<2x32xf32> to vector<2x32xbf16>
    %c0_100 = arith.constant 0 : index
    %c0_101 = arith.constant 0 : index
    %166 = vector.load %arg16[%c0_100, %c0_101] : memref<128x32xbf16, #tpu.memory_space<vmem>>, vector<32x32xbf16>
    %cst_102 = arith.constant dense<0.000000e+00> : vector<2x32xf32>
    %167 = tpu.matmul %165, %166, %cst_102 {dimension_numbers = #tpu.dot_dimension_numbers<[1], [0], [0], [1], [0, 0, 1, 1], [], []>} : vector<2x32xbf16>, vector<32x32xbf16>, vector<2x32xf32> -> vector<2x32xf32>
    %168 = arith.addf %149, %167 : vector<2x32xf32>
    %c0_103 = arith.constant 0 : index
    %c32 = arith.constant 32 : index
    %169 = vector.load %arg14[%c0_103, %c32] : memref<32x128xbf16, #tpu.memory_space<vmem>>, vector<32x32xbf16>
    %cst_104 = arith.constant dense<0.000000e+00> : vector<2x32xf32>
    %170 = tpu.matmul %146, %169, %cst_104 {dimension_numbers = #tpu.dot_dimension_numbers<[1], [0], [0], [1], [0, 0, 1, 1], [], []>} : vector<2x32xbf16>, vector<32x32xbf16>, vector<2x32xf32> -> vector<2x32xf32>
    %c0_105 = arith.constant 0 : index
    %c32_106 = arith.constant 32 : index
    %171 = vector.load %arg15[%c0_105, %c32_106] : memref<1x128xf32, #tpu.memory_space<vmem>>, vector<1x32xf32>
    %172 = vector.broadcast %171 : vector<1x32xf32> to vector<2x32xf32>
    %173 = arith.addf %170, %172 : vector<2x32xf32>
    %cst_107 = arith.constant 5.000000e-01 : f32
    %174 = vector.broadcast %cst_107 : f32 to vector<2x32xf32>
    %175 = arith.mulf %174, %173 : vector<2x32xf32>
    %cst_108 = arith.constant 2.000000e+00 : f32
    %176 = math.sqrt %cst_108 : f32
    %cst_109 = arith.constant 1.000000e+00 : f32
    %177 = arith.divf %cst_109, %176 : f32
    %178 = vector.broadcast %177 : f32 to vector<2x32xf32>
    %179 = arith.mulf %173, %178 : vector<2x32xf32>
    %180 = math.erf %179 : vector<2x32xf32>
    %cst_110 = arith.constant 1.000000e+00 : f32
    %181 = vector.broadcast %cst_110 : f32 to vector<2x32xf32>
    %182 = arith.addf %181, %180 : vector<2x32xf32>
    %183 = arith.mulf %175, %182 : vector<2x32xf32>
    %184 = arith.truncf %183 : vector<2x32xf32> to vector<2x32xbf16>
    %c32_111 = arith.constant 32 : index
    %c0_112 = arith.constant 0 : index
    %185 = vector.load %arg16[%c32_111, %c0_112] : memref<128x32xbf16, #tpu.memory_space<vmem>>, vector<32x32xbf16>
    %cst_113 = arith.constant dense<0.000000e+00> : vector<2x32xf32>
    %186 = tpu.matmul %184, %185, %cst_113 {dimension_numbers = #tpu.dot_dimension_numbers<[1], [0], [0], [1], [0, 0, 1, 1], [], []>} : vector<2x32xbf16>, vector<32x32xbf16>, vector<2x32xf32> -> vector<2x32xf32>
    %187 = arith.addf %168, %186 : vector<2x32xf32>
    %c0_114 = arith.constant 0 : index
    %c64 = arith.constant 64 : index
    %188 = vector.load %arg14[%c0_114, %c64] : memref<32x128xbf16, #tpu.memory_space<vmem>>, vector<32x32xbf16>
    %cst_115 = arith.constant dense<0.000000e+00> : vector<2x32xf32>
    %189 = tpu.matmul %146, %188, %cst_115 {dimension_numbers = #tpu.dot_dimension_numbers<[1], [0], [0], [1], [0, 0, 1, 1], [], []>} : vector<2x32xbf16>, vector<32x32xbf16>, vector<2x32xf32> -> vector<2x32xf32>
    %c0_116 = arith.constant 0 : index
    %c64_117 = arith.constant 64 : index
    %190 = vector.load %arg15[%c0_116, %c64_117] : memref<1x128xf32, #tpu.memory_space<vmem>>, vector<1x32xf32>
    %191 = vector.broadcast %190 : vector<1x32xf32> to vector<2x32xf32>
    %192 = arith.addf %189, %191 : vector<2x32xf32>
    %cst_118 = arith.constant 5.000000e-01 : f32
    %193 = vector.broadcast %cst_118 : f32 to vector<2x32xf32>
    %194 = arith.mulf %193, %192 : vector<2x32xf32>
    %cst_119 = arith.constant 2.000000e+00 : f32
    %195 = math.sqrt %cst_119 : f32
    %cst_120 = arith.constant 1.000000e+00 : f32
    %196 = arith.divf %cst_120, %195 : f32
    %197 = vector.broadcast %196 : f32 to vector<2x32xf32>
    %198 = arith.mulf %192, %197 : vector<2x32xf32>
    %199 = math.erf %198 : vector<2x32xf32>
    %cst_121 = arith.constant 1.000000e+00 : f32
    %200 = vector.broadcast %cst_121 : f32 to vector<2x32xf32>
    %201 = arith.addf %200, %199 : vector<2x32xf32>
    %202 = arith.mulf %194, %201 : vector<2x32xf32>
    %203 = arith.truncf %202 : vector<2x32xf32> to vector<2x32xbf16>
    %c64_122 = arith.constant 64 : index
    %c0_123 = arith.constant 0 : index
    %204 = vector.load %arg16[%c64_122, %c0_123] : memref<128x32xbf16, #tpu.memory_space<vmem>>, vector<32x32xbf16>
    %cst_124 = arith.constant dense<0.000000e+00> : vector<2x32xf32>
    %205 = tpu.matmul %203, %204, %cst_124 {dimension_numbers = #tpu.dot_dimension_numbers<[1], [0], [0], [1], [0, 0, 1, 1], [], []>} : vector<2x32xbf16>, vector<32x32xbf16>, vector<2x32xf32> -> vector<2x32xf32>
    %206 = arith.addf %187, %205 : vector<2x32xf32>
    %c0_125 = arith.constant 0 : index
    %c96 = arith.constant 96 : index
    %207 = vector.load %arg14[%c0_125, %c96] : memref<32x128xbf16, #tpu.memory_space<vmem>>, vector<32x32xbf16>
    %cst_126 = arith.constant dense<0.000000e+00> : vector<2x32xf32>
    %208 = tpu.matmul %146, %207, %cst_126 {dimension_numbers = #tpu.dot_dimension_numbers<[1], [0], [0], [1], [0, 0, 1, 1], [], []>} : vector<2x32xbf16>, vector<32x32xbf16>, vector<2x32xf32> -> vector<2x32xf32>
    %c0_127 = arith.constant 0 : index
    %c96_128 = arith.constant 96 : index
    %209 = vector.load %arg15[%c0_127, %c96_128] : memref<1x128xf32, #tpu.memory_space<vmem>>, vector<1x32xf32>
    %210 = vector.broadcast %209 : vector<1x32xf32> to vector<2x32xf32>
    %211 = arith.addf %208, %210 : vector<2x32xf32>
    %cst_129 = arith.constant 5.000000e-01 : f32
    %212 = vector.broadcast %cst_129 : f32 to vector<2x32xf32>
    %213 = arith.mulf %212, %211 : vector<2x32xf32>
    %cst_130 = arith.constant 2.000000e+00 : f32
    %214 = math.sqrt %cst_130 : f32
    %cst_131 = arith.constant 1.000000e+00 : f32
    %215 = arith.divf %cst_131, %214 : f32
    %216 = vector.broadcast %215 : f32 to vector<2x32xf32>
    %217 = arith.mulf %211, %216 : vector<2x32xf32>
    %218 = math.erf %217 : vector<2x32xf32>
    %cst_132 = arith.constant 1.000000e+00 : f32
    %219 = vector.broadcast %cst_132 : f32 to vector<2x32xf32>
    %220 = arith.addf %219, %218 : vector<2x32xf32>
    %221 = arith.mulf %213, %220 : vector<2x32xf32>
    %222 = arith.truncf %221 : vector<2x32xf32> to vector<2x32xbf16>
    %c96_133 = arith.constant 96 : index
    %c0_134 = arith.constant 0 : index
    %223 = vector.load %arg16[%c96_133, %c0_134] : memref<128x32xbf16, #tpu.memory_space<vmem>>, vector<32x32xbf16>
    %cst_135 = arith.constant dense<0.000000e+00> : vector<2x32xf32>
    %224 = tpu.matmul %222, %223, %cst_135 {dimension_numbers = #tpu.dot_dimension_numbers<[1], [0], [0], [1], [0, 0, 1, 1], [], []>} : vector<2x32xbf16>, vector<32x32xbf16>, vector<2x32xf32> -> vector<2x32xf32>
    %225 = arith.addf %206, %224 : vector<2x32xf32>
    %c0_136 = arith.constant 0 : index
    %c0_137 = arith.constant 0 : index
    %226 = vector.load %arg18[%c0_136, %c0_137] : memref<1x32xf32, #tpu.memory_space<vmem>>, vector<1x32xf32>
    %c0_138 = arith.constant 0 : index
    %c0_139 = arith.constant 0 : index
    %227 = vector.load %arg19[%c0_138, %c0_139] : memref<1x32xf32, #tpu.memory_space<vmem>>, vector<1x32xf32>
    %cst_140 = arith.constant dense<0.000000e+00> : vector<2xf32>
    %228 = vector.multi_reduction <add>, %225, %cst_140 [1] : vector<2x32xf32> to vector<2xf32>
    %229 = vector.shape_cast %228 : vector<2xf32> to vector<2x1xf32>
    %cst_141 = arith.constant 3.200000e+01 : f32
    %230 = vector.broadcast %cst_141 : f32 to vector<2x1xf32>
    %231 = arith.divf %229, %230 : vector<2x1xf32>
    %232 = vector.broadcast %231 : vector<2x1xf32> to vector<2x32xf32>
    %233 = arith.subf %225, %232 : vector<2x32xf32>
    %234 = arith.mulf %233, %233 : vector<2x32xf32>
    %cst_142 = arith.constant dense<0.000000e+00> : vector<2xf32>
    %235 = vector.multi_reduction <add>, %234, %cst_142 [1] : vector<2x32xf32> to vector<2xf32>
    %236 = vector.shape_cast %235 : vector<2xf32> to vector<2x1xf32>
    %cst_143 = arith.constant 3.200000e+01 : f32
    %237 = vector.broadcast %cst_143 : f32 to vector<2x1xf32>
    %238 = arith.divf %236, %237 : vector<2x1xf32>
    %239 = vector.broadcast %231 : vector<2x1xf32> to vector<2x32xf32>
    %240 = arith.subf %225, %239 : vector<2x32xf32>
    %cst_144 = arith.constant 9.99999997E-7 : f32
    %241 = vector.broadcast %cst_144 : f32 to vector<2x1xf32>
    %242 = arith.addf %238, %241 : vector<2x1xf32>
    %243 = math.rsqrt %242 : vector<2x1xf32>
    %244 = vector.broadcast %243 : vector<2x1xf32> to vector<2x32xf32>
    %245 = arith.mulf %240, %244 : vector<2x32xf32>
    %246 = vector.broadcast %226 : vector<1x32xf32> to vector<2x32xf32>
    %247 = arith.mulf %245, %246 : vector<2x32xf32>
    %248 = vector.broadcast %227 : vector<1x32xf32> to vector<2x32xf32>
    %249 = arith.addf %247, %248 : vector<2x32xf32>
    %250 = arith.truncf %249 : vector<2x32xf32> to vector<2x32xbf16>
    %c0_145 = arith.constant 0 : index
    %c0_146 = arith.constant 0 : index
    %251 = vector.load %arg20[%c0_145, %c0_146] : memref<32x10xbf16, #tpu.memory_space<vmem>>, vector<32x10xbf16>
    %cst_147 = arith.constant dense<0.000000e+00> : vector<2x10xf32>
    %252 = tpu.matmul %250, %251, %cst_147 {dimension_numbers = #tpu.dot_dimension_numbers<[1], [0], [0], [1], [0, 0, 1, 1], [], []>} : vector<2x32xbf16>, vector<32x10xbf16>, vector<2x10xf32> -> vector<2x10xf32>
    %c0_148 = arith.constant 0 : index
    %c0_149 = arith.constant 0 : index
    %253 = vector.load %arg21[%c0_148, %c0_149] : memref<1x10xf32, #tpu.memory_space<vmem>>, vector<1x10xf32>
    %254 = vector.broadcast %253 : vector<1x10xf32> to vector<2x10xf32>
    %255 = arith.addf %252, %254 : vector<2x10xf32>
    %256 = vector.shape_cast %255 : vector<2x10xf32> to vector<2x1x10xf32>
    %c0_150 = arith.constant 0 : index
    %c0_151 = arith.constant 0 : index
    %c0_152 = arith.constant 0 : index
    %257 = vector.load %arg22[%c0_150, %c0_151, %c0_152] : memref<2x1x10xf32, #tpu.memory_space<vmem>>, vector<2x1x10xf32>
    tpu.vector_store %arg22[%c0_150, %c0_151, %c0_152], %256 {strides = array<i32>} : memref<2x1x10xf32, #tpu.memory_space<vmem>>, vector<2x1x10xf32>,
    return
  }
  func.func @transform_0(%arg0: i32) -> (i32, i32, i32) {
    %c0_i32 = arith.constant 0 : i32
    %c0_i32_0 = arith.constant 0 : i32
    %c0_i32_1 = arith.constant 0 : i32
    return %arg0, %c0_i32, %c0_i32_0 : i32, i32, i32
  }
  func.func @transform_1(%arg0: i32) -> (i32, i32) {
    %c0_i32 = arith.constant 0 : i32
    %c0_i32_0 = arith.constant 0 : i32
    %c0_i32_1 = arith.constant 0 : i32
    return %c0_i32, %c0_i32_0 : i32, i32
  }
  func.func @transform_2(%arg0: i32) -> (i32, i32) {
    %c0_i32 = arith.constant 0 : i32
    %c0_i32_0 = arith.constant 0 : i32
    %c0_i32_1 = arith.constant 0 : i32
    return %c0_i32, %c0_i32_0 : i32, i32
  }
  func.func @transform_3(%arg0: i32) -> (i32, i32) {
    %c0_i32 = arith.constant 0 : i32
    %c0_i32_0 = arith.constant 0 : i32
    %c0_i32_1 = arith.constant 0 : i32
    return %c0_i32, %c0_i32_0 : i32, i32
  }
  func.func @transform_4(%arg0: i32) -> (i32, i32) {
    %c0_i32 = arith.constant 0 : i32
    %c0_i32_0 = arith.constant 0 : i32
    %c0_i32_1 = arith.constant 0 : i32
    return %c0_i32, %c0_i32_0 : i32, i32
  }
  func.func @transform_5(%arg0: i32) -> (i32, i32) {
    %c0_i32 = arith.constant 0 : i32
    %c0_i32_0 = arith.constant 0 : i32
    %c0_i32_1 = arith.constant 0 : i32
    return %c0_i32, %c0_i32_0 : i32, i32
  }
  func.func @transform_6(%arg0: i32) -> (i32, i32) {
    %c0_i32 = arith.constant 0 : i32
    %c0_i32_0 = arith.constant 0 : i32
    %c0_i32_1 = arith.constant 0 : i32
    return %c0_i32, %c0_i32_0 : i32, i32
  }
  func.func @transform_7(%arg0: i32) -> (i32, i32) {
    %c0_i32 = arith.constant 0 : i32
    %c0_i32_0 = arith.constant 0 : i32
    %c0_i32_1 = arith.constant 0 : i32
    return %c0_i32, %c0_i32_0 : i32, i32
  }
  func.func @transform_8(%arg0: i32) -> (i32, i32) {
    %c0_i32 = arith.constant 0 : i32
    %c0_i32_0 = arith.constant 0 : i32
    %c0_i32_1 = arith.constant 0 : i32
    return %c0_i32, %c0_i32_0 : i32, i32
  }
  func.func @transform_9(%arg0: i32) -> (i32, i32) {
    %c0_i32 = arith.constant 0 : i32
    %c0_i32_0 = arith.constant 0 : i32
    %c0_i32_1 = arith.constant 0 : i32
    return %c0_i32, %c0_i32_0 : i32, i32
  }
  func.func @transform_10(%arg0: i32) -> (i32, i32) {
    %c0_i32 = arith.constant 0 : i32
    %c0_i32_0 = arith.constant 0 : i32
    %c0_i32_1 = arith.constant 0 : i32
    return %c0_i32, %c0_i32_0 : i32, i32
  }
  func.func @transform_11(%arg0: i32) -> (i32, i32) {
    %c0_i32 = arith.constant 0 : i32
    %c0_i32_0 = arith.constant 0 : i32
    %c0_i32_1 = arith.constant 0 : i32
    return %c0_i32, %c0_i32_0 : i32, i32
  }
  func.func @transform_12(%arg0: i32) -> (i32, i32) {
    %c0_i32 = arith.constant 0 : i32
    %c0_i32_0 = arith.constant 0 : i32
    %c0_i32_1 = arith.constant 0 : i32
    return %c0_i32, %c0_i32_0 : i32, i32
  }
  func.func @transform_13(%arg0: i32) -> (i32, i32) {
    %c0_i32 = arith.constant 0 : i32
    %c0_i32_0 = arith.constant 0 : i32
    %c0_i32_1 = arith.constant 0 : i32
    return %c0_i32, %c0_i32_0 : i32, i32
  }
  func.func @transform_14(%arg0: i32) -> (i32, i32) {
    %c0_i32 = arith.constant 0 : i32
    %c0_i32_0 = arith.constant 0 : i32
    %c0_i32_1 = arith.constant 0 : i32
    return %c0_i32, %c0_i32_0 : i32, i32
  }
  func.func @transform_15(%arg0: i32) -> (i32, i32) {
    %c0_i32 = arith.constant 0 : i32
    %c0_i32_0 = arith.constant 0 : i32
    %c0_i32_1 = arith.constant 0 : i32
    return %c0_i32, %c0_i32_0 : i32, i32
  }
  func.func @transform_16(%arg0: i32) -> (i32, i32) {
    %c0_i32 = arith.constant 0 : i32
    %c0_i32_0 = arith.constant 0 : i32
    %c0_i32_1 = arith.constant 0 : i32
    return %c0_i32, %c0_i32_0 : i32, i32
  }
  func.func @transform_17(%arg0: i32) -> (i32, i32) {
    %c0_i32 = arith.constant 0 : i32
    %c0_i32_0 = arith.constant 0 : i32
    %c0_i32_1 = arith.constant 0 : i32
    return %c0_i32, %c0_i32_0 : i32, i32
  }
  func.func @transform_18(%arg0: i32) -> (i32, i32) {
    %c0_i32 = arith.constant 0 : i32
    %c0_i32_0 = arith.constant 0 : i32
    %c0_i32_1 = arith.constant 0 : i32
    return %c0_i32, %c0_i32_0 : i32, i32
  }
  func.func @transform_19(%arg0: i32) -> (i32, i32) {
    %c0_i32 = arith.constant 0 : i32
    %c0_i32_0 = arith.constant 0 : i32
    %c0_i32_1 = arith.constant 0 : i32
    return %c0_i32, %c0_i32_0 : i32, i32
  }
  func.func @transform_20(%arg0: i32) -> (i32, i32) {
    %c0_i32 = arith.constant 0 : i32
    %c0_i32_0 = arith.constant 0 : i32
    %c0_i32_1 = arith.constant 0 : i32
    return %c0_i32, %c0_i32_0 : i32, i32
  }
  func.func @transform_21(%arg0: i32) -> (i32, i32, i32) {
    %c0_i32 = arith.constant 0 : i32
    %c0_i32_0 = arith.constant 0 : i32
    %c0_i32_1 = arith.constant 0 : i32
    return %arg0, %c0_i32, %c0_i32_0 : i32, i32, i32
  }
}

module attributes {stable_mosaic.version = 11 : i64} {
  func.func @kernel(%arg0: i32, %arg1: memref<2x8x32xf32, #tpu.memory_space<vmem>>, %arg2: memref<1x8x32xf32, #tpu.memory_space<vmem>>, %arg3: memref<1x32xf32, #tpu.memory_space<vmem>>, %arg4: memref<1x32xf32, #tpu.memory_space<vmem>>, %arg5: memref<32x32xbf16, #tpu.memory_space<vmem>>, %arg6: memref<1x32xf32, #tpu.memory_space<vmem>>, %arg7: memref<32x32xbf16, #tpu.memory_space<vmem>>, %arg8: memref<1x32xf32, #tpu.memory_space<vmem>>, %arg9: memref<32x32xbf16, #tpu.memory_space<vmem>>, %arg10: memref<1x32xf32, #tpu.memory_space<vmem>>, %arg11: memref<32x32xbf16, #tpu.memory_space<vmem>>, %arg12: memref<1x32xf32, #tpu.memory_space<vmem>>, %arg13: memref<1x32xf32, #tpu.memory_space<vmem>>, %arg14: memref<1x32xf32, #tpu.memory_space<vmem>>, %arg15: memref<32x128xbf16, #tpu.memory_space<vmem>>, %arg16: memref<1x128xf32, #tpu.memory_space<vmem>>, %arg17: memref<128x32xbf16, #tpu.memory_space<vmem>>, %arg18: memref<1x32xf32, #tpu.memory_space<vmem>>, %arg19: memref<2x8x32xf32, #tpu.memory_space<vmem>>, %arg20: memref<4x2x8x8xbf16, #tpu.memory_space<vmem>>, %arg21: memref<4x2x8x8xbf16, #tpu.memory_space<vmem>>, %arg22: memref<4x2x8x8xbf16, #tpu.memory_space<vmem>>, %arg23: memref<16x32xf32, #tpu.memory_space<vmem>>) attributes {dimension_semantics = [#tpu.dimension_semantics<parallel>], iteration_bounds = array<i64: 2>, scalar_prefetch = 0 : i64, scratch_operands = 4 : i64, tpu.core_type = #tpu.core_type<tc>, window_params = [{transform_indices = @transform_0, window_bounds = array<i64: 2, 8, 32>}, {pipeline_mode = #tpu.pipeline_mode<synchronous>, transform_indices = @transform_1, window_bounds = array<i64: 1, 8, 32>}, {pipeline_mode = #tpu.pipeline_mode<synchronous>, transform_indices = @transform_2, window_bounds = array<i64: 1, 32>}, {pipeline_mode = #tpu.pipeline_mode<synchronous>, transform_indices = @transform_3, window_bounds = array<i64: 1, 32>}, {pipeline_mode = #tpu.pipeline_mode<synchronous>, transform_indices = @transform_4, window_bounds = array<i64: 32, 32>}, {pipeline_mode = #tpu.pipeline_mode<synchronous>, transform_indices = @transform_5, window_bounds = array<i64: 1, 32>}, {pipeline_mode = #tpu.pipeline_mode<synchronous>, transform_indices = @transform_6, window_bounds = array<i64: 32, 32>}, {pipeline_mode = #tpu.pipeline_mode<synchronous>, transform_indices = @transform_7, window_bounds = array<i64: 1, 32>}, {pipeline_mode = #tpu.pipeline_mode<synchronous>, transform_indices = @transform_8, window_bounds = array<i64: 32, 32>}, {pipeline_mode = #tpu.pipeline_mode<synchronous>, transform_indices = @transform_9, window_bounds = array<i64: 1, 32>}, {pipeline_mode = #tpu.pipeline_mode<synchronous>, transform_indices = @transform_10, window_bounds = array<i64: 32, 32>}, {pipeline_mode = #tpu.pipeline_mode<synchronous>, transform_indices = @transform_11, window_bounds = array<i64: 1, 32>}, {pipeline_mode = #tpu.pipeline_mode<synchronous>, transform_indices = @transform_12, window_bounds = array<i64: 1, 32>}, {pipeline_mode = #tpu.pipeline_mode<synchronous>, transform_indices = @transform_13, window_bounds = array<i64: 1, 32>}, {pipeline_mode = #tpu.pipeline_mode<synchronous>, transform_indices = @transform_14, window_bounds = array<i64: 32, 128>}, {pipeline_mode = #tpu.pipeline_mode<synchronous>, transform_indices = @transform_15, window_bounds = array<i64: 1, 128>}, {pipeline_mode = #tpu.pipeline_mode<synchronous>, transform_indices = @transform_16, window_bounds = array<i64: 128, 32>}, {pipeline_mode = #tpu.pipeline_mode<synchronous>, transform_indices = @transform_17, window_bounds = array<i64: 1, 32>}, {transform_indices = @transform_18, window_bounds = array<i64: 2, 8, 32>}]} {
    %c0 = arith.constant 0 : index
    %c0_0 = arith.constant 0 : index
    %c0_1 = arith.constant 0 : index
    %0 = vector.load %arg1[%c0, %c0_0, %c0_1] : memref<2x8x32xf32, #tpu.memory_space<vmem>>, vector<2x8x32xf32>
    %c0_2 = arith.constant 0 : index
    %c0_3 = arith.constant 0 : index
    %c0_4 = arith.constant 0 : index
    %1 = vector.load %arg2[%c0_2, %c0_3, %c0_4] : memref<1x8x32xf32, #tpu.memory_space<vmem>>, vector<1x8x32xf32>
    %2 = vector.broadcast %1 : vector<1x8x32xf32> to vector<2x8x32xf32>
    %3 = arith.addf %0, %2 : vector<2x8x32xf32>
    %4 = vector.shape_cast %3 : vector<2x8x32xf32> to vector<16x32xf32>
    %c0_5 = arith.constant 0 : index
    %c0_6 = arith.constant 0 : index
    %5 = vector.load %arg3[%c0_5, %c0_6] : memref<1x32xf32, #tpu.memory_space<vmem>>, vector<1x32xf32>
    %c0_7 = arith.constant 0 : index
    %c0_8 = arith.constant 0 : index
    %6 = vector.load %arg4[%c0_7, %c0_8] : memref<1x32xf32, #tpu.memory_space<vmem>>, vector<1x32xf32>
    %cst = arith.constant dense<0.000000e+00> : vector<16xf32>
    %7 = vector.multi_reduction <add>, %4, %cst [1] : vector<16x32xf32> to vector<16xf32>
    %8 = vector.shape_cast %7 : vector<16xf32> to vector<16x1xf32>
    %cst_9 = arith.constant 3.200000e+01 : f32
    %9 = vector.broadcast %cst_9 : f32 to vector<16x1xf32>
    %10 = arith.divf %8, %9 : vector<16x1xf32>
    %11 = vector.broadcast %10 : vector<16x1xf32> to vector<16x32xf32>
    %12 = arith.subf %4, %11 : vector<16x32xf32>
    %13 = arith.mulf %12, %12 : vector<16x32xf32>
    %cst_10 = arith.constant dense<0.000000e+00> : vector<16xf32>
    %14 = vector.multi_reduction <add>, %13, %cst_10 [1] : vector<16x32xf32> to vector<16xf32>
    %15 = vector.shape_cast %14 : vector<16xf32> to vector<16x1xf32>
    %cst_11 = arith.constant 3.200000e+01 : f32
    %16 = vector.broadcast %cst_11 : f32 to vector<16x1xf32>
    %17 = arith.divf %15, %16 : vector<16x1xf32>
    %18 = vector.broadcast %10 : vector<16x1xf32> to vector<16x32xf32>
    %19 = arith.subf %4, %18 : vector<16x32xf32>
    %cst_12 = arith.constant 9.99999997E-7 : f32
    %20 = vector.broadcast %cst_12 : f32 to vector<16x1xf32>
    %21 = arith.addf %17, %20 : vector<16x1xf32>
    %22 = math.rsqrt %21 : vector<16x1xf32>
    %23 = vector.broadcast %22 : vector<16x1xf32> to vector<16x32xf32>
    %24 = arith.mulf %19, %23 : vector<16x32xf32>
    %25 = vector.broadcast %5 : vector<1x32xf32> to vector<16x32xf32>
    %26 = arith.mulf %24, %25 : vector<16x32xf32>
    %27 = vector.broadcast %6 : vector<1x32xf32> to vector<16x32xf32>
    %28 = arith.addf %26, %27 : vector<16x32xf32>
    %29 = arith.truncf %28 : vector<16x32xf32> to vector<16x32xbf16>
    %c0_13 = arith.constant 0 : index
    %c0_14 = arith.constant 0 : index
    %30 = vector.load %arg5[%c0_13, %c0_14] : memref<32x32xbf16, #tpu.memory_space<vmem>>, vector<32x32xbf16>
    %cst_15 = arith.constant dense<0.000000e+00> : vector<16x32xf32>
    %31 = tpu.matmul %29, %30, %cst_15 {dimension_numbers = #tpu.dot_dimension_numbers<[1], [0], [0], [1], [0, 0, 1, 1], [], []>} : vector<16x32xbf16>, vector<32x32xbf16>, vector<16x32xf32> -> vector<16x32xf32>
    %c0_16 = arith.constant 0 : index
    %c0_17 = arith.constant 0 : index
    %32 = vector.load %arg6[%c0_16, %c0_17] : memref<1x32xf32, #tpu.memory_space<vmem>>, vector<1x32xf32>
    %33 = vector.broadcast %32 : vector<1x32xf32> to vector<16x32xf32>
    %34 = arith.addf %31, %33 : vector<16x32xf32>
    %cst_18 = arith.constant 0.353553385 : f32
    %35 = vector.broadcast %cst_18 : f32 to vector<16x32xf32>
    %36 = arith.mulf %34, %35 : vector<16x32xf32>
    %37 = arith.truncf %36 : vector<16x32xf32> to vector<16x32xbf16>
    %c0_19 = arith.constant 0 : index
    %c0_20 = arith.constant 0 : index
    %38 = vector.load %arg7[%c0_19, %c0_20] : memref<32x32xbf16, #tpu.memory_space<vmem>>, vector<32x32xbf16>
    %cst_21 = arith.constant dense<0.000000e+00> : vector<16x32xf32>
    %39 = tpu.matmul %29, %38, %cst_21 {dimension_numbers = #tpu.dot_dimension_numbers<[1], [0], [0], [1], [0, 0, 1, 1], [], []>} : vector<16x32xbf16>, vector<32x32xbf16>, vector<16x32xf32> -> vector<16x32xf32>
    %c0_22 = arith.constant 0 : index
    %c0_23 = arith.constant 0 : index
    %40 = vector.load %arg8[%c0_22, %c0_23] : memref<1x32xf32, #tpu.memory_space<vmem>>, vector<1x32xf32>
    %41 = vector.broadcast %40 : vector<1x32xf32> to vector<16x32xf32>
    %42 = arith.addf %39, %41 : vector<16x32xf32>
    %43 = arith.truncf %42 : vector<16x32xf32> to vector<16x32xbf16>
    %c0_24 = arith.constant 0 : index
    %c0_25 = arith.constant 0 : index
    %44 = vector.load %arg9[%c0_24, %c0_25] : memref<32x32xbf16, #tpu.memory_space<vmem>>, vector<32x32xbf16>
    %cst_26 = arith.constant dense<0.000000e+00> : vector<16x32xf32>
    %45 = tpu.matmul %29, %44, %cst_26 {dimension_numbers = #tpu.dot_dimension_numbers<[1], [0], [0], [1], [0, 0, 1, 1], [], []>} : vector<16x32xbf16>, vector<32x32xbf16>, vector<16x32xf32> -> vector<16x32xf32>
    %c0_27 = arith.constant 0 : index
    %c0_28 = arith.constant 0 : index
    %46 = vector.load %arg10[%c0_27, %c0_28] : memref<1x32xf32, #tpu.memory_space<vmem>>, vector<1x32xf32>
    %47 = vector.broadcast %46 : vector<1x32xf32> to vector<16x32xf32>
    %48 = arith.addf %45, %47 : vector<16x32xf32>
    %49 = arith.truncf %48 : vector<16x32xf32> to vector<16x32xbf16>
    %50 = vector.extract_strided_slice %37 {offsets = [0, 0], sizes = [16, 8], strides = [1, 1]} : vector<16x32xbf16> to vector<16x8xbf16>
    %51 = vector.shape_cast %50 : vector<16x8xbf16> to vector<2x8x8xbf16>
    %c0_29 = arith.constant 0 : index
    %c0_30 = arith.constant 0 : index
    %c0_31 = arith.constant 0 : index
    %c0_32 = arith.constant 0 : index
    %52 = vector.load %arg20[%c0_29, %c0_30, %c0_31, %c0_32] : memref<4x2x8x8xbf16, #tpu.memory_space<vmem>>, vector<1x2x8x8xbf16>
    %53 = vector.shape_cast %52 : vector<1x2x8x8xbf16> to vector<2x8x8xbf16>
    %54 = vector.shape_cast %51 : vector<2x8x8xbf16> to vector<1x2x8x8xbf16>
    tpu.vector_store %arg20[%c0_29, %c0_30, %c0_31, %c0_32], %54 {strides = array<i32>} : memref<4x2x8x8xbf16, #tpu.memory_space<vmem>>, vector<1x2x8x8xbf16>,
    %55 = vector.extract_strided_slice %43 {offsets = [0, 0], sizes = [16, 8], strides = [1, 1]} : vector<16x32xbf16> to vector<16x8xbf16>
    %56 = vector.shape_cast %55 : vector<16x8xbf16> to vector<2x8x8xbf16>
    %c0_33 = arith.constant 0 : index
    %c0_34 = arith.constant 0 : index
    %c0_35 = arith.constant 0 : index
    %c0_36 = arith.constant 0 : index
    %57 = vector.load %arg21[%c0_33, %c0_34, %c0_35, %c0_36] : memref<4x2x8x8xbf16, #tpu.memory_space<vmem>>, vector<1x2x8x8xbf16>
    %58 = vector.shape_cast %57 : vector<1x2x8x8xbf16> to vector<2x8x8xbf16>
    %59 = vector.shape_cast %56 : vector<2x8x8xbf16> to vector<1x2x8x8xbf16>
    tpu.vector_store %arg21[%c0_33, %c0_34, %c0_35, %c0_36], %59 {strides = array<i32>} : memref<4x2x8x8xbf16, #tpu.memory_space<vmem>>, vector<1x2x8x8xbf16>,
    %60 = vector.extract_strided_slice %49 {offsets = [0, 0], sizes = [16, 8], strides = [1, 1]} : vector<16x32xbf16> to vector<16x8xbf16>
    %61 = vector.shape_cast %60 : vector<16x8xbf16> to vector<2x8x8xbf16>
    %c0_37 = arith.constant 0 : index
    %c0_38 = arith.constant 0 : index
    %c0_39 = arith.constant 0 : index
    %c0_40 = arith.constant 0 : index
    %62 = vector.load %arg22[%c0_37, %c0_38, %c0_39, %c0_40] : memref<4x2x8x8xbf16, #tpu.memory_space<vmem>>, vector<1x2x8x8xbf16>
    %63 = vector.shape_cast %62 : vector<1x2x8x8xbf16> to vector<2x8x8xbf16>
    %64 = vector.shape_cast %61 : vector<2x8x8xbf16> to vector<1x2x8x8xbf16>
    tpu.vector_store %arg22[%c0_37, %c0_38, %c0_39, %c0_40], %64 {strides = array<i32>} : memref<4x2x8x8xbf16, #tpu.memory_space<vmem>>, vector<1x2x8x8xbf16>,
    %65 = vector.extract_strided_slice %37 {offsets = [0, 8], sizes = [16, 8], strides = [1, 1]} : vector<16x32xbf16> to vector<16x8xbf16>
    %66 = vector.shape_cast %65 : vector<16x8xbf16> to vector<2x8x8xbf16>
    %c1 = arith.constant 1 : index
    %c0_41 = arith.constant 0 : index
    %c0_42 = arith.constant 0 : index
    %c0_43 = arith.constant 0 : index
    %67 = vector.load %arg20[%c1, %c0_41, %c0_42, %c0_43] : memref<4x2x8x8xbf16, #tpu.memory_space<vmem>>, vector<1x2x8x8xbf16>
    %68 = vector.shape_cast %67 : vector<1x2x8x8xbf16> to vector<2x8x8xbf16>
    %69 = vector.shape_cast %66 : vector<2x8x8xbf16> to vector<1x2x8x8xbf16>
    tpu.vector_store %arg20[%c1, %c0_41, %c0_42, %c0_43], %69 {strides = array<i32>} : memref<4x2x8x8xbf16, #tpu.memory_space<vmem>>, vector<1x2x8x8xbf16>,
    %70 = vector.extract_strided_slice %43 {offsets = [0, 8], sizes = [16, 8], strides = [1, 1]} : vector<16x32xbf16> to vector<16x8xbf16>
    %71 = vector.shape_cast %70 : vector<16x8xbf16> to vector<2x8x8xbf16>
    %c1_44 = arith.constant 1 : index
    %c0_45 = arith.constant 0 : index
    %c0_46 = arith.constant 0 : index
    %c0_47 = arith.constant 0 : index
    %72 = vector.load %arg21[%c1_44, %c0_45, %c0_46, %c0_47] : memref<4x2x8x8xbf16, #tpu.memory_space<vmem>>, vector<1x2x8x8xbf16>
    %73 = vector.shape_cast %72 : vector<1x2x8x8xbf16> to vector<2x8x8xbf16>
    %74 = vector.shape_cast %71 : vector<2x8x8xbf16> to vector<1x2x8x8xbf16>
    tpu.vector_store %arg21[%c1_44, %c0_45, %c0_46, %c0_47], %74 {strides = array<i32>} : memref<4x2x8x8xbf16, #tpu.memory_space<vmem>>, vector<1x2x8x8xbf16>,
    %75 = vector.extract_strided_slice %49 {offsets = [0, 8], sizes = [16, 8], strides = [1, 1]} : vector<16x32xbf16> to vector<16x8xbf16>
    %76 = vector.shape_cast %75 : vector<16x8xbf16> to vector<2x8x8xbf16>
    %c1_48 = arith.constant 1 : index
    %c0_49 = arith.constant 0 : index
    %c0_50 = arith.constant 0 : index
    %c0_51 = arith.constant 0 : index
    %77 = vector.load %arg22[%c1_48, %c0_49, %c0_50, %c0_51] : memref<4x2x8x8xbf16, #tpu.memory_space<vmem>>, vector<1x2x8x8xbf16>
    %78 = vector.shape_cast %77 : vector<1x2x8x8xbf16> to vector<2x8x8xbf16>
    %79 = vector.shape_cast %76 : vector<2x8x8xbf16> to vector<1x2x8x8xbf16>
    tpu.vector_store %arg22[%c1_48, %c0_49, %c0_50, %c0_51], %79 {strides = array<i32>} : memref<4x2x8x8xbf16, #tpu.memory_space<vmem>>, vector<1x2x8x8xbf16>,
    %80 = vector.extract_strided_slice %37 {offsets = [0, 16], sizes = [16, 8], strides = [1, 1]} : vector<16x32xbf16> to vector<16x8xbf16>
    %81 = vector.shape_cast %80 : vector<16x8xbf16> to vector<2x8x8xbf16>
    %c2 = arith.constant 2 : index
    %c0_52 = arith.constant 0 : index
    %c0_53 = arith.constant 0 : index
    %c0_54 = arith.constant 0 : index
    %82 = vector.load %arg20[%c2, %c0_52, %c0_53, %c0_54] : memref<4x2x8x8xbf16, #tpu.memory_space<vmem>>, vector<1x2x8x8xbf16>
    %83 = vector.shape_cast %82 : vector<1x2x8x8xbf16> to vector<2x8x8xbf16>
    %84 = vector.shape_cast %81 : vector<2x8x8xbf16> to vector<1x2x8x8xbf16>
    tpu.vector_store %arg20[%c2, %c0_52, %c0_53, %c0_54], %84 {strides = array<i32>} : memref<4x2x8x8xbf16, #tpu.memory_space<vmem>>, vector<1x2x8x8xbf16>,
    %85 = vector.extract_strided_slice %43 {offsets = [0, 16], sizes = [16, 8], strides = [1, 1]} : vector<16x32xbf16> to vector<16x8xbf16>
    %86 = vector.shape_cast %85 : vector<16x8xbf16> to vector<2x8x8xbf16>
    %c2_55 = arith.constant 2 : index
    %c0_56 = arith.constant 0 : index
    %c0_57 = arith.constant 0 : index
    %c0_58 = arith.constant 0 : index
    %87 = vector.load %arg21[%c2_55, %c0_56, %c0_57, %c0_58] : memref<4x2x8x8xbf16, #tpu.memory_space<vmem>>, vector<1x2x8x8xbf16>
    %88 = vector.shape_cast %87 : vector<1x2x8x8xbf16> to vector<2x8x8xbf16>
    %89 = vector.shape_cast %86 : vector<2x8x8xbf16> to vector<1x2x8x8xbf16>
    tpu.vector_store %arg21[%c2_55, %c0_56, %c0_57, %c0_58], %89 {strides = array<i32>} : memref<4x2x8x8xbf16, #tpu.memory_space<vmem>>, vector<1x2x8x8xbf16>,
    %90 = vector.extract_strided_slice %49 {offsets = [0, 16], sizes = [16, 8], strides = [1, 1]} : vector<16x32xbf16> to vector<16x8xbf16>
    %91 = vector.shape_cast %90 : vector<16x8xbf16> to vector<2x8x8xbf16>
    %c2_59 = arith.constant 2 : index
    %c0_60 = arith.constant 0 : index
    %c0_61 = arith.constant 0 : index
    %c0_62 = arith.constant 0 : index
    %92 = vector.load %arg22[%c2_59, %c0_60, %c0_61, %c0_62] : memref<4x2x8x8xbf16, #tpu.memory_space<vmem>>, vector<1x2x8x8xbf16>
    %93 = vector.shape_cast %92 : vector<1x2x8x8xbf16> to vector<2x8x8xbf16>
    %94 = vector.shape_cast %91 : vector<2x8x8xbf16> to vector<1x2x8x8xbf16>
    tpu.vector_store %arg22[%c2_59, %c0_60, %c0_61, %c0_62], %94 {strides = array<i32>} : memref<4x2x8x8xbf16, #tpu.memory_space<vmem>>, vector<1x2x8x8xbf16>,
    %95 = vector.extract_strided_slice %37 {offsets = [0, 24], sizes = [16, 8], strides = [1, 1]} : vector<16x32xbf16> to vector<16x8xbf16>
    %96 = vector.shape_cast %95 : vector<16x8xbf16> to vector<2x8x8xbf16>
    %c3 = arith.constant 3 : index
    %c0_63 = arith.constant 0 : index
    %c0_64 = arith.constant 0 : index
    %c0_65 = arith.constant 0 : index
    %97 = vector.load %arg20[%c3, %c0_63, %c0_64, %c0_65] : memref<4x2x8x8xbf16, #tpu.memory_space<vmem>>, vector<1x2x8x8xbf16>
    %98 = vector.shape_cast %97 : vector<1x2x8x8xbf16> to vector<2x8x8xbf16>
    %99 = vector.shape_cast %96 : vector<2x8x8xbf16> to vector<1x2x8x8xbf16>
    tpu.vector_store %arg20[%c3, %c0_63, %c0_64, %c0_65], %99 {strides = array<i32>} : memref<4x2x8x8xbf16, #tpu.memory_space<vmem>>, vector<1x2x8x8xbf16>,
    %100 = vector.extract_strided_slice %43 {offsets = [0, 24], sizes = [16, 8], strides = [1, 1]} : vector<16x32xbf16> to vector<16x8xbf16>
    %101 = vector.shape_cast %100 : vector<16x8xbf16> to vector<2x8x8xbf16>
    %c3_66 = arith.constant 3 : index
    %c0_67 = arith.constant 0 : index
    %c0_68 = arith.constant 0 : index
    %c0_69 = arith.constant 0 : index
    %102 = vector.load %arg21[%c3_66, %c0_67, %c0_68, %c0_69] : memref<4x2x8x8xbf16, #tpu.memory_space<vmem>>, vector<1x2x8x8xbf16>
    %103 = vector.shape_cast %102 : vector<1x2x8x8xbf16> to vector<2x8x8xbf16>
    %104 = vector.shape_cast %101 : vector<2x8x8xbf16> to vector<1x2x8x8xbf16>
    tpu.vector_store %arg21[%c3_66, %c0_67, %c0_68, %c0_69], %104 {strides = array<i32>} : memref<4x2x8x8xbf16, #tpu.memory_space<vmem>>, vector<1x2x8x8xbf16>,
    %105 = vector.extract_strided_slice %49 {offsets = [0, 24], sizes = [16, 8], strides = [1, 1]} : vector<16x32xbf16> to vector<16x8xbf16>
    %106 = vector.shape_cast %105 : vector<16x8xbf16> to vector<2x8x8xbf16>
    %c3_70 = arith.constant 3 : index
    %c0_71 = arith.constant 0 : index
    %c0_72 = arith.constant 0 : index
    %c0_73 = arith.constant 0 : index
    %107 = vector.load %arg22[%c3_70, %c0_71, %c0_72, %c0_73] : memref<4x2x8x8xbf16, #tpu.memory_space<vmem>>, vector<1x2x8x8xbf16>
    %108 = vector.shape_cast %107 : vector<1x2x8x8xbf16> to vector<2x8x8xbf16>
    %109 = vector.shape_cast %106 : vector<2x8x8xbf16> to vector<1x2x8x8xbf16>
    tpu.vector_store %arg22[%c3_70, %c0_71, %c0_72, %c0_73], %109 {strides = array<i32>} : memref<4x2x8x8xbf16, #tpu.memory_space<vmem>>, vector<1x2x8x8xbf16>,
    %110 = tpu.iota {dimensions = array<i32: 2>} : vector<1x1x8xi32>
    %c5_i32 = arith.constant 5 : i32
    %111 = vector.broadcast %c5_i32 : i32 to vector<1x1x8xi32>
    %112 = arith.cmpi slt, %110, %111 : vector<1x1x8xi32>
    %cst_74 = arith.constant 0.000000e+00 : f32
    %cst_75 = arith.constant -1.000000e+30 : f32
    %113 = vector.broadcast %cst_74 : f32 to vector<1x1x8xf32>
    %114 = vector.broadcast %cst_75 : f32 to vector<1x1x8xf32>
    %115 = arith.select %112, %113, %114 : vector<1x1x8xi1>, vector<1x1x8xf32>
    %c0_76 = arith.constant 0 : index
    %c0_77 = arith.constant 0 : index
    %116 = vector.load %arg12[%c0_76, %c0_77] : memref<1x32xf32, #tpu.memory_space<vmem>>, vector<1x32xf32>
    %117 = vector.broadcast %116 : vector<1x32xf32> to vector<16x32xf32>
    %118 = arith.addf %4, %117 : vector<16x32xf32>
    %c0_78 = arith.constant 0 : index
    %c0_79 = arith.constant 0 : index
    %119 = vector.load %arg23[%c0_78, %c0_79] : memref<16x32xf32, #tpu.memory_space<vmem>>, vector<16x32xf32>
    tpu.vector_store %arg23[%c0_78, %c0_79], %118 {strides = array<i32>} : memref<16x32xf32, #tpu.memory_space<vmem>>, vector<16x32xf32>,
    %c0_i32 = arith.constant 0 : i32
    %c4_i32 = arith.constant 4 : i32
    %120 = arith.addi %c0_i32, %c4_i32 : i32
    %c1_i32 = arith.constant 1 : i32
    scf.for %arg24 = %c0_i32 to %120 step %c1_i32  : i32 {
      %c8_i32 = arith.constant 8 : i32
      %228 = arith.muli %arg24, %c8_i32 : i32
      %229 = tpu.assume_multiple %228, 8 : i32
      %230 = arith.index_cast %arg24 : i32 to index
      %c0_142 = arith.constant 0 : index
      %c0_143 = arith.constant 0 : index
      %c0_144 = arith.constant 0 : index
      %231 = vector.load %arg20[%230, %c0_142, %c0_143, %c0_144] : memref<4x2x8x8xbf16, #tpu.memory_space<vmem>>, vector<1x2x8x8xbf16>
      %232 = vector.shape_cast %231 : vector<1x2x8x8xbf16> to vector<2x8x8xbf16>
      %233 = arith.index_cast %arg24 : i32 to index
      %c0_145 = arith.constant 0 : index
      %c0_146 = arith.constant 0 : index
      %c0_147 = arith.constant 0 : index
      %234 = vector.load %arg21[%233, %c0_145, %c0_146, %c0_147] : memref<4x2x8x8xbf16, #tpu.memory_space<vmem>>, vector<1x2x8x8xbf16>
      %235 = vector.shape_cast %234 : vector<1x2x8x8xbf16> to vector<2x8x8xbf16>
      %236 = arith.index_cast %arg24 : i32 to index
      %c0_148 = arith.constant 0 : index
      %c0_149 = arith.constant 0 : index
      %c0_150 = arith.constant 0 : index
      %237 = vector.load %arg22[%236, %c0_148, %c0_149, %c0_150] : memref<4x2x8x8xbf16, #tpu.memory_space<vmem>>, vector<1x2x8x8xbf16>
      %238 = vector.shape_cast %237 : vector<1x2x8x8xbf16> to vector<2x8x8xbf16>
      "tpu.trace_start"() <{level = 10 : i32, message = "bnd,bmd->bnm"}> : () -> ()
      %cst_151 = arith.constant dense<0.000000e+00> : vector<2x8x8xf32>
      %239 = tpu.matmul %232, %235, %cst_151 {dimension_numbers = #tpu.dot_dimension_numbers<[2], [2], [1], [1], [0, 0, 0, 1, 1, 1], [0], [0]>} : vector<2x8x8xbf16>, vector<2x8x8xbf16>, vector<2x8x8xf32> -> vector<2x8x8xf32>
      "tpu.trace_stop"() : () -> ()
      %240 = vector.broadcast %115 : vector<1x1x8xf32> to vector<2x8x8xf32>
      %241 = arith.addf %239, %240 : vector<2x8x8xf32>
      %cst_152 = arith.constant dense<0xFF800000> : vector<2x8xf32>
      %242 = vector.multi_reduction <maximumf>, %241, %cst_152 [2] : vector<2x8x8xf32> to vector<2x8xf32>
      %243 = vector.shape_cast %242 : vector<2x8xf32> to vector<2x8x1xf32>
      %244 = vector.broadcast %243 : vector<2x8x1xf32> to vector<2x8x8xf32>
      %245 = arith.subf %241, %244 : vector<2x8x8xf32>
      %246 = math.exp %245 : vector<2x8x8xf32>
      %cst_153 = arith.constant dense<0.000000e+00> : vector<2x8xf32>
      %247 = vector.multi_reduction <add>, %246, %cst_153 [2] : vector<2x8x8xf32> to vector<2x8xf32>
      %248 = vector.shape_cast %247 : vector<2x8xf32> to vector<2x8x1xf32>
      %249 = tpu.reciprocal %248 {approx = true} : vector<2x8x1xf32> -> vector<2x8x1xf32>
      %250 = vector.broadcast %249 : vector<2x8x1xf32> to vector<2x8x8xf32>
      %251 = arith.mulf %246, %250 : vector<2x8x8xf32>
      %252 = arith.truncf %251 : vector<2x8x8xf32> to vector<2x8x8xbf16>
      "tpu.trace_start"() <{level = 10 : i32, message = "bnm,bmd->bnd"}> : () -> ()
      %cst_154 = arith.constant dense<0.000000e+00> : vector<2x8x8xf32>
      %253 = tpu.matmul %252, %238, %cst_154 {dimension_numbers = #tpu.dot_dimension_numbers<[2], [1], [1], [2], [0, 0, 0, 1, 1, 2], [0], [0]>} : vector<2x8x8xbf16>, vector<2x8x8xbf16>, vector<2x8x8xf32> -> vector<2x8x8xf32>
      "tpu.trace_stop"() : () -> ()
      %c0_155 = arith.constant 0 : index
      %c0_156 = arith.constant 0 : index
      %254 = vector.load %arg23[%c0_155, %c0_156] : memref<16x32xf32, #tpu.memory_space<vmem>>, vector<16x32xf32>
      %255 = vector.shape_cast %253 : vector<2x8x8xf32> to vector<16x8xf32>
      %256 = arith.truncf %255 : vector<16x8xf32> to vector<16x8xbf16>
      %257 = arith.index_cast %229 : i32 to index
      %c0_157 = arith.constant 0 : index
      %258 = vector.load %arg11[%257, %c0_157] : memref<32x32xbf16, #tpu.memory_space<vmem>>, vector<8x32xbf16>
      %cst_158 = arith.constant dense<0.000000e+00> : vector<16x32xf32>
      %259 = tpu.matmul %256, %258, %cst_158 {dimension_numbers = #tpu.dot_dimension_numbers<[1], [0], [0], [1], [0, 0, 1, 1], [], []>} : vector<16x8xbf16>, vector<8x32xbf16>, vector<16x32xf32> -> vector<16x32xf32>
      %260 = arith.addf %254, %259 : vector<16x32xf32>
      %c0_159 = arith.constant 0 : index
      %c0_160 = arith.constant 0 : index
      %261 = vector.load %arg23[%c0_159, %c0_160] : memref<16x32xf32, #tpu.memory_space<vmem>>, vector<16x32xf32>
      tpu.vector_store %arg23[%c0_159, %c0_160], %260 {strides = array<i32>} : memref<16x32xf32, #tpu.memory_space<vmem>>, vector<16x32xf32>,
    }
    %c4_i32_80 = arith.constant 4 : i32
    %c0_81 = arith.constant 0 : index
    %c0_82 = arith.constant 0 : index
    %121 = vector.load %arg23[%c0_81, %c0_82] : memref<16x32xf32, #tpu.memory_space<vmem>>, vector<16x32xf32>
    %c0_83 = arith.constant 0 : index
    %c0_84 = arith.constant 0 : index
    %122 = vector.load %arg13[%c0_83, %c0_84] : memref<1x32xf32, #tpu.memory_space<vmem>>, vector<1x32xf32>
    %c0_85 = arith.constant 0 : index
    %c0_86 = arith.constant 0 : index
    %123 = vector.load %arg14[%c0_85, %c0_86] : memref<1x32xf32, #tpu.memory_space<vmem>>, vector<1x32xf32>
    %cst_87 = arith.constant dense<0.000000e+00> : vector<16xf32>
    %124 = vector.multi_reduction <add>, %121, %cst_87 [1] : vector<16x32xf32> to vector<16xf32>
    %125 = vector.shape_cast %124 : vector<16xf32> to vector<16x1xf32>
    %cst_88 = arith.constant 3.200000e+01 : f32
    %126 = vector.broadcast %cst_88 : f32 to vector<16x1xf32>
    %127 = arith.divf %125, %126 : vector<16x1xf32>
    %128 = vector.broadcast %127 : vector<16x1xf32> to vector<16x32xf32>
    %129 = arith.subf %121, %128 : vector<16x32xf32>
    %130 = arith.mulf %129, %129 : vector<16x32xf32>
    %cst_89 = arith.constant dense<0.000000e+00> : vector<16xf32>
    %131 = vector.multi_reduction <add>, %130, %cst_89 [1] : vector<16x32xf32> to vector<16xf32>
    %132 = vector.shape_cast %131 : vector<16xf32> to vector<16x1xf32>
    %cst_90 = arith.constant 3.200000e+01 : f32
    %133 = vector.broadcast %cst_90 : f32 to vector<16x1xf32>
    %134 = arith.divf %132, %133 : vector<16x1xf32>
    %135 = vector.broadcast %127 : vector<16x1xf32> to vector<16x32xf32>
    %136 = arith.subf %121, %135 : vector<16x32xf32>
    %cst_91 = arith.constant 9.99999997E-7 : f32
    %137 = vector.broadcast %cst_91 : f32 to vector<16x1xf32>
    %138 = arith.addf %134, %137 : vector<16x1xf32>
    %139 = math.rsqrt %138 : vector<16x1xf32>
    %140 = vector.broadcast %139 : vector<16x1xf32> to vector<16x32xf32>
    %141 = arith.mulf %136, %140 : vector<16x32xf32>
    %142 = vector.broadcast %122 : vector<1x32xf32> to vector<16x32xf32>
    %143 = arith.mulf %141, %142 : vector<16x32xf32>
    %144 = vector.broadcast %123 : vector<1x32xf32> to vector<16x32xf32>
    %145 = arith.addf %143, %144 : vector<16x32xf32>
    %146 = arith.truncf %145 : vector<16x32xf32> to vector<16x32xbf16>
    %c0_92 = arith.constant 0 : index
    %c0_93 = arith.constant 0 : index
    %147 = vector.load %arg18[%c0_92, %c0_93] : memref<1x32xf32, #tpu.memory_space<vmem>>, vector<1x32xf32>
    %148 = vector.broadcast %147 : vector<1x32xf32> to vector<16x32xf32>
    %149 = arith.addf %121, %148 : vector<16x32xf32>
    %c0_94 = arith.constant 0 : index
    %c0_95 = arith.constant 0 : index
    %150 = vector.load %arg15[%c0_94, %c0_95] : memref<32x128xbf16, #tpu.memory_space<vmem>>, vector<32x32xbf16>
    %cst_96 = arith.constant dense<0.000000e+00> : vector<16x32xf32>
    %151 = tpu.matmul %146, %150, %cst_96 {dimension_numbers = #tpu.dot_dimension_numbers<[1], [0], [0], [1], [0, 0, 1, 1], [], []>} : vector<16x32xbf16>, vector<32x32xbf16>, vector<16x32xf32> -> vector<16x32xf32>
    %c0_97 = arith.constant 0 : index
    %c0_98 = arith.constant 0 : index
    %152 = vector.load %arg16[%c0_97, %c0_98] : memref<1x128xf32, #tpu.memory_space<vmem>>, vector<1x32xf32>
    %153 = vector.broadcast %152 : vector<1x32xf32> to vector<16x32xf32>
    %154 = arith.addf %151, %153 : vector<16x32xf32>
    %cst_99 = arith.constant 5.000000e-01 : f32
    %155 = vector.broadcast %cst_99 : f32 to vector<16x32xf32>
    %156 = arith.mulf %155, %154 : vector<16x32xf32>
    %cst_100 = arith.constant 2.000000e+00 : f32
    %157 = math.sqrt %cst_100 : f32
    %cst_101 = arith.constant 1.000000e+00 : f32
    %158 = arith.divf %cst_101, %157 : f32
    %159 = vector.broadcast %158 : f32 to vector<16x32xf32>
    %160 = arith.mulf %154, %159 : vector<16x32xf32>
    %161 = math.erf %160 : vector<16x32xf32>
    %cst_102 = arith.constant 1.000000e+00 : f32
    %162 = vector.broadcast %cst_102 : f32 to vector<16x32xf32>
    %163 = arith.addf %162, %161 : vector<16x32xf32>
    %164 = arith.mulf %156, %163 : vector<16x32xf32>
    %165 = arith.truncf %164 : vector<16x32xf32> to vector<16x32xbf16>
    %c0_103 = arith.constant 0 : index
    %c0_104 = arith.constant 0 : index
    %166 = vector.load %arg17[%c0_103, %c0_104] : memref<128x32xbf16, #tpu.memory_space<vmem>>, vector<32x32xbf16>
    %cst_105 = arith.constant dense<0.000000e+00> : vector<16x32xf32>
    %167 = tpu.matmul %165, %166, %cst_105 {dimension_numbers = #tpu.dot_dimension_numbers<[1], [0], [0], [1], [0, 0, 1, 1], [], []>} : vector<16x32xbf16>, vector<32x32xbf16>, vector<16x32xf32> -> vector<16x32xf32>
    %168 = arith.addf %149, %167 : vector<16x32xf32>
    %c0_106 = arith.constant 0 : index
    %c32 = arith.constant 32 : index
    %169 = vector.load %arg15[%c0_106, %c32] : memref<32x128xbf16, #tpu.memory_space<vmem>>, vector<32x32xbf16>
    %cst_107 = arith.constant dense<0.000000e+00> : vector<16x32xf32>
    %170 = tpu.matmul %146, %169, %cst_107 {dimension_numbers = #tpu.dot_dimension_numbers<[1], [0], [0], [1], [0, 0, 1, 1], [], []>} : vector<16x32xbf16>, vector<32x32xbf16>, vector<16x32xf32> -> vector<16x32xf32>
    %c0_108 = arith.constant 0 : index
    %c32_109 = arith.constant 32 : index
    %171 = vector.load %arg16[%c0_108, %c32_109] : memref<1x128xf32, #tpu.memory_space<vmem>>, vector<1x32xf32>
    %172 = vector.broadcast %171 : vector<1x32xf32> to vector<16x32xf32>
    %173 = arith.addf %170, %172 : vector<16x32xf32>
    %cst_110 = arith.constant 5.000000e-01 : f32
    %174 = vector.broadcast %cst_110 : f32 to vector<16x32xf32>
    %175 = arith.mulf %174, %173 : vector<16x32xf32>
    %cst_111 = arith.constant 2.000000e+00 : f32
    %176 = math.sqrt %cst_111 : f32
    %cst_112 = arith.constant 1.000000e+00 : f32
    %177 = arith.divf %cst_112, %176 : f32
    %178 = vector.broadcast %177 : f32 to vector<16x32xf32>
    %179 = arith.mulf %173, %178 : vector<16x32xf32>
    %180 = math.erf %179 : vector<16x32xf32>
    %cst_113 = arith.constant 1.000000e+00 : f32
    %181 = vector.broadcast %cst_113 : f32 to vector<16x32xf32>
    %182 = arith.addf %181, %180 : vector<16x32xf32>
    %183 = arith.mulf %175, %182 : vector<16x32xf32>
    %184 = arith.truncf %183 : vector<16x32xf32> to vector<16x32xbf16>
    %c32_114 = arith.constant 32 : index
    %c0_115 = arith.constant 0 : index
    %185 = vector.load %arg17[%c32_114, %c0_115] : memref<128x32xbf16, #tpu.memory_space<vmem>>, vector<32x32xbf16>
    %cst_116 = arith.constant dense<0.000000e+00> : vector<16x32xf32>
    %186 = tpu.matmul %184, %185, %cst_116 {dimension_numbers = #tpu.dot_dimension_numbers<[1], [0], [0], [1], [0, 0, 1, 1], [], []>} : vector<16x32xbf16>, vector<32x32xbf16>, vector<16x32xf32> -> vector<16x32xf32>
    %187 = arith.addf %168, %186 : vector<16x32xf32>
    %c0_117 = arith.constant 0 : index
    %c64 = arith.constant 64 : index
    %188 = vector.load %arg15[%c0_117, %c64] : memref<32x128xbf16, #tpu.memory_space<vmem>>, vector<32x32xbf16>
    %cst_118 = arith.constant dense<0.000000e+00> : vector<16x32xf32>
    %189 = tpu.matmul %146, %188, %cst_118 {dimension_numbers = #tpu.dot_dimension_numbers<[1], [0], [0], [1], [0, 0, 1, 1], [], []>} : vector<16x32xbf16>, vector<32x32xbf16>, vector<16x32xf32> -> vector<16x32xf32>
    %c0_119 = arith.constant 0 : index
    %c64_120 = arith.constant 64 : index
    %190 = vector.load %arg16[%c0_119, %c64_120] : memref<1x128xf32, #tpu.memory_space<vmem>>, vector<1x32xf32>
    %191 = vector.broadcast %190 : vector<1x32xf32> to vector<16x32xf32>
    %192 = arith.addf %189, %191 : vector<16x32xf32>
    %cst_121 = arith.constant 5.000000e-01 : f32
    %193 = vector.broadcast %cst_121 : f32 to vector<16x32xf32>
    %194 = arith.mulf %193, %192 : vector<16x32xf32>
    %cst_122 = arith.constant 2.000000e+00 : f32
    %195 = math.sqrt %cst_122 : f32
    %cst_123 = arith.constant 1.000000e+00 : f32
    %196 = arith.divf %cst_123, %195 : f32
    %197 = vector.broadcast %196 : f32 to vector<16x32xf32>
    %198 = arith.mulf %192, %197 : vector<16x32xf32>
    %199 = math.erf %198 : vector<16x32xf32>
    %cst_124 = arith.constant 1.000000e+00 : f32
    %200 = vector.broadcast %cst_124 : f32 to vector<16x32xf32>
    %201 = arith.addf %200, %199 : vector<16x32xf32>
    %202 = arith.mulf %194, %201 : vector<16x32xf32>
    %203 = arith.truncf %202 : vector<16x32xf32> to vector<16x32xbf16>
    %c64_125 = arith.constant 64 : index
    %c0_126 = arith.constant 0 : index
    %204 = vector.load %arg17[%c64_125, %c0_126] : memref<128x32xbf16, #tpu.memory_space<vmem>>, vector<32x32xbf16>
    %cst_127 = arith.constant dense<0.000000e+00> : vector<16x32xf32>
    %205 = tpu.matmul %203, %204, %cst_127 {dimension_numbers = #tpu.dot_dimension_numbers<[1], [0], [0], [1], [0, 0, 1, 1], [], []>} : vector<16x32xbf16>, vector<32x32xbf16>, vector<16x32xf32> -> vector<16x32xf32>
    %206 = arith.addf %187, %205 : vector<16x32xf32>
    %c0_128 = arith.constant 0 : index
    %c96 = arith.constant 96 : index
    %207 = vector.load %arg15[%c0_128, %c96] : memref<32x128xbf16, #tpu.memory_space<vmem>>, vector<32x32xbf16>
    %cst_129 = arith.constant dense<0.000000e+00> : vector<16x32xf32>
    %208 = tpu.matmul %146, %207, %cst_129 {dimension_numbers = #tpu.dot_dimension_numbers<[1], [0], [0], [1], [0, 0, 1, 1], [], []>} : vector<16x32xbf16>, vector<32x32xbf16>, vector<16x32xf32> -> vector<16x32xf32>
    %c0_130 = arith.constant 0 : index
    %c96_131 = arith.constant 96 : index
    %209 = vector.load %arg16[%c0_130, %c96_131] : memref<1x128xf32, #tpu.memory_space<vmem>>, vector<1x32xf32>
    %210 = vector.broadcast %209 : vector<1x32xf32> to vector<16x32xf32>
    %211 = arith.addf %208, %210 : vector<16x32xf32>
    %cst_132 = arith.constant 5.000000e-01 : f32
    %212 = vector.broadcast %cst_132 : f32 to vector<16x32xf32>
    %213 = arith.mulf %212, %211 : vector<16x32xf32>
    %cst_133 = arith.constant 2.000000e+00 : f32
    %214 = math.sqrt %cst_133 : f32
    %cst_134 = arith.constant 1.000000e+00 : f32
    %215 = arith.divf %cst_134, %214 : f32
    %216 = vector.broadcast %215 : f32 to vector<16x32xf32>
    %217 = arith.mulf %211, %216 : vector<16x32xf32>
    %218 = math.erf %217 : vector<16x32xf32>
    %cst_135 = arith.constant 1.000000e+00 : f32
    %219 = vector.broadcast %cst_135 : f32 to vector<16x32xf32>
    %220 = arith.addf %219, %218 : vector<16x32xf32>
    %221 = arith.mulf %213, %220 : vector<16x32xf32>
    %222 = arith.truncf %221 : vector<16x32xf32> to vector<16x32xbf16>
    %c96_136 = arith.constant 96 : index
    %c0_137 = arith.constant 0 : index
    %223 = vector.load %arg17[%c96_136, %c0_137] : memref<128x32xbf16, #tpu.memory_space<vmem>>, vector<32x32xbf16>
    %cst_138 = arith.constant dense<0.000000e+00> : vector<16x32xf32>
    %224 = tpu.matmul %222, %223, %cst_138 {dimension_numbers = #tpu.dot_dimension_numbers<[1], [0], [0], [1], [0, 0, 1, 1], [], []>} : vector<16x32xbf16>, vector<32x32xbf16>, vector<16x32xf32> -> vector<16x32xf32>
    %225 = arith.addf %206, %224 : vector<16x32xf32>
    %226 = vector.shape_cast %225 : vector<16x32xf32> to vector<2x8x32xf32>
    %c0_139 = arith.constant 0 : index
    %c0_140 = arith.constant 0 : index
    %c0_141 = arith.constant 0 : index
    %227 = vector.load %arg19[%c0_139, %c0_140, %c0_141] : memref<2x8x32xf32, #tpu.memory_space<vmem>>, vector<2x8x32xf32>
    tpu.vector_store %arg19[%c0_139, %c0_140, %c0_141], %226 {strides = array<i32>} : memref<2x8x32xf32, #tpu.memory_space<vmem>>, vector<2x8x32xf32>,
    return
  }
  func.func @transform_0(%arg0: i32) -> (i32, i32, i32) {
    %c0_i32 = arith.constant 0 : i32
    %c0_i32_0 = arith.constant 0 : i32
    %c0_i32_1 = arith.constant 0 : i32
    return %arg0, %c0_i32, %c0_i32_0 : i32, i32, i32
  }
  func.func @transform_1(%arg0: i32) -> (i32, i32, i32) {
    %c0_i32 = arith.constant 0 : i32
    %c0_i32_0 = arith.constant 0 : i32
    %c0_i32_1 = arith.constant 0 : i32
    %c0_i32_2 = arith.constant 0 : i32
    return %c0_i32, %c0_i32_0, %c0_i32_1 : i32, i32, i32
  }
  func.func @transform_2(%arg0: i32) -> (i32, i32) {
    %c0_i32 = arith.constant 0 : i32
    %c0_i32_0 = arith.constant 0 : i32
    %c0_i32_1 = arith.constant 0 : i32
    return %c0_i32, %c0_i32_0 : i32, i32
  }
  func.func @transform_3(%arg0: i32) -> (i32, i32) {
    %c0_i32 = arith.constant 0 : i32
    %c0_i32_0 = arith.constant 0 : i32
    %c0_i32_1 = arith.constant 0 : i32
    return %c0_i32, %c0_i32_0 : i32, i32
  }
  func.func @transform_4(%arg0: i32) -> (i32, i32) {
    %c0_i32 = arith.constant 0 : i32
    %c0_i32_0 = arith.constant 0 : i32
    %c0_i32_1 = arith.constant 0 : i32
    return %c0_i32, %c0_i32_0 : i32, i32
  }
  func.func @transform_5(%arg0: i32) -> (i32, i32) {
    %c0_i32 = arith.constant 0 : i32
    %c0_i32_0 = arith.constant 0 : i32
    %c0_i32_1 = arith.constant 0 : i32
    return %c0_i32, %c0_i32_0 : i32, i32
  }
  func.func @transform_6(%arg0: i32) -> (i32, i32) {
    %c0_i32 = arith.constant 0 : i32
    %c0_i32_0 = arith.constant 0 : i32
    %c0_i32_1 = arith.constant 0 : i32
    return %c0_i32, %c0_i32_0 : i32, i32
  }
  func.func @transform_7(%arg0: i32) -> (i32, i32) {
    %c0_i32 = arith.constant 0 : i32
    %c0_i32_0 = arith.constant 0 : i32
    %c0_i32_1 = arith.constant 0 : i32
    return %c0_i32, %c0_i32_0 : i32, i32
  }
  func.func @transform_8(%arg0: i32) -> (i32, i32) {
    %c0_i32 = arith.constant 0 : i32
    %c0_i32_0 = arith.constant 0 : i32
    %c0_i32_1 = arith.constant 0 : i32
    return %c0_i32, %c0_i32_0 : i32, i32
  }
  func.func @transform_9(%arg0: i32) -> (i32, i32) {
    %c0_i32 = arith.constant 0 : i32
    %c0_i32_0 = arith.constant 0 : i32
    %c0_i32_1 = arith.constant 0 : i32
    return %c0_i32, %c0_i32_0 : i32, i32
  }
  func.func @transform_10(%arg0: i32) -> (i32, i32) {
    %c0_i32 = arith.constant 0 : i32
    %c0_i32_0 = arith.constant 0 : i32
    %c0_i32_1 = arith.constant 0 : i32
    return %c0_i32, %c0_i32_0 : i32, i32
  }
  func.func @transform_11(%arg0: i32) -> (i32, i32) {
    %c0_i32 = arith.constant 0 : i32
    %c0_i32_0 = arith.constant 0 : i32
    %c0_i32_1 = arith.constant 0 : i32
    return %c0_i32, %c0_i32_0 : i32, i32
  }
  func.func @transform_12(%arg0: i32) -> (i32, i32) {
    %c0_i32 = arith.constant 0 : i32
    %c0_i32_0 = arith.constant 0 : i32
    %c0_i32_1 = arith.constant 0 : i32
    return %c0_i32, %c0_i32_0 : i32, i32
  }
  func.func @transform_13(%arg0: i32) -> (i32, i32) {
    %c0_i32 = arith.constant 0 : i32
    %c0_i32_0 = arith.constant 0 : i32
    %c0_i32_1 = arith.constant 0 : i32
    return %c0_i32, %c0_i32_0 : i32, i32
  }
  func.func @transform_14(%arg0: i32) -> (i32, i32) {
    %c0_i32 = arith.constant 0 : i32
    %c0_i32_0 = arith.constant 0 : i32
    %c0_i32_1 = arith.constant 0 : i32
    return %c0_i32, %c0_i32_0 : i32, i32
  }
  func.func @transform_15(%arg0: i32) -> (i32, i32) {
    %c0_i32 = arith.constant 0 : i32
    %c0_i32_0 = arith.constant 0 : i32
    %c0_i32_1 = arith.constant 0 : i32
    return %c0_i32, %c0_i32_0 : i32, i32
  }
  func.func @transform_16(%arg0: i32) -> (i32, i32) {
    %c0_i32 = arith.constant 0 : i32
    %c0_i32_0 = arith.constant 0 : i32
    %c0_i32_1 = arith.constant 0 : i32
    return %c0_i32, %c0_i32_0 : i32, i32
  }
  func.func @transform_17(%arg0: i32) -> (i32, i32) {
    %c0_i32 = arith.constant 0 : i32
    %c0_i32_0 = arith.constant 0 : i32
    %c0_i32_1 = arith.constant 0 : i32
    return %c0_i32, %c0_i32_0 : i32, i32
  }
  func.func @transform_18(%arg0: i32) -> (i32, i32, i32) {
    %c0_i32 = arith.constant 0 : i32
    %c0_i32_0 = arith.constant 0 : i32
    %c0_i32_1 = arith.constant 0 : i32
    return %arg0, %c0_i32, %c0_i32_0 : i32, i32, i32
  }
}

</mosaic_0001>

<bundles_post_ra>
// kernel: tpu_custom_call.1
= control target key start
LH: loop header
LB: loop body
LE: loop exit
PB: predicated region body
PF: predicated region fallthrough
CT: control target
= control target key end

     0   :  { %6 = vsyncpa [#allocation3], 0  ;;  %s481_s0 = inlined_call_operand.hbm [shape: f32[8,128], index: 0, kind: input, shape index: {}]   ;;  %s482_s1 = inlined_call_operand.hbm [shape: f32[16,128], index: 1, kind: output, shape index: {}]  }
   0x1   :  { %7 = vsyncpa [#allocation4], 0 }
   0x2   :  { %9 = vsyncpa [#allocation4 + $0x1], 0  ;;  %s351_s6 = smov 0   ;;  %s353_s7 = smov 0  }
   0x3   :  { %s355_s8 = smov 0   ;;  %s357_s9 = smov 0  }
   0x4 LB: > { %s372_s10 = sadd.s32 4294967295, %s337_s9   ;;  %s183_s11 = sadd.s32 4294967294, %s337_s9   ;;  %s337_s9 = sphi %s357_s9, %s498_s9   ;;  %s333_s8 = sphi %s355_s8, %s497_s8   ;;  %s329_s7 = sphi %s353_s7, %s496_s7   ;;  %s325_s6 = sphi %s351_s6, %s495_s6  }
   0x5   : > { %s376_s12 = sadd.s32 1, %s337_s9   ;;  %s43_s13 = sadd.s32 1, %s333_s8 }
   0x6   : > { %s40_s14 = ssub.s32 %s337_s9, %s376_s12  ;;  %p53_p0 = scmp.ne.s32.totalorder %s333_s8, %s329_s7 }
   0x7   : > { %p41_p1 = scmp.eq.s32.totalorder %s40_s14, 0  ;;  %p54_p2 = scmp.eq.s32.totalorder %s372_s10, 1 }
   0x8   : > { %p59_p3 = scmp.ne.s32.totalorder %s329_s7, %s325_s6  ;;  %p60_p4 = scmp.eq.s32.totalorder %s183_s11, 1 }
   0x9   : > { %s387_s15 = scalar_select %p41_p1, %s333_s8, %s43_s13  }
   0xa   : > { %p389_p5 = por %p54_p2, %p53_p0  ;;  %p393_p6 = por %p60_p4, %p59_p3 }
   0xb   : > { %p184_p7 = scmp.ge.s32.totalorder %s337_s9, 1  ;;  %p67_p8 = scmp.lt.s32.totalorder %s337_s9, 3 }
   0xc   : > { %s486_s16 = scalar_select %p389_p5, 1, 0 }
   0xd   : > { %s487_s17 = scalar_select %p393_p6, 1, 0 }
   0xe   : > { %p483_p9 = scmp.eq.s32.totalorder %s372_s10, 0  ;;  %p400_p10 = pnand %p184_p7, %p67_p8 }
   0xf   : > { %s339_s19 = smov [#allocation2]   ;;  %s243_s24 = scalar_lea.hbm %s481_s0, 128 }
  0x10   : > { %s488_s18 = scalar_select %p400_p10, 1, 0 }
  0x11   : > { %s80_s20 = sshll.u32 %s339_s19, 4  ;;  %p199_p11 = pneg %p400_p10  ;;  %s81_s20 = int_to_ptr.vmem [resolvable:$true] %s80_s20 }
  0x12   : > { %p244_p13 = scmp.ne.s32.totalorder %s481_s0, %s243_s24  ;;  %p250_p3 = scmp.lt.u32.totalorder %s243_s24, %s481_s0 }
  0x13   : > { %p408_p12 = pnand %p483_p9, %p199_p11 }
  0x15   : > { %p245_p0 = pneg %p408_p12 }
  0x17   : > { %p246_p1 = pnand %p245_p0, %p244_p13 }
  0x19   : > { %p247_p2 = pneg %p246_p1 }
  0x1b   : > { %p252_p4 = pnand %p250_p3, %p247_p2 }
  0x1d   : > { %255 = shalt.err (!%p252_p4)
}
  0x1e   : > { %s256_s29 = scalar_lea.vmem %s81_s20, 128  ;;  %p264_p9 = scmp.lt.s32.totalorder %s81_s20, %s81_s20 }
  0x1f   : > { %p257_p7 = scmp.ne.s32.totalorder %s81_s20, %s256_s29  ;;  %p265_p6 = scmp.lt.s32.totalorder %s256_s29, %s256_s29 }
  0x21   : > { %p259_p8 = pnand %p257_p7, %p245_p0  ;;  %p266_p5 = por %p265_p6, %p264_p9 }
  0x23   : > { %p260_p11 = pneg %p259_p8 }
  0x25   : > { %p267_p10 = pnand %p266_p5, %p260_p11 }
  0x27   : > { %270 = shalt.err (!%p267_p10)
}
  0x28   : > { %202 = dma.hbm_to_vmem [thread:$0]  (!%p408_p12), %s481_s0, 128, %s81_s20, [#allocation3]  }
  0x29   : > { %p490_p13 = scmp.ne.s32.totalorder %s488_s18, 0 }
  0x2a   : > { %p491_p1 = scmp.eq.s32.totalorder (!%p490_p13), %s372_s10, 0 }
  0x2b   : > { %93 = sbr.rel (%p490_p13) target bundleno = 77 (0x4d), region = 24 }
  0x32   : > { %316 = dma.done.wait (%p491_p1), [#allocation3], 128   ;;  %p492_p0 = pmov %p491_p1 }
  0x33   : > { %s105_s3 = sand.u32 1, %s329_s7   ;;  %s190_s13 = sshll.u32 %s372_s10, 7  ;;  %v108_v0 = vld [vmem:[#allocation2] sm:$0xff] }
  0x34   : > { %318 = vsyncadd (%p492_p0), [#allocation3], 4294967168  ;;  %s188_s4 = sshll.u32 %s105_s3, 3  ;;  %s441_s18 = scalar_lea.hbm %s482_s1, %s190_s13 }
  0x35   : > { %s107_s5 = scalar_lea.vmem [#allocation5], %s188_s4  ;;  %s111_s20 = scalar_lea.sflag [#allocation4], %s105_s3 }
  0x36   : > { %s124_s11 = sshll.u32 %s107_s5, 4  ;;  %109 = vst [vmem:[%s107_s5] sm:$0xff] %v108_v0  ;;  %p493_p6 = scmp.ne.s32.totalorder %s486_s16, 0  ;;  %s436_s11 = int_to_ptr.vmem [resolvable:$true] %s124_s11 }
  0x37   : > { %s271_s21 = scalar_lea.vmem %s436_s11, 128  ;;  %s340_s22 = smov [#allocation5]  }
  0x38   : > { %p272_p5 = scmp.ne.s32.totalorder %s436_s11, %s271_s21  ;;  %s275_s10 = sshll.u32 %s340_s22, 4  ;;  %s276_s10 = int_to_ptr.vmem [resolvable:$false] %s275_s10 }
  0x39   : > { %s277_s23 = scalar_lea.vmem %s276_s10, 256  ;;  %p278_p12 = scmp.lt.s32.totalorder %s436_s11, %s276_s10 }
  0x3a   : > { %p273_p9 = pnand %p272_p5, %p493_p6  ;;  %p279_p2 = scmp.lt.s32.totalorder %s277_s23, %s271_s21 }
  0x3c   : > { %p274_p10 = pneg %p273_p9  ;;  %p280_p3 = por %p279_p2, %p278_p12 }
  0x3e   : > { %p281_p4 = pnand %p280_p3, %p274_p10 }
  0x40   : > { %284 = shalt.err (!%p281_p4)
}
  0x41   : > { %s285_s24 = scalar_lea.hbm %s441_s18, 128  ;;  %s289_s27 = scalar_lea.hbm %s482_s1, 256 }
  0x42   : > { %p286_p7 = scmp.ne.s32.totalorder %s441_s18, %s285_s24  ;;  %p290_p13 = scmp.lt.u32.totalorder %s441_s18, %s482_s1 }
  0x43   : > { %p291_p1 = scmp.lt.u32.totalorder %s289_s27, %s285_s24  ;;  %p293_p5 = scmp.lt.u32.totalorder %s285_s24, %s441_s18 }
  0x44   : > { %p287_p8 = pnand %p286_p7, %p493_p6 }
  0x45   : > { %p292_p0 = por %p291_p1, %p290_p13 }
  0x46   : > { %p288_p11 = pneg %p287_p8 }
  0x47   : > { %p294_p9 = por %p293_p5, %p292_p0 }
  0x49   : > { %p295_p10 = pnand %p294_p9, %p288_p11 }
  0x4b   : > { %298 = shalt.err (!%p295_p10)
}
  0x4c   : > { %197 = dma.vmem_to_hbm [thread:$0]  (%p493_p6), %s436_s11, 128, %s441_s18, %s111_s20  }
  0x4d PF: > { %p209_p12 = scmp.ge.s32.totalorder %s337_s9, 2  ;;  %s136_s30 = sand.u32 1, %s325_s6  }
  0x4e   : > { %p494_p2 = scmp.ne.s32.totalorder %s487_s17, 0  ;;  %s137_s2 = scalar_lea.sflag [#allocation4], %s136_s30 }
  0x50   : > { %p204_p3 = pnand %p209_p12, %p494_p2 }
  0x52   : > { %320 = dma.done.wait (!%p204_p3), %s137_s2, 128  }
  0x53   : > { %322 = vsyncadd (!%p204_p3), %s137_s2, 4294967168  ;;  %p12_p4 = scmp.ge.s32.totalorder %s376_s12, 4   ;;  %s495_s6 = smov %s329_s7 }
  0x54   : > { %s496_s7 = smov %s333_s8  ;;  %s497_s8 = smov %s387_s15 }
  0x55   : > { %s498_s9 = smov %s376_s12  ;;  %14 = sbr.rel (!%p12_p4) target bundleno = 4 (0x4), region = 61 }
  0x5c   :  { %142 = vsyncpa [#allocation3], 1 }
  0x5d   :  { %144 = vsyncpa [#allocation3 + $0x1], 1 }
  0x5e   :  { %145 = vsyncpa [#allocation4], 1 }
  0x5f   :  { %147 = vsyncpa [#allocation4 + $0x1], 1 }

// kernel: vit_forward.3
= control target key start
LH: loop header
LB: loop body
LE: loop exit
PB: predicated region body
PF: predicated region fallthrough
CT: control target
= control target key end

     0   :  { %s533_s12 = smov 0   ;;  %s620_s0 = inlined_call_operand.vmem [shape: bf16[4,4,192], index: 0, kind: input, shape index: {}]   ;;  %s621_s1 = inlined_call_operand.vmem [shape: bf16[192,32], index: 1, kind: input, shape index: {}]   ;;  %s622_s2 = inlined_call_operand.vmem [shape: f32[1,32], index: 2, kind: input, shape index: {}]   ;;  %s623_s3 = inlined_call_operand.vmem [shape: f32[4,4,32], index: 3, kind: output, shape index: {}]  }
   0x1 LB: > { %s451_s13 = sadd.s32 4294967295, %s510_s12   ;;  %p455_p0 = scmp.ge.s32.totalorder %s510_s12, 1  ;;  %s510_s12 = sphi %s533_s12, %s13_s12  }
   0x2   : > { %p139_p1 = scmp.lt.s32.totalorder %s510_s12, 3 }
   0x4   : > { %p140_p2 = pnand %p455_p0, %p139_p1 }
   0x5   : > { %v492_v0 = vld [vmem:[%s621_s1] sm:$0xff] (!%p140_p2)   ;;  %v512_v1 = vmov (!%p140_p2), 0   ;;  %s456_s16 = sshll.u32 (!%p140_p2), %s451_s13, 1  ;;  %v493_v2 = vld [vmem:[%s621_s1 + $0x8] sm:$0xff] (!%p140_p2)   ;;  %v494_v3 = vld [vmem:[%s621_s1 + $0x10] sm:$0xff] (!%p140_p2)   ;;  %vm292_vm0 = vcmask (!%p140_p2), 523264  }
   0x6   : > { %143 = sbr.rel (%p140_p2) target bundleno = 269 (0x10d), region = 32  ;;  %296 = vmatprep.subr.bf16.mxu0 (!%p140_p2), %v512_v1  ;;  %353 = vmatprep.subr.bf16.mxu1 (!%p140_p2), %v512_v1  ;;  %p165_p3 = scmp.lt.s32.totalorder (!%p140_p2), %s456_s16, 3  ;;  %v495_v4 = vld [vmem:[%s621_s1 + $0x18] sm:$0xff] (!%p140_p2)   ;;  %v496_v8 = vld [vmem:[%s621_s1 + $0x20] sm:$0xff] (!%p140_p2)   ;;  %v497_v10 = vld [vmem:[%s621_s1 + $0x28] sm:$0xff] (!%p140_p2)   ;;  %vm336_vm1 = vcmask (!%p140_p2), 257024  }
   0x7   : > { %297 = vmatpush1.bf16.msra.mxu0 (!%p140_p2), %v492_v0  ;;  %354 = vmatpush1.bf16.msra.mxu1 (!%p140_p2), %v492_v0  ;;  %v498_v11 = vld [vmem:[%s621_s1 + $0x30] sm:$0xff] (!%p140_p2)   ;;  %v499_v12 = vld [vmem:[%s621_s1 + $0x38] sm:$0xff] (!%p140_p2)   ;;  %v500_v13 = vld [vmem:[%s621_s1 + $0x40] sm:$0xff] (!%p140_p2)  }
   0x8   : > { %298 = vmatprep.subr.bf16.mxu0 (!%p140_p2), %v512_v1  ;;  %355 = vmatprep.subr.bf16.mxu1 (!%p140_p2), %v512_v1  ;;  %v501_v14 = vld [vmem:[%s621_s1 + $0x48] sm:$0xff] (!%p140_p2)   ;;  %v502_v15 = vld [vmem:[%s621_s1 + $0x50] sm:$0xff] (!%p140_p2)   ;;  %v503_v16 = vld [vmem:[%s621_s1 + $0x58] sm:$0xff] (!%p140_p2)  }
   0x9   : > { %v461_v17 = vld [vmem:[%s622_s2] ss:$0 sm:$0xff] (!%p140_p2) }
   0xb   : > { %299 = vmatpush1.bf16.msra.mxu0 (!%p140_p2), %v493_v2  ;;  %356 = vmatpush1.bf16.msra.mxu1 (!%p140_p2), %v493_v2 }
   0xc   : > { %300 = vmatprep.subr.bf16.mxu0 (!%p140_p2), %v512_v1  ;;  %357 = vmatprep.subr.bf16.mxu1 (!%p140_p2), %v512_v1 }
   0xd   : > { %s625_s16 = smov (!%p165_p3, %s456_s16), 3 }
   0xe   : > { %s482_s21 = sshll.u32 %s625_s16, 2 }
   0xf   : > { %s169_s24 = scalar_lea.vmem %s620_s0, %s482_s21  ;;  %301 = vmatpush1.bf16.msra.mxu0 %v494_v3  ;;  %358 = vmatpush1.bf16.msra.mxu1 %v494_v3  ;;  %s175_s23 = scalar_lea.vmem %s623_s3, %s482_s21 }
  0x10   : > { %302 = vmatprep.subr.bf16.mxu0 %v512_v1  ;;  %359 = vmatprep.subr.bf16.mxu1 %v512_v1  ;;  %v462_v5 = vld.sshfl [vmem:[%s169_s24] sm:$0x33 pattern:$0x76325410] }
  0x11   : > { %v218_v6 = vcombine.high %v462_v5, %v462_v5  ;;  %v477_v7 = vld.sshfl [vmem:[%s169_s24 + $0x4] sm:$0x33 pattern:$0x76325410] }
  0x12   : > { %v348_v9 = vcombine.high %v477_v7, %v477_v7 }
  0x13   : > { %303 = vmatpush1.bf16.msra.mxu0 %v495_v4  ;;  %360 = vmatpush1.bf16.msra.mxu1 %v495_v4 }
  0x14   : > { %304 = vmatprep.subr.bf16.mxu0 %v512_v1  ;;  %361 = vmatprep.subr.bf16.mxu1 %v512_v1 }
  0x15   : > { %475 = vmatprep.mubr.msk.bf16.mxu0 %vm292_vm0, %v218_v6  ;;  %478 = vmatprep.mubr.msk.bf16.mxu1 %vm292_vm0, %v348_v9 }
  0x17   : > { %305 = vmatpush1.bf16.msra.mxu0 %v496_v8  ;;  %362 = vmatpush1.bf16.msra.mxu1 %v496_v8 }
  0x18   : > { %306 = vmatprep.subr.bf16.mxu0 %v512_v1  ;;  %363 = vmatprep.subr.bf16.mxu1 %v512_v1 }
  0x1b   : > { %307 = vmatpush1.bf16.msra.mxu0 %v497_v10  ;;  %364 = vmatpush1.bf16.msra.mxu1 %v497_v10 }
  0x1c   : > { %308 = vmatprep.subr.bf16.mxu0 %v512_v1  ;;  %365 = vmatprep.subr.bf16.mxu1 %v512_v1 }
  0x1f   : > { %309 = vmatpush1.bf16.msra.mxu0 %v498_v11  ;;  %366 = vmatpush1.bf16.msra.mxu1 %v498_v11 }
  0x20   : > { %310 = vmatprep.subr.bf16.mxu0 %v512_v1  ;;  %367 = vmatprep.subr.bf16.mxu1 %v512_v1 }
  0x23   : > { %311 = vmatpush1.bf16.msra.mxu0 %v499_v12  ;;  %368 = vmatpush1.bf16.msra.mxu1 %v499_v12 }
  0x24   : > { %312 = vmatprep.subr.bf16.mxu0 %v512_v1  ;;  %369 = vmatprep.subr.bf16.mxu1 %v512_v1 }
  0x27   : > { %313 = vmatpush1.bf16.msra.mxu0 %v500_v13  ;;  %370 = vmatpush1.bf16.msra.mxu1 %v500_v13 }
  0x28   : > { %314 = vmatprep.subr.bf16.mxu0 %v512_v1  ;;  %371 = vmatprep.subr.bf16.mxu1 %v512_v1 }
  0x2b   : > { %315 = vmatpush1.bf16.msra.mxu0 %v501_v14  ;;  %372 = vmatpush1.bf16.msra.mxu1 %v501_v14 }
  0x2c   : > { %316 = vmatprep.subr.bf16.mxu0 %v512_v1  ;;  %373 = vmatprep.subr.bf16.mxu1 %v512_v1 }
  0x2f   : > { %317 = vmatpush1.bf16.msra.mxu0 %v502_v15  ;;  %374 = vmatpush1.bf16.msra.mxu1 %v502_v15 }
  0x30   : > { %318 = vmatprep.subr.bf16.mxu0 %v512_v1  ;;  %375 = vmatprep.subr.bf16.mxu1 %v512_v1 }
  0x33   : > { %319 = vmatpush1.bf16.msra.mxu0 %v503_v16  ;;  %376 = vmatpush1.bf16.msra.mxu1 %v503_v16 }
  0x36   : > { %329 = vmatmul.mubr.bf16.vlgmr.msra.gmra.mrb[0].mxu0 %v462_v5  ;;  %386 = vmatmul.mubr.bf16.vlgmr.msra.gmra.mrb[0].mxu1 %v477_v7 }
 0x109   : > { %v330_v18 = vpop.f32.mrb[0].mxu0  ;;  %v387_v19 = vpop.f32.mrb[0].mxu1 }
 0x10a   : > { %v331_v20 = vadd.f32 %v461_v17, %v330_v18  ;;  %v388_v21 = vadd.f32 %v461_v17, %v387_v19  ;;  %v332_v22 = vpop.f32.mrb[1].mxu0  ;;  %v389_v23 = vpop.f32.mrb[1].mxu1 }
 0x10b   : > { %v333_v24 = vpop.f32.mrb[2].mxu0  ;;  %v390_v25 = vpop.f32.mrb[2].mxu1 }
 0x10c   : > { %337 = vst.msk [vmem:[%s175_s23] sm:$0xf] %vm336_vm1, %v331_v20  ;;  %v334_v26 = vpop.f32.mrb[3].mxu0  ;;  %v391_v27 = vpop.f32.mrb[3].mxu1  ;;  %479 = vst.msk [vmem:[%s175_s23 + $0x4] sm:$0xf] %vm336_vm1, %v388_v21 }
 0x10d PF: > { %s13_s12 = sadd.s32 1, %s510_s12  }
 0x10e   : > { %p10_p4 = scmp.ge.s32.totalorder %s13_s12, 4  }
 0x110   :  { %12 = sbr.rel (!%p10_p4) target bundleno = 1 (0x1), region = 64 }

// kernel: vit_forward.5
= control target key start
LH: loop header
LB: loop body
LE: loop exit
PB: predicated region body
PF: predicated region fallthrough
CT: control target
= control target key end

     0   :  { %s3074_s0 = inlined_call_operand.vmem [shape: f32[4,8,32], index: 0, kind: input, shape index: {}]   ;;  %s3075_s1 = inlined_call_operand.vmem [shape: f32[1,32], index: 1, kind: input, shape index: {}]   ;;  %s3076_s2 = inlined_call_operand.vmem [shape: f32[1,32], index: 2, kind: input, shape index: {}]   ;;  %s3077_s3 = inlined_call_operand.vmem [shape: bf16[32,32], index: 3, kind: input, shape index: {}]   ;;  %s3078_s4 = inlined_call_operand.vmem [shape: f32[1,32], index: 4, kind: input, shape index: {}]   ;;  %s3079_s5 = inlined_call_operand.vmem [shape: bf16[32,32], index: 5, kind: input, shape index: {}]   ;;  %s3080_s6 = inlined_call_operand.vmem [shape: f32[1,32], index: 6, kind: input, shape index: {}]   ;;  %s3081_s7 = inlined_call_operand.vmem [shape: bf16[32,32], index: 7, kind: input, shape index: {}]   ;;  %s3082_s8 = inlined_call_operand.vmem [shape: f32[1,32], index: 8, kind: input, shape index: {}]   ;;  %s3083_s9 = inlined_call_operand.vmem [shape: bf16[32,32], index: 9, kind: input, shape index: {}]   ;;  %s3084_s10 = inlined_call_operand.vmem [shape: f32[1,32], index: 10, kind: input, shape index: {}]   ;;  %s3085_s11 = inlined_call_operand.vmem [shape: f32[1,32], index: 11, kind: input, shape index: {}]   ;;  %s3086_s12 = inlined_call_operand.vmem [shape: f32[1,32], index: 12, kind: input, shape index: {}]   ;;  %s3087_s13 = inlined_call_operand.vmem [shape: bf16[32,128], index: 13, kind: input, shape index: {}]   ;;  %s3088_s14 = inlined_call_operand.vmem [shape: f32[1,128], index: 14, kind: input, shape index: {}]   ;;  %s3089_s15 = inlined_call_operand.vmem [shape: bf16[128,32], index: 15, kind: input, shape index: {}]   ;;  %s3090_s16 = inlined_call_operand.vmem [shape: f32[1,32], index: 16, kind: input, shape index: {}]   ;;  %s3091_s17 = inlined_call_operand.vmem [shape: f32[1,32], index: 17, kind: input, shape index: {}]   ;;  %s3092_s18 = inlined_call_operand.vmem [shape: f32[1,32], index: 18, kind: input, shape index: {}]   ;;  %s3093_s19 = inlined_call_operand.vmem [shape: bf16[32,10], index: 19, kind: input, shape index: {}]   ;;  %s3094_s20 = inlined_call_operand.vmem [shape: f32[1,10], index: 20, kind: input, shape index: {}]   ;;  %s3095_s21 = inlined_call_operand.hbm [shape: f32[4,1,10], index: 21, kind: output, shape index: {}]  }
   0x1   :  { %3103 = sst [smem:[#allocation12_spill]] %s3074_s0 }
   0x2   :  { %3104 = sst [smem:[#allocation13_spill]] %s3075_s1 }
   0x3   :  { %3105 = sst [smem:[#allocation14_spill]] %s3076_s2 }
   0x4   :  { %3106 = sst [smem:[#allocation15_spill]] %s3077_s3 }
   0x5   :  { %3107 = sst [smem:[#allocation16_spill]] %s3078_s4 }
   0x6   :  { %3108 = sst [smem:[#allocation17_spill]] %s3079_s5 }
   0x7   :  { %3109 = sst [smem:[#allocation18_spill]] %s3080_s6 }
   0x8   :  { %3110 = sst [smem:[#allocation19_spill]] %s3084_s10 }
   0x9   :  { %26 = vsyncpa [#allocation7], 0 }
   0xa   :  { %28 = vsyncpa [#allocation7 + $0x1], 0  ;;  %s2690_s2 = smov 0   ;;  %s2692_s25 = smov 0  }
   0xb   :  { %s2694_s26 = smov 0   ;;  %s2696_s27 = smov 0  }
   0xc LB: > { %3111 = sst [smem:[#allocation9_spill]] %s2555_s26  ;;  %s2711_s3 = sadd.s32 4294967295, %s2559_s27   ;;  %s2559_s27 = sphi %s2696_s27, %s3125_s27   ;;  %s2555_s26 = sphi %s2694_s26, %s3127_s26   ;;  %s2551_s25 = sphi %s2692_s25, %s3129_s25   ;;  %s2547_s2 = sphi %s2690_s2, %s3128_s2  }
   0xd   : > { %s2136_s28 = sadd.s32 4294967294, %s2559_s27   ;;  %s2715_s29 = sadd.s32 1, %s2559_s27  }
   0xe   : > { %3112 = sst [smem:[#allocation10_spill]] %s2715_s29  ;;  %s487_s0 = sadd.s32 1, %s2555_s26 }
   0xf   : > { %s484_s4 = ssub.s32 %s2559_s27, %s2715_s29  ;;  %p497_p0 = scmp.ne.s32.totalorder %s2555_s26, %s2551_s25 }
  0x10   : > { %p485_p1 = scmp.eq.s32.totalorder %s484_s4, 0  ;;  %p498_p2 = scmp.eq.s32.totalorder %s2711_s3, 1 }
  0x11   : > { %p503_p3 = scmp.ne.s32.totalorder %s2551_s25, %s2547_s2  ;;  %p504_p4 = scmp.eq.s32.totalorder %s2136_s28, 1 }
  0x12   : > { %s2726_s30 = scalar_select %p485_p1, %s2555_s26, %s487_s0  }
  0x13   : > { %p2728_p5 = por %p498_p2, %p497_p0  ;;  %p2732_p6 = por %p504_p4, %p503_p3 }
  0x14   : > { %3113 = sst [smem:[#allocation11_spill]] %s2726_s30  ;;  %p2139_p7 = scmp.ge.s32.totalorder %s2559_s27, 1 }
  0x15   : > { %p591_p8 = scmp.lt.s32.totalorder %s2559_s27, 3 }
  0x17   : > { %p592_p9 = pnand %p2139_p7, %p591_p8 }
  0x18   : > { %s2141_s23 = sshll.u32 (!%p592_p9), %s2711_s3, 1  ;;  %vm663_vm0 = vcmask (!%p592_p9), 261120   ;;  %s3116_s10 = sld [smem:[#allocation19_spill]] (!%p592_p9)  ;;  %v2565_v19 = vmov (!%p592_p9), 0.0   ;;  %vm2566_vm1 = vmmov (!%p592_p9), 0   ;;  %v2455_v38 = vld [vmem:[%s3081_s7] sm:$0xff] (!%p592_p9)  }
  0x19   : > { %595 = sbr.rel (%p592_p9) target bundleno = 3078 (0xc06), region = 104  ;;  %p652_p10 = scmp.lt.s32.totalorder (!%p592_p9), %s2141_s23, 3  ;;  %2264 = vmatprep.subr.bf16.mxu0 (!%p592_p9), %v2565_v19  ;;  %2272 = vmatprep.subr.bf16.mxu1 (!%p592_p9), %v2565_v19  ;;  %v2456_v40 = vld [vmem:[%s3081_s7 + $0x8] sm:$0xff] (!%p592_p9)   ;;  %vm915_vm2 = vcmask (!%p592_p9), 60416   ;;  %v2153_v60 = vld [vmem:[%s3082_s8] ss:$0 sm:$0xff] (!%p592_p9) }
  0x1a   : > { %s3117_s30 = sld [smem:[#allocation12_spill]] (!%p592_p9)  ;;  %s3119_s28 = sld [smem:[#allocation17_spill]] (!%p592_p9)  ;;  %2268 = vmatprep.mubr.msk.bf16.mxu0 (!%p592_p9), %vm2566_vm1, %v2565_v19  ;;  %2276 = vmatprep.mubr.msk.bf16.mxu1 (!%p592_p9), %vm2566_vm1, %v2565_v19 }
  0x1b   : > { %s3101_s0 = sand.u32 (!%p592_p9), 1, %s2551_s25   ;;  %s3123_s6 = sld [smem:[#allocation18_spill]] (!%p592_p9) }
  0x1c   : > { %s2762_s4 = sshll.u32 (!%p592_p9), %s3101_s0, 1  ;;  %s2569_s0 = smov (!%p592_p9), 104  }
  0x1d   : > { %s2846_s24 = smov (!%p592_p9), 0  }
  0x1e   : > { %v2163_v0 = vld [vmem:[%s3116_s10] ss:$0 sm:$0xff] (!%p592_p9)  ;;  %s2568_s10 = smov (!%p592_p9), 120  }
  0x20   : > { %s3131_s23 = smov (!%p652_p10, %s2141_s23), 3  ;;  %v2452_v18 = vld [vmem:[%s3119_s28] sm:$0xff]   ;;  %v2454_v21 = vld [vmem:[%s3119_s28 + $0x8] sm:$0xff]  }
  0x21   : > { %s2142_s1 = sshll.u32 %s3131_s23, 3  ;;  %s3118_s23 = sld [smem:[#allocation15_spill]]  ;;  %2273 = vmatpush3.bf16.msra.mxu1 %v2452_v18  ;;  %v2149_v42 = vld [vmem:[%s3123_s6] ss:$0 sm:$0xff] }
  0x22   : > { %s655_s26 = scalar_lea.vmem %s3117_s30, %s2142_s1  ;;  %2274 = vmatprep.subr.bf16.mxu1 %v2565_v19  ;;  %s3120_s1 = sld [smem:[#allocation13_spill]] }
  0x23   : > { %v659_v1 = vld [vmem:[%s655_s26] sm:$0xff]  ;;  %v660_v2 = vld [vmem:[%s655_s26 + $0x8] sm:$0xff]  ;;  %s3121_s30 = sld [smem:[#allocation14_spill]] }
  0x24   : > { %v664_v3 = vsel %vm663_vm0, %v659_v1, 0.0  ;;  %v1028_v4 = vadd.f32 %v2163_v0, %v659_v1  ;;  %v1029_v5 = vadd.f32 %v2163_v0, %v660_v2  ;;  %v667_v6 = vsel %vm663_vm0, %v660_v2, 0.0 }
  0x25   : > { %665 = vadd.xlane.f32.xlu0 %v664_v3  ;;  %2275 = vmatpush3.bf16.msra.mxu1 %v2454_v21 }
  0x26   : > { %1030 = vst.msk [vmem:[#allocation5] sm:$0xff] %vm663_vm0, %v1028_v4  ;;  %1031 = vst.msk [vmem:[#allocation5 + $0x8] sm:$0xff] %vm663_vm0, %v1029_v5 }
  0x27   : > { %v2451_v17 = vld [vmem:[%s3118_s23] sm:$0xff]   ;;  %v2453_v20 = vld [vmem:[%s3118_s23 + $0x8] sm:$0xff]  }
  0x28   : > { %2265 = vmatpush3.bf16.msra.mxu0 %v2451_v17  ;;  %v2143_v30 = vld [vmem:[%s3120_s1] ss:$0 sm:$0xff]  ;;  %s3122_s1 = sld [smem:[#allocation16_spill]] }
  0x29   : > { %668 = vadd.xlane.f32.xlu0 %v667_v6  ;;  %2266 = vmatprep.subr.bf16.mxu0 %v2565_v19  ;;  %v2144_v34 = vld [vmem:[%s3121_s30] ss:$0 sm:$0xff]  ;;  %s2567_s30 = smov 112   ;;  %v1017_v6 = vlaneseq }
  0x2c   : > { %2267 = vmatpush3.bf16.msra.mxu0 %v2453_v20 }
  0x2d   : > { %2280 = vmatprep.subr.bf16.mxu0 %v2565_v19 }
  0x2e   : > { %v2145_v41 = vld [vmem:[%s3122_s1] ss:$0 sm:$0xff]  ;;  %s2844_s1 = scalar_lea.vmem [#allocation6], %s2762_s4 }
  0xb2   : > { %v666_v7 = vpop.xlane.xlu0 %665 }
  0xb3   : > { %v671_v8 = vmul.f32 0.03125, %v666_v7  ;;  %v1018_v7 = vand.u32 127, %v1017_v6 }
  0xb5   : > { %v673_v9 = vsub.f32 %v659_v1, %v671_v8  ;;  %vm1019_vm3 = vcmp.lt.s32.totalorder %v1018_v7, 5  ;;  %v2570_v8 = vmov -1e+30  }
  0xb6   : > { %v669_v10 = vpop.xlane.xlu0 %668 }
  0xb7   : > { %v672_v11 = vmul.f32 0.03125, %v669_v10  ;;  %v675_v12 = vmul.f32 %v673_v9, %v673_v9 }
  0xb9   : > { %v674_v13 = vsub.f32 %v660_v2, %v672_v11  ;;  %v677_v14 = vsel %vm663_vm0, %v675_v12, 0.0 }
  0xba   : > { %678 = vadd.xlane.f32.xlu1 %v677_v14 }
  0xbb   : > { %v676_v15 = vmul.f32 %v674_v13, %v674_v13 }
  0xbd   : > { %v680_v16 = vsel %vm663_vm0, %v676_v15, 0.0 }
  0xbe   : > { %681 = vadd.xlane.f32.xlu1 %v680_v16 }
 0x147   : > { %v679_v22 = vpop.xlane.xlu1 %678 }
 0x148   : > { %v683_v23 = vmul.f32 0.03125, %v679_v22 }
 0x14a   : > { %v685_v24 = vadd.f32 1e-06, %v683_v23 }
 0x14b   : > { %v682_v25 = vpop.xlane.xlu1 %681 }
 0x14c   : > { %2457 = vrsqrt.f32 %v685_v24  ;;  %v684_v26 = vmul.f32 0.03125, %v682_v25 }
 0x14e   : > { %v686_v27 = vadd.f32 1e-06, %v684_v26 }
 0x150   : > { %2459 = vrsqrt.f32 %v686_v27 }
 0x156   : > { %v2458_v28 = vpop.eup %2457 }
 0x157   : > { %v689_v29 = vmul.f32 %v2458_v28, %v673_v9  ;;  %v2820_v9 = vsel %vm1019_vm3, 0.0, %v2570_v8 }
 0x159   : > { %v697_v33 = vmul.f32 %v2143_v30, %v689_v29 }
 0x15a   : > { %v2460_v31 = vpop.eup %2459 }
 0x15b   : > { %v690_v32 = vmul.f32 %v2460_v31, %v674_v13  ;;  %v705_v36 = vadd.f32 %v2144_v34, %v697_v33 }
 0x15d   : > { %v698_v35 = vmul.f32 %v2143_v30, %v690_v32 }
 0x15f   : > { %v706_v37 = vadd.f32 %v2144_v34, %v698_v35 }
 0x161   : > { %v707_v39 = vpack.c.bf16 %v706_v37, %v705_v36 }
 0x163   : > { %2269 = vmatmul.mubr.msk.bf16.vlgmr.msra.gmra.mrb[0].mxu0 %vm663_vm0, %v707_v39  ;;  %2277 = vmatmul.mubr.msk.bf16.vlgmr.msra.gmra.mrb[0].mxu1 %vm663_vm0, %v707_v39 }
 0x164   : > { %2281 = vmatpush3.bf16.msra.mxu0 %v2455_v38  ;;  %2284 = vmatprep.mubr.msk.bf16.mxu0 %vm2566_vm1, %v2565_v19 }
 0x165   : > { %2282 = vmatprep.subr.bf16.mxu0 %v2565_v19 }
 0x168   : > { %2283 = vmatpush3.bf16.msra.mxu0 %v2456_v40 }
 0x16b   : > { %2285 = vmatmul.mubr.msk.bf16.vlgmr.msra.gmra.mrb[4].mxu0 %vm663_vm0, %v707_v39 }
 0x236   : > { %v768_v43 = vpop.f32.mrb[0].mxu0  ;;  %v835_v44 = vpop.f32.mrb[0].mxu1 }
 0x237   : > { %v769_v45 = vadd.f32 %v2145_v41, %v768_v43  ;;  %v836_v46 = vadd.f32 %v2149_v42, %v835_v44  ;;  %v2270_v47 = vpop.f32.mrb[1].mxu0  ;;  %v2278_v48 = vpop.f32.mrb[1].mxu1 }
 0x238   : > { %v771_v49 = vpop.f32.mrb[2].mxu0  ;;  %v838_v50 = vpop.f32.mrb[2].mxu1 }
 0x239   : > { %v775_v51 = vmul.f32 0.35355338, %v769_v45  ;;  %v2210_v52 = vpack.c.bf16 %v836_v46, %v836_v46  ;;  %v772_v53 = vadd.f32 %v2145_v41, %v771_v49  ;;  %v839_v54 = vadd.f32 %v2149_v42, %v838_v50  ;;  %v2271_v55 = vpop.f32.mrb[3].mxu0  ;;  %v2279_v56 = vpop.f32.mrb[3].mxu1 }
 0x23b   : > { %v2208_v57 = vpack.c.bf16 %v775_v51, %v775_v51  ;;  %925 = vst.msk [vmem:[#allocation3] sm:$0xf] %vm915_vm2, %v2210_v52  ;;  %v776_v58 = vmul.f32 0.35355338, %v772_v53  ;;  %v2211_v59 = vpack.c.bf16 %v839_v54, %v839_v54  ;;  %972 = vrot.lane.b32.xlu0 %v2210_v52, %s2567_s30  ;;  %945 = vrot.lane.b32.xlu1 %v2210_v52, %s2568_s10 }
 0x23d   : > { %916 = vst.msk [vmem:[#allocation2] sm:$0xf] %vm915_vm2, %v2208_v57  ;;  %v2209_v61 = vpack.c.bf16 %v776_v58, %v776_v58  ;;  %926 = vst.msk [vmem:[#allocation3 + $0x4] sm:$0xf] %vm915_vm2, %v2211_v59 }
 0x23e   : > { %v900_v62 = vpop.f32.mrb[4].mxu0 }
 0x23f   : > { %917 = vst.msk [vmem:[#allocation2 + $0x4] sm:$0xf] %vm915_vm2, %v2209_v61  ;;  %v901_v63 = vadd.f32 %v2153_v60, %v900_v62  ;;  %999 = vrot.lane.b32.xlu0 %v2210_v52, %s2569_s0  ;;  %947 = vrot.lane.b32.xlu1 %v2211_v59, %s2568_s10  ;;  %v2286_v0 = vpop.f32.mrb[5].mxu0 }
 0x240   : > { %v903_v1 = vpop.f32.mrb[6].mxu0 }
 0x241   : > { %v2212_v2 = vpack.c.bf16 %v901_v63, %v901_v63  ;;  %v904_v3 = vadd.f32 %v2153_v60, %v903_v1  ;;  %v2287_v4 = vpop.f32.mrb[7].mxu0 }
 0x243   : > { %934 = vst.msk [vmem:[#allocation4] sm:$0xf] %vm915_vm2, %v2212_v2  ;;  %v2213_v5 = vpack.c.bf16 %v904_v3, %v904_v3  ;;  %974 = vrot.lane.b32.xlu1 %v2211_v59, %s2567_s30  ;;  %936 = vrot.lane.b32.xlu0 %v2208_v57, %s2568_s10 }
 0x245   : > { %935 = vst.msk [vmem:[#allocation4 + $0x4] sm:$0xf] %vm915_vm2, %v2213_v5 }
 0x247   : > { %1001 = vrot.lane.b32.xlu1 %v2211_v59, %s2569_s0  ;;  %963 = vrot.lane.b32.xlu0 %v2208_v57, %s2567_s30 }
 0x24b   : > { %990 = vrot.lane.b32.xlu0 %v2208_v57, %s2569_s0  ;;  %938 = vrot.lane.b32.xlu1 %v2209_v61, %s2568_s10 }
 0x24f   : > { %965 = vrot.lane.b32.xlu1 %v2209_v61, %s2567_s30  ;;  %954 = vrot.lane.b32.xlu0 %v2212_v2, %s2568_s10 }
 0x253   : > { %992 = vrot.lane.b32.xlu1 %v2209_v61, %s2569_s0  ;;  %981 = vrot.lane.b32.xlu0 %v2212_v2, %s2567_s30 }
 0x257   : > { %1008 = vrot.lane.b32.xlu0 %v2212_v2, %s2569_s0  ;;  %956 = vrot.lane.b32.xlu1 %v2213_v5, %s2568_s10 }
 0x25b   : > { %983 = vrot.lane.b32.xlu1 %v2213_v5, %s2567_s30 }
 0x25f   : > { %1010 = vrot.lane.b32.xlu1 %v2213_v5, %s2569_s0 }
 0x2ad   : > { %v973_v10 = vpop.permute.xlu0 %972  ;;  %v946_v11 = vpop.permute.xlu1 %945 }
 0x2ae   : > { %979 = vst.msk [vmem:[#allocation3 + $0x10] sm:$0xf] %vm915_vm2, %v973_v10  ;;  %952 = vst.msk [vmem:[#allocation3 + $0x8] sm:$0xf] %vm915_vm2, %v946_v11 }
 0x2b1   : > { %v1000_v12 = vpop.permute.xlu0 %999  ;;  %v948_v13 = vpop.permute.xlu1 %947 }
 0x2b2   : > { %1006 = vst.msk [vmem:[#allocation3 + $0x18] sm:$0xf] %vm915_vm2, %v1000_v12  ;;  %953 = vst.msk [vmem:[#allocation3 + $0xc] sm:$0xf] %vm915_vm2, %v948_v13 }
 0x2b5   : > { %v975_v14 = vpop.permute.xlu1 %974  ;;  %v937_v15 = vpop.permute.xlu0 %936 }
 0x2b6   : > { %980 = vst.msk [vmem:[#allocation3 + $0x14] sm:$0xf] %vm915_vm2, %v975_v14  ;;  %943 = vst.msk [vmem:[#allocation2 + $0x8] sm:$0xf] %vm915_vm2, %v937_v15 }
 0x2b9   : > { %v1002_v16 = vpop.permute.xlu1 %1001  ;;  %v964_v17 = vpop.permute.xlu0 %963 }
 0x2ba   : > { %1007 = vst.msk [vmem:[#allocation3 + $0x1c] sm:$0xf] %vm915_vm2, %v1002_v16  ;;  %970 = vst.msk [vmem:[#allocation2 + $0x10] sm:$0xf] %vm915_vm2, %v964_v17 }
 0x2bd   : > { %v991_v18 = vpop.permute.xlu0 %990  ;;  %v939_v20 = vpop.permute.xlu1 %938 }
 0x2be   : > { %997 = vst.msk [vmem:[#allocation2 + $0x18] sm:$0xf] %vm915_vm2, %v991_v18  ;;  %944 = vst.msk [vmem:[#allocation2 + $0xc] sm:$0xf] %vm915_vm2, %v939_v20 }
 0x2c1   : > { %v966_v21 = vpop.permute.xlu1 %965  ;;  %v955_v22 = vpop.permute.xlu0 %954 }
 0x2c2   : > { %971 = vst.msk [vmem:[#allocation2 + $0x14] sm:$0xf] %vm915_vm2, %v966_v21  ;;  %961 = vst.msk [vmem:[#allocation4 + $0x8] sm:$0xf] %vm915_vm2, %v955_v22 }
 0x2c5   : > { %v993_v23 = vpop.permute.xlu1 %992  ;;  %v982_v24 = vpop.permute.xlu0 %981 }
 0x2c6   : > { %998 = vst.msk [vmem:[#allocation2 + $0x1c] sm:$0xf] %vm915_vm2, %v993_v23  ;;  %988 = vst.msk [vmem:[#allocation4 + $0x10] sm:$0xf] %vm915_vm2, %v982_v24 }
 0x2c9   : > { %v1009_v25 = vpop.permute.xlu0 %1008  ;;  %v957_v26 = vpop.permute.xlu1 %956 }
 0x2ca   : > { %1015 = vst.msk [vmem:[#allocation4 + $0x18] sm:$0xf] %vm915_vm2, %v1009_v25  ;;  %962 = vst.msk [vmem:[#allocation4 + $0xc] sm:$0xf] %vm915_vm2, %v957_v26 }
 0x2cd   : > { %v984_v27 = vpop.permute.xlu1 %983 }
 0x2ce   : > { %989 = vst.msk [vmem:[#allocation4 + $0x14] sm:$0xf] %vm915_vm2, %v984_v27 }
 0x2d1   : > { %v1011_v28 = vpop.permute.xlu1 %1010 }
 0x2d2   : > { %1016 = vst.msk [vmem:[#allocation4 + $0x1c] sm:$0xf] %vm915_vm2, %v1011_v28 }
 0x2d3 LB: >> { %v2571_v29 = vmov 0.0   ;;  %s2854_s26 = sshll.u32 %s2563_s24, 3  ;;  %vm1052_vm4 = vcmask 64512   ;;  %vm2572_vm5 = vmmov 0   ;;  %vm1172_vm6 = vcmask 1043456   ;;  %v1262_v20 = vld [vmem:[#allocation5] sm:$0xff]  ;;  %s2563_s24 = sphi %s2846_s24, %s1037_s24  }
 0x2d4   : >> { %2288 = vmatprep.subr.bf16.mxu0 %v2571_v29  ;;  %2294 = vmatprep.subr.bf16.mxu1 %v2571_v29  ;;  %s1045_s4 = scalar_lea.vmem [#allocation3], %s2854_s26  ;;  %s1041_s30 = scalar_lea.vmem [#allocation2], %s2854_s26  ;;  %v1263_v22 = vld [vmem:[#allocation5 + $0x8] sm:$0xff] }
 0x2d5   : >> { %2290 = vmatprep.mubr.msk.bf16.mxu0 %vm2572_vm5, %v2571_v29  ;;  %2296 = vmatprep.mubr.msk.bf16.mxu1 %vm2572_vm5, %v2571_v29  ;;  %v1046_v30 = vld [vmem:[%s1045_s4] sm:$0xf]  ;;  %v1047_v31 = vld [vmem:[%s1045_s4 + $0x4] sm:$0xf]  ;;  %s1049_s10 = scalar_lea.vmem [#allocation4], %s2854_s26  ;;  %s1265_s29 = sshra.s32 %s2854_s26, 3 }
 0x2d6   : >> { %v1057_v32 = vsel %vm1052_vm4, %v1046_v30, 0  ;;  %v1103_v33 = vsel %vm1052_vm4, %v1047_v31, 0  ;;  %v1042_v34 = vld [vmem:[%s1041_s30] sm:$0xf]  ;;  %v1043_v35 = vld [vmem:[%s1041_s30 + $0x4] sm:$0xf] }
 0x2d7   : >> { %2289 = vmatpush3.bf16.xpose.msra.mxu0 %v1057_v32  ;;  %2295 = vmatpush3.bf16.xpose.msra.mxu1 %v1103_v33  ;;  %s2173_s23 = sshll.u32 %s1265_s29, 2  ;;  %s1037_s24 = sadd.s32 1, %s2563_s24  }
 0x2d8   : >> { %2300 = vmatprep.subr.bf16.mxu0 %v2571_v29  ;;  %2306 = vmatprep.subr.bf16.mxu1 %v2571_v29  ;;  %s1268_s30 = scalar_lea.vmem %s3083_s9, %s2173_s23  ;;  %p1034_p11 = scmp.ge.s32.totalorder %s1037_s24, 4  }
 0x2d9   : >> { %v1050_v58 = vld [vmem:[%s1049_s10] sm:$0xf]  ;;  %v1051_v60 = vld [vmem:[%s1049_s10 + $0x4] sm:$0xf]  ;;  %vm1328_vm7 = vcmask (%p1034_p11), 1041409   ;;  %vm1331_vm8 = vcmask (%p1034_p11), 254976  }
 0x2da   : >> { %v1174_v59 = vsel %vm1172_vm6, %v1050_v58, 0  ;;  %v1220_v61 = vsel %vm1172_vm6, %v1051_v60, 0  ;;  %v1269_v1 = vld [vmem:[%s1268_s30] sm:$0xf]  ;;  %s2573_s10 = smov (%p1034_p11), 96   ;;  %v2470_v33 = vld [vmem:[%s3087_s13 + $0x8] sm:$0xff] (%p1034_p11)  }
 0x2db   : >> { %v1274_v4 = vsel %vm1172_vm6, %v1269_v1, 0  ;;  %v2469_v32 = vld [vmem:[%s3087_s13] sm:$0xff] (%p1034_p11)   ;;  %s2574_s0 = smov (%p1034_p11), 64   ;;  %s2575_s4 = smov (%p1034_p11), 32   ;;  %vm2044_vm9 = vcmask (%p1034_p11), 73728  }
 0x2dc   : > { %s3124_s26 = sand.u32 (%p1034_p11), 1, %s2551_s25   ;;  %s2577_s23 = smov (%p1034_p11), [#allocation6]  }
 0x2dd   : > { %s3033_s29 = scalar_lea.sflag (%p1034_p11), [#allocation7], %s3124_s26  ;;  %s2497_s6 = sshll.u32 (%p1034_p11), %s2577_s23, 4  ;;  %s2498_s6 = int_to_ptr.vmem [resolvable:$false] %s2497_s6 }
 0x2de   : >> { %2291 = vmatmul.mubr.msk.bf16.vlgmr.msra.gmra.mrb[0].mxu0 %vm1052_vm4, %v1042_v34  ;;  %2297 = vmatmul.mubr.msk.bf16.vlgmr.msra.gmra.mrb[0].mxu1 %vm1052_vm4, %v1043_v35 }
 0x2df   : >> { %2302 = vmatprep.mubr.msk.bf16.mxu0 %vm2572_vm5, %v2571_v29  ;;  %2308 = vmatprep.mubr.msk.bf16.mxu1 %vm2572_vm5, %v2571_v29 }
 0x2e0   : >> { %2301 = vmatpush3.bf16.msra.mxu0 %v1174_v59  ;;  %2307 = vmatpush3.bf16.msra.mxu1 %v1220_v61 }
 0x2e1   : >> { %2312 = vmatprep.subr.bf16.mxu0 %v2571_v29  ;;  %2326 = vmatprep.subr.bf16.mxu1 (%p1034_p11), %v2565_v19 }
 0x3b1   : >> { %v1093_v36 = vpop.f32.mrb[0].mxu0  ;;  %v1139_v37 = vpop.f32.mrb[0].mxu1 }
 0x3b2   : >> { %v1094_v38 = vadd.f32 %v1093_v36, %v2820_v9  ;;  %v2292_v39 = vpop.f32.mrb[1].mxu0  ;;  %v1140_v40 = vadd.f32 %v1139_v37, %v2820_v9  ;;  %v2298_v41 = vpop.f32.mrb[1].mxu1 }
 0x3b3   : >> { %v1096_v42 = vpop.f32.mrb[2].mxu0  ;;  %v1142_v43 = vpop.f32.mrb[2].mxu1 }
 0x3b4   : >> { %v2293_v44 = vpop.f32.mrb[3].mxu0  ;;  %v2299_v45 = vpop.f32.mrb[3].mxu1  ;;  %v1145_v46 = vsel %vm1052_vm4, %v1094_v38, -inf  ;;  %v1148_v47 = vsel %vm1052_vm4, %v1140_v40, -inf }
 0x3b5   : >> { %1146 = vmax.xlane.f32.xlu0 %v1145_v46  ;;  %v2178_v44 = vld [vmem:[%s3088_s14] ss:$0 sm:$0xff] (%p1034_p11) }
 0x3b9   : >> { %1149 = vmax.xlane.f32.xlu0 %v1148_v47 }
 0x442   : >> { %v1147_v48 = vpop.xlane.xlu0 %1146 }
 0x443   : >> { %v1151_v49 = vsub.f32 %v1094_v38, %v1147_v48 }
 0x445   : >> { %v1153_v50 = vmul.f32 1.442695, %v1151_v49  ;;  %v2175_v49 = vld [vmem:[%s3085_s11] ss:$0 sm:$0xff] (%p1034_p11) }
 0x446   : >> { %v1150_v51 = vpop.xlane.xlu0 %1149 }
 0x447   : >> { %2461 = vpow2.f32 %v1153_v50  ;;  %v1152_v52 = vsub.f32 %v1140_v40, %v1150_v51 }
 0x449   : >> { %v1155_v53 = vmul.f32 1.442695, %v1152_v52  ;;  %v2176_v52 = vld [vmem:[%s3086_s12] ss:$0 sm:$0xff] (%p1034_p11) }
 0x44b   : >> { %2463 = vpow2.f32 %v1155_v53 }
 0x451   : >> { %v2462_v54 = vpop.eup %2461 }
 0x452   : >> { %v1157_v55 = vsel %vm1052_vm4, %v2462_v54, 0.0 }
 0x453   : >> { %1158 = vadd.xlane.f32.xlu1 %v1157_v55 }
 0x455   : >> { %v2464_v56 = vpop.eup %2463 }
 0x456   : >> { %v1160_v57 = vsel %vm1052_vm4, %v2464_v56, 0.0 }
 0x457   : >> { %1161 = vadd.xlane.f32.xlu1 %v1160_v57 }
 0x468   : > { %1532 = vrot.lane.b32.xlu1 (%p1034_p11), %v2469_v32, %s2573_s10 }
 0x46c   : > { %1534 = vrot.lane.b32.xlu1 (%p1034_p11), %v2470_v33, %s2573_s10 }
 0x470   : > { %1654 = vrot.lane.b32.xlu1 (%p1034_p11), %v2470_v33, %s2574_s0 }
 0x474   : > { %1772 = vrot.lane.b32.xlu1 (%p1034_p11), %v2469_v32, %s2575_s4 }
 0x478   : > { %1774 = vrot.lane.b32.xlu1 (%p1034_p11), %v2470_v33, %s2575_s4 }
 0x47c   : > { %1538 = vrot.lane.b32.xlu1 (%p1034_p11), %v2178_v44, %s2573_s10  ;;  %s2217_s10 = sshll.u32 (%p1034_p11), %s2711_s3, 5 }
 0x47d   : > { %s3025_s24 = scalar_lea.hbm (%p1034_p11), %s3095_s21, %s2217_s10  ;;  %s2499_s10 = scalar_lea.vmem (%p1034_p11), %s2498_s6, 64 }
 0x480   : > { %1658 = vrot.lane.b32.xlu1 (%p1034_p11), %v2178_v44, %s2574_s0 }
 0x484   : > { %1778 = vrot.lane.b32.xlu1 (%p1034_p11), %v2178_v44, %s2575_s4 }
 0x4e0   : >> { %v1159_v62 = vpop.xlane.xlu1 %1158 }
 0x4e1   : >> { %2465 = vrcp.f32 %v1159_v62 }
 0x4e4   : >> { %v1162_v63 = vpop.xlane.xlu1 %1161 }
 0x4e5   : >> { %2467 = vrcp.f32 %v1162_v63 }
 0x4e8   : > { %v1533_v63 = vpop.permute.xlu1 (%p1034_p11), %1532 }
 0x4eb   : >> { %v2466_v0 = vpop.eup %2465 }
 0x4ec   : >> { %v1165_v2 = vmul.f32 %v2466_v0, %v2462_v54 }
 0x4ee   : >> { %v1167_v3 = vpack.c.bf16 %v1165_v2, %v1165_v2  ;;  %v1535_v2 = vpop.permute.xlu1 (%p1034_p11), %1534 }
 0x4ef   : >> { %v2468_v5 = vpop.eup %2467 }
 0x4f0   : >> { %v1166_v7 = vmul.f32 %v2468_v5, %v2464_v56  ;;  %2303 = vmatmul.mubr.msk.bf16.vlgmr.msra.gmra.mrb[4].mxu0 %vm1052_vm4, %v1167_v3 }
 0x4f1   : >> { %2313 = vmatpush3.bf16.msra.mxu0 %v1274_v4  ;;  %2314 = vmatprep.mubr.msk.bf16.mxu0 %vm2572_vm5, %v2571_v29 }
 0x4f2   : >> { %v1168_v8 = vpack.c.bf16 %v1166_v7, %v1166_v7  ;;  %2318 = vmatprep.subr.bf16.mxu0 (%p1034_p11), %v2565_v19  ;;  %v1655_v4 = vpop.permute.xlu1 (%p1034_p11), %1654 }
 0x4f4   : >> { %2309 = vmatmul.mubr.msk.bf16.vlgmr.msra.gmra.mrb[4].mxu1 %vm1052_vm4, %v1168_v8  ;;  %v2471_v8 = vld [vmem:[%s3089_s15] sm:$0xff] (%p1034_p11)  }
 0x4f5   : > { %2330 = vmatprep.mubr.msk.bf16.mxu1 (%p1034_p11), %vm2566_vm1, %v2565_v19  ;;  %2327 = vmatpush3.bf16.msra.mxu1 (%p1034_p11), %v2471_v8 }
 0x4f6   : > { %v1773_v5 = vpop.permute.xlu1 (%p1034_p11), %1772  ;;  %2328 = vmatprep.subr.bf16.mxu1 (%p1034_p11), %v2565_v19 }
 0x4fa   : > { %v1775_v7 = vpop.permute.xlu1 (%p1034_p11), %1774 }
 0x5c3   : >> { %v1210_v10 = vpop.f32.mrb[4].mxu0 }
 0x5c4   : >> { %v2304_v11 = vpop.f32.mrb[5].mxu0 }
 0x5c5   : >> { %v1213_v12 = vpop.f32.mrb[6].mxu0 }
 0x5c6   : >> { %v2305_v13 = vpop.f32.mrb[7].mxu0 }
 0x5c7   : >> { %v1256_v14 = vpop.f32.mrb[4].mxu1 }
 0x5c8   : >> { %v1264_v15 = vpack.c.bf16 %v1256_v14, %v1210_v10  ;;  %v2310_v16 = vpop.f32.mrb[5].mxu1  ;;  %v2472_v10 = vld [vmem:[%s3089_s15 + $0x8] sm:$0xff] (%p1034_p11)  }
 0x5c9   : >> { %v1259_v17 = vpop.f32.mrb[6].mxu1  ;;  %2329 = vmatpush3.bf16.msra.mxu1 (%p1034_p11), %v2472_v10 }
 0x5ca   : >> { %v2311_v18 = vpop.f32.mrb[7].mxu1  ;;  %2315 = vmatmul.mubr.msk.bf16.vlgmr.msra.gmra.mrb[8].mxu0 %vm1052_vm4, %v1264_v15  ;;  %2342 = vmatprep.subr.bf16.mxu1 (%p1034_p11), %v2565_v19  ;;  %v1539_v17 = vpop.permute.xlu1 (%p1034_p11), %1538 }
 0x5cb   : > { %2322 = vmatprep.mubr.msk.bf16.mxu0 (%p1034_p11), %vm2566_vm1, %v2565_v19  ;;  %2319 = vmatpush3.bf16.msra.mxu0 (%p1034_p11), %v2469_v32 }
 0x5cc   : > { %2320 = vmatprep.subr.bf16.mxu0 (%p1034_p11), %v2565_v19 }
 0x5cf   : > { %2321 = vmatpush3.bf16.msra.mxu0 (%p1034_p11), %v2470_v33 }
 0x5d0   : > { %2334 = vmatprep.subr.bf16.mxu0 (%p1034_p11), %v2565_v19 }
 0x69c   : > { %1036 = sbr.rel (!%p1034_p11) target bundleno = 723 (0x2d3), region = 159 }
 0x69d   : >> { %v1310_v21 = vpop.f32.mrb[8].mxu0 }
 0x69e   : >> { %v1317_v23 = vadd.f32 %v1310_v21, %v1262_v20  ;;  %v2316_v24 = vpop.f32.mrb[9].mxu0 }
 0x69f   : >> { %v1313_v25 = vpop.f32.mrb[10].mxu0 }
 0x6a0   : >> { %1319 = vst.msk [vmem:[#allocation5] sm:$0xff] %vm663_vm0, %v1317_v23  ;;  %v1318_v26 = vadd.f32 %v1313_v25, %v1263_v22  ;;  %v2317_v27 = vpop.f32.mrb[11].mxu0  ;;  %v1659_v25 = vpop.permute.xlu1 (%p1034_p11), %1658 }
 0x6a2   : >> { %1320 = vst.msk [vmem:[#allocation5 + $0x8] sm:$0xff] %vm663_vm0, %v1318_v26 }
 0x6a7   : > { %v2897_v28 = vld [vmem:[#allocation5] sm:$0xff] }
 0x6a9   : > { %v2899_v29 = vld [vmem:[#allocation5 + $0x8] sm:$0xff] }
 0x6aa   : > { %v1327_v30 = vrot.slane %v2899_v29, 7 }
 0x6ac   : > { %v1329_v9 = vsel %vm1328_vm7, %v1327_v30, %v2897_v28 }
 0x6ad   : > { %v1332_v31 = vsel %vm1331_vm8, %v1329_v9, 0.0 }
 0x6ae   : > { %1333 = vadd.xlane.f32.xlu0 %v1332_v31 }
 0x73b   : > { %v1334_v34 = vpop.xlane.xlu0 %1333 }
 0x73c   : > { %v1335_v35 = vmul.f32 0.03125, %v1334_v34 }
 0x73e   : > { %v1337_v36 = vrot.slane %v1335_v35, 1  ;;  %v1340_v37 = vsub.f32 %v2897_v28, %v1335_v35 }
 0x740   : > { %v1341_v38 = vsub.f32 %v2899_v29, %v1337_v36  ;;  %v1342_v40 = vmul.f32 %v1340_v37, %v1340_v37 }
 0x742   : > { %v1343_v39 = vmul.f32 %v1341_v38, %v1341_v38 }
 0x744   : > { %v1346_v41 = vrot.slane %v1343_v39, 7  ;;  %v1779_v39 = vpop.permute.xlu1 %1778 }
 0x746   : > { %v1347_v42 = vsel %vm1328_vm7, %v1346_v41, %v1342_v40  ;;  %v2474_v41 = vld [vmem:[%s3089_s15 + $0x18] sm:$0xff]  }
 0x747   : > { %v1349_v43 = vsel %vm1331_vm8, %v1347_v42, 0.0 }
 0x748   : > { %1350 = vadd.xlane.f32.xlu0 %v1349_v43 }
 0x75e   : > { %1652 = vrot.lane.b32.xlu0 %v2469_v32, %s2574_s0  ;;  %s2061_s0 = sshll.u32 %s2844_s1, 4  ;;  %s3027_s0 = int_to_ptr.vmem [resolvable:$true] %s2061_s0 }
 0x75f   : > { %s2493_s3 = scalar_lea.vmem %s3027_s0, 32  ;;  %p2500_p1 = scmp.lt.s32.totalorder %s3027_s0, %s2498_s6 }
 0x760   : > { %p2494_p12 = scmp.ne.s32.totalorder %s3027_s0, %s2493_s3  ;;  %p2501_p2 = scmp.lt.s32.totalorder %s2499_s10, %s2493_s3 }
 0x762   : > { %p2495_p13 = pnand %p2494_p12, %p2728_p5  ;;  %p2502_p3 = por %p2501_p2, %p2500_p1 }
 0x764   : > { %p2496_p0 = pneg %p2495_p13 }
 0x766   : > { %p2503_p4 = pnand %p2502_p3, %p2496_p0 }
 0x7d5   : > { %v1351_v45 = vpop.xlane.xlu0 %1350 }
 0x7d6   : > { %v1352_v46 = vmul.f32 0.03125, %v1351_v45 }
 0x7d8   : > { %v1353_v47 = vadd.f32 1e-06, %v1352_v46 }
 0x7d9   : > { %v1653_v3 = vpop.permute.xlu0 %1652 }
 0x7da   : > { %2481 = vrsqrt.f32 %v1353_v47 }
 0x7e4   : > { %v2482_v48 = vpop.eup %2481 }
 0x7e5   : > { %v1356_v50 = vrot.slane %v2482_v48, 1  ;;  %v1359_v51 = vmul.f32 %v2482_v48, %v1340_v37  ;;  %v2473_v37 = vld [vmem:[%s3089_s15 + $0x10] sm:$0xff]  }
 0x7e7   : > { %v1360_v53 = vmul.f32 %v1356_v50, %v1341_v38  ;;  %v1367_v54 = vmul.f32 %v2175_v49, %v1359_v51  ;;  %v2475_v51 = vld [vmem:[%s3089_s15 + $0x20] sm:$0xff]  }
 0x7e9   : > { %v1368_v55 = vmul.f32 %v2175_v49, %v1360_v53  ;;  %v1375_v56 = vadd.f32 %v2176_v52, %v1367_v54  ;;  %v2476_v54 = vld [vmem:[%s3089_s15 + $0x28] sm:$0xff]  }
 0x7eb   : > { %v1376_v57 = vadd.f32 %v2176_v52, %v1368_v55  ;;  %v1377_v58 = vpack.c.bf16 %v1375_v56, %v1375_v56 }
 0x7ed   : > { %v1378_v59 = vpack.c.bf16 %v1376_v57, %v1376_v57  ;;  %v1401_v61 = vunpack.c.l.b16 %v1377_v58  ;;  %v2477_v58 = vld [vmem:[%s3089_s15 + $0x30] sm:$0xff]  }
 0x7ef   : > { %v1402_v60 = vunpack.c.l.b16 %v1378_v59 }
 0x7f1   : > { %v1403_v62 = vrot.slane %v1402_v60, 7 }
 0x7f3   : > { %v1404_v0 = vsel %vm1328_vm7, %v1403_v62, %v1401_v61  ;;  %v2478_v61 = vld [vmem:[%s3089_s15 + $0x38] sm:$0xff]  }
 0x7f4   : > { %v1405_v1 = vpack.c.b16 %v1404_v0, %v1404_v0 }
 0x7f6   : > { %2323 = vmatmul.mubr.msk.bf16.vlgmr.msra.gmra.mrb[0].mxu0 %vm663_vm0, %v1405_v1 }
 0x7f7   : > { %2335 = vmatpush3.bf16.msra.mxu0 %v1533_v63  ;;  %2338 = vmatprep.mubr.msk.bf16.mxu0 %vm2566_vm1, %v2565_v19 }
 0x7f8   : > { %2336 = vmatprep.subr.bf16.mxu0 %v2565_v19 }
 0x7fb   : > { %2337 = vmatpush3.bf16.msra.mxu0 %v1535_v2  ;;  %v2177_v2 = vld [vmem:[%s3090_s16] ss:$0 sm:$0xff] }
 0x7fc   : > { %2350 = vmatprep.subr.bf16.mxu0 %v2565_v19  ;;  %v1387_v10 = vadd.f32 %v2177_v2, %v2899_v29 }
 0x7fe   : > { %2339 = vmatmul.mubr.msk.bf16.vlgmr.msra.gmra.mrb[4].mxu0 %vm663_vm0, %v1405_v1 }
 0x7ff   : > { %2351 = vmatpush3.bf16.msra.mxu0 %v1653_v3  ;;  %2354 = vmatprep.mubr.msk.bf16.mxu0 %vm2566_vm1, %v2565_v19 }
 0x800   : > { %2352 = vmatprep.subr.bf16.mxu0 %v2565_v19 }
 0x803   : > { %2353 = vmatpush3.bf16.msra.mxu0 %v1655_v4 }
 0x804   : > { %2366 = vmatprep.subr.bf16.mxu0 %v2565_v19 }
 0x806   : > { %2355 = vmatmul.mubr.msk.bf16.vlgmr.msra.gmra.mrb[8].mxu0 %vm663_vm0, %v1405_v1 }
 0x807   : > { %2367 = vmatpush3.bf16.msra.mxu0 %v1773_v5  ;;  %2370 = vmatprep.mubr.msk.bf16.mxu0 %vm2566_vm1, %v2565_v19 }
 0x808   : > { %2368 = vmatprep.subr.bf16.mxu0 %v2565_v19 }
 0x80b   : > { %2369 = vmatpush3.bf16.msra.mxu0 %v1775_v7  ;;  %v1386_v7 = vadd.f32 %v2177_v2, %v2897_v28 }
 0x80c   : > { %2382 = vmatprep.subr.bf16.mxu0 %v2565_v19 }
 0x80e   : > { %2371 = vmatmul.mubr.msk.bf16.vlgmr.msra.gmra.mrb[12].mxu0 %vm663_vm0, %v1405_v1 }
 0x80f   : > { %2386 = vmatprep.mubr.msk.bf16.mxu0 %vm2566_vm1, %v2565_v19 }
 0x8c9   : > { %v1455_v11 = vpop.f32.mrb[0].mxu0 }
 0x8ca   : > { %v1456_v12 = vadd.f32 %v2178_v44, %v1455_v11  ;;  %v2324_v13 = vpop.f32.mrb[1].mxu0 }
 0x8cb   : > { %v1458_v14 = vpop.f32.mrb[2].mxu0 }
 0x8cc   : > { %v1462_v15 = vmul.f32 0.70710677, %v1456_v12  ;;  %v2325_v16 = vpop.f32.mrb[3].mxu0  ;;  %v1461_v27 = vmul.f32 0.5, %v1456_v12 }
 0x8ce   : > { %2483 = verf.f32 %v1462_v15 }
 0x8d1   : > { %v1575_v18 = vpop.f32.mrb[4].mxu0 }
 0x8d2   : > { %v1576_v20 = vadd.f32 %v1575_v18, %v1539_v17  ;;  %v2340_v21 = vpop.f32.mrb[5].mxu0 }
 0x8d3   : > { %v1578_v22 = vpop.f32.mrb[6].mxu0 }
 0x8d4   : > { %v1582_v23 = vmul.f32 0.70710677, %v1576_v20  ;;  %v2341_v24 = vpop.f32.mrb[7].mxu0  ;;  %v1581_v42 = vmul.f32 0.5, %v1576_v20 }
 0x8d6   : > { %2485 = verf.f32 %v1582_v23 }
 0x8d8   : > { %v2484_v26 = vpop.eup %2483 }
 0x8d9   : > { %v1464_v30 = vadd.f32 1.0, %v2484_v26  ;;  %v1695_v9 = vpop.f32.mrb[8].mxu0 }
 0x8da   : > { %v1696_v31 = vadd.f32 %v1695_v9, %v1659_v25  ;;  %v2356_v32 = vpop.f32.mrb[9].mxu0 }
 0x8db   : > { %v1698_v33 = vpop.f32.mrb[10].mxu0  ;;  %v1465_v34 = vmul.f32 %v1464_v30, %v1461_v27 }
 0x8dc   : > { %v1702_v35 = vmul.f32 0.70710677, %v1696_v31  ;;  %v2357_v36 = vpop.f32.mrb[11].mxu0  ;;  %v1701_v55 = vmul.f32 0.5, %v1696_v31 }
 0x8dd   : > { %v1466_v38 = vpack.c.bf16 %v1465_v34, %v1465_v34 }
 0x8de   : > { %2487 = verf.f32 %v1702_v35 }
 0x8df   : > { %2331 = vmatmul.mubr.msk.bf16.vlgmr.msra.gmra.mrb[0].mxu1 %vm663_vm0, %v1466_v38 }
 0x8e0   : > { %v2486_v40 = vpop.eup %2485  ;;  %2343 = vmatpush3.bf16.msra.mxu1 %v2473_v37  ;;  %2346 = vmatprep.mubr.msk.bf16.mxu1 %vm2566_vm1, %v2565_v19 }
 0x8e1   : > { %v1584_v43 = vadd.f32 1.0, %v2486_v40  ;;  %v1815_v44 = vpop.f32.mrb[12].mxu0  ;;  %2344 = vmatprep.subr.bf16.mxu1 %v2565_v19 }
 0x8e2   : > { %v1816_v45 = vadd.f32 %v1815_v44, %v1779_v39  ;;  %v2372_v46 = vpop.f32.mrb[13].mxu0 }
 0x8e3   : > { %v1585_v47 = vmul.f32 %v1584_v43, %v1581_v42  ;;  %v1818_v48 = vpop.f32.mrb[14].mxu0 }
 0x8e4   : > { %v1822_v49 = vmul.f32 0.70710677, %v1816_v45  ;;  %2345 = vmatpush3.bf16.msra.mxu1 %v2474_v41  ;;  %v2373_v50 = vpop.f32.mrb[15].mxu0  ;;  %v1821_v62 = vmul.f32 0.5, %v1816_v45  ;;  %v2479_v48 = vld [vmem:[%s3093_s19] sm:$0xff]  }
 0x8e5   : > { %v1586_v52 = vpack.c.bf16 %v1585_v47, %v1585_v47  ;;  %2358 = vmatprep.subr.bf16.mxu1 %v2565_v19  ;;  %2383 = vmatpush3.bf16.msra.mxu0 %v2479_v48 }
 0x8e6   : > { %2489 = verf.f32 %v1822_v49  ;;  %v2480_v49 = vld [vmem:[%s3093_s19 + $0x8] sm:$0xff]   ;;  %2384 = vmatprep.subr.bf16.mxu0 %v2565_v19 }
 0x8e7   : > { %2347 = vmatmul.mubr.msk.bf16.vlgmr.msra.gmra.mrb[4].mxu1 %vm663_vm0, %v1586_v52 }
 0x8e8   : > { %v2488_v53 = vpop.eup %2487  ;;  %2359 = vmatpush3.bf16.msra.mxu1 %v2475_v51  ;;  %2362 = vmatprep.mubr.msk.bf16.mxu1 %vm2566_vm1, %v2565_v19 }
 0x8e9   : > { %v1704_v56 = vadd.f32 1.0, %v2488_v53  ;;  %2360 = vmatprep.subr.bf16.mxu1 %v2565_v19  ;;  %2385 = vmatpush3.bf16.msra.mxu0 %v2480_v49 }
 0x8eb   : > { %v1705_v57 = vmul.f32 %v1704_v56, %v1701_v55 }
 0x8ec   : > { %2361 = vmatpush3.bf16.msra.mxu1 %v2476_v54  ;;  %v2197_v54 = vld [vmem:[%s3091_s17] ss:$0 sm:$0xff] }
 0x8ed   : > { %v1706_v59 = vpack.c.bf16 %v1705_v57, %v1705_v57  ;;  %2374 = vmatprep.subr.bf16.mxu1 %v2565_v19  ;;  %v2198_v57 = vld [vmem:[%s3092_s18] ss:$0 sm:$0xff] }
 0x8ef   : > { %2363 = vmatmul.mubr.msk.bf16.vlgmr.msra.gmra.mrb[8].mxu1 %vm663_vm0, %v1706_v59 }
 0x8f0   : > { %v2490_v60 = vpop.eup %2489  ;;  %2375 = vmatpush3.bf16.msra.mxu1 %v2477_v58  ;;  %2378 = vmatprep.mubr.msk.bf16.mxu1 %vm2566_vm1, %v2565_v19 }
 0x8f1   : > { %v1824_v63 = vadd.f32 1.0, %v2490_v60  ;;  %2376 = vmatprep.subr.bf16.mxu1 %v2565_v19 }
 0x8f3   : > { %v1825_v0 = vmul.f32 %v1824_v63, %v1821_v62 }
 0x8f4   : > { %2377 = vmatpush3.bf16.msra.mxu1 %v2478_v61 }
 0x8f5   : > { %v1826_v1 = vpack.c.bf16 %v1825_v0, %v1825_v0 }
 0x8f7   : > { %2379 = vmatmul.mubr.msk.bf16.vlgmr.msra.gmra.mrb[12].mxu1 %vm663_vm0, %v1826_v1 }
 0x9b2   : > { %v1520_v3 = vpop.f32.mrb[0].mxu1 }
 0x9b3   : > { %v2332_v4 = vpop.f32.mrb[1].mxu1  ;;  %v1527_v11 = vrot.slane %v1520_v3, 1  ;;  %v1530_v12 = vadd.f32 %v1520_v3, %v1386_v7 }
 0x9b4   : > { %v1523_v5 = vpop.f32.mrb[2].mxu1 }
 0x9b5   : > { %v2333_v8 = vpop.f32.mrb[3].mxu1  ;;  %v1531_v14 = vadd.f32 %v1527_v11, %v1387_v10  ;;  %v2576_v5 = vmov 1966171168   ;;  %v2024_v10 = vshrl.u32 %v1017_v6, 7  ;;  %v2199_v11 = vld [vmem:[%s3094_s20] ss:$0 sm:$0xff] }
 0x9b6   : > { %v2021_v7 = vunpack.c.l.s4 %v2576_v5 }
 0x9b8   : > { %v2022_v8 = vunpack.c.0.s8 %v2021_v7 }
 0x9ba   : > { %v1640_v13 = vpop.f32.mrb[4].mxu1 }
 0x9bb   : > { %v1647_v15 = vrot.slane %v1640_v13, 1  ;;  %v1650_v16 = vadd.f32 %v1640_v13, %v1530_v12  ;;  %v2348_v17 = vpop.f32.mrb[5].mxu1  ;;  %v2025_v12 = vsub.s32 %v2022_v8, %v2024_v10 }
 0x9bc   : > { %v1643_v18 = vpop.f32.mrb[6].mxu1 }
 0x9bd   : > { %v1651_v20 = vadd.f32 %v1647_v15, %v1531_v14  ;;  %v2349_v21 = vpop.f32.mrb[7].mxu1 }
 0x9c2   : > { %v1760_v22 = vpop.f32.mrb[8].mxu1 }
 0x9c3   : > { %v1767_v23 = vrot.slane %v1760_v22, 1  ;;  %v1770_v24 = vadd.f32 %v1760_v22, %v1650_v16  ;;  %v2364_v25 = vpop.f32.mrb[9].mxu1 }
 0x9c4   : > { %v1763_v26 = vpop.f32.mrb[10].mxu1 }
 0x9c5   : > { %v1771_v27 = vadd.f32 %v1767_v23, %v1651_v20  ;;  %v2365_v28 = vpop.f32.mrb[11].mxu1 }
 0x9ca   : > { %v1880_v30 = vpop.f32.mrb[12].mxu1 }
 0x9cb   : > { %v1887_v9 = vrot.slane %v1880_v30, 1  ;;  %v1890_v29 = vadd.f32 %v1880_v30, %v1770_v24  ;;  %v2380_v31 = vpop.f32.mrb[13].mxu1 }
 0x9cc   : > { %v1883_v32 = vpop.f32.mrb[14].mxu1 }
 0x9cd   : > { %v1891_v33 = vadd.f32 %v1887_v9, %v1771_v27  ;;  %v2381_v34 = vpop.f32.mrb[15].mxu1 }
 0x9cf   : > { %v1896_v35 = vrot.slane %v1891_v33, 7 }
 0x9d1   : > { %v1897_v36 = vsel %vm1328_vm7, %v1896_v35, %v1890_v29 }
 0x9d2   : > { %v1899_v37 = vsel %vm1331_vm8, %v1897_v36, 0.0 }
 0x9d3   : > { %1900 = vadd.xlane.f32.xlu0 %v1899_v37 }
 0xa60   : > { %v1901_v38 = vpop.xlane.xlu0 %1900 }
 0xa61   : > { %v1902_v39 = vmul.f32 0.03125, %v1901_v38 }
 0xa63   : > { %v1904_v40 = vrot.slane %v1902_v39, 1  ;;  %v1907_v41 = vsub.f32 %v1890_v29, %v1902_v39 }
 0xa65   : > { %v1908_v42 = vsub.f32 %v1891_v33, %v1904_v40  ;;  %v1909_v44 = vmul.f32 %v1907_v41, %v1907_v41 }
 0xa67   : > { %v1910_v43 = vmul.f32 %v1908_v42, %v1908_v42 }
 0xa69   : > { %v1913_v45 = vrot.slane %v1910_v43, 7 }
 0xa6b   : > { %v1914_v46 = vsel %vm1328_vm7, %v1913_v45, %v1909_v44 }
 0xa6c   : > { %v1916_v47 = vsel %vm1331_vm8, %v1914_v46, 0.0 }
 0xa6d   : > { %1917 = vadd.xlane.f32.xlu1 %v1916_v47 }
 0xafa   : > { %v1918_v50 = vpop.xlane.xlu1 %1917 }
 0xafb   : > { %v1919_v51 = vmul.f32 0.03125, %v1918_v50 }
 0xafd   : > { %v1920_v52 = vadd.f32 1e-06, %v1919_v51 }
 0xaff   : > { %2491 = vrsqrt.f32 %v1920_v52 }
 0xb09   : > { %v2492_v53 = vpop.eup %2491 }
 0xb0a   : > { %v1923_v55 = vrot.slane %v2492_v53, 1  ;;  %v1926_v56 = vmul.f32 %v2492_v53, %v1907_v41 }
 0xb0c   : > { %v1927_v58 = vmul.f32 %v1923_v55, %v1908_v42  ;;  %v1934_v59 = vmul.f32 %v2197_v54, %v1926_v56 }
 0xb0e   : > { %v1935_v60 = vmul.f32 %v2197_v54, %v1927_v58  ;;  %v1942_v19 = vadd.f32 %v2198_v57, %v1934_v59 }
 0xb10   : > { %v1943_v61 = vadd.f32 %v2198_v57, %v1935_v60  ;;  %v1944_v62 = vpack.c.bf16 %v1942_v19, %v1942_v19 }
 0xb12   : > { %v1945_v63 = vpack.c.bf16 %v1943_v61, %v1943_v61  ;;  %v1959_v1 = vunpack.c.l.b16 %v1944_v62 }
 0xb14   : > { %v1960_v0 = vunpack.c.l.b16 %v1945_v63 }
 0xb16   : > { %v1961_v2 = vrot.slane %v1960_v0, 7 }
 0xb18   : > { %v1962_v3 = vsel %vm1328_vm7, %v1961_v2, %v1959_v1 }
 0xb19   : > { %v1963_v4 = vpack.c.b16 %v1962_v3, %v1962_v3 }
 0xb1b   : > { %2387 = vmatmul.mubr.msk.bf16.vlgmr.msra.gmra.mrb[16].mxu0 %vm663_vm0, %v1963_v4 }
 0xbee   : > { %v2013_v13 = vpop.f32.mrb[16].mxu0 }
 0xbef   : > { %v2014_v14 = vadd.f32 %v2199_v11, %v2013_v13  ;;  %v2388_v15 = vpop.f32.mrb[17].mxu0 }
 0xbf0   : > { %v2016_v16 = vpop.f32.mrb[18].mxu0 }
 0xbf1   : > { %v2026_v17 = vrot.slane %v2014_v14, %v2025_v12  ;;  %v2389_v18 = vpop.f32.mrb[19].mxu0 }
 0xbf3   : > { %v2027_v20 = vcombine.high %v2026_v17, %v2026_v17  ;;  %v2034_v6 = vrot.slane %v2026_v17, %v2025_v12 }
 0xbf5   : > { %v2041_v21 = vrot.slane %v2027_v20, %v2025_v12  ;;  %2045 = vst.msk [vmem:[%s2844_s1] sm:$0x1] %vm2044_vm9, %v2034_v6 }
 0xbf7   : > { %2046 = vst.msk [vmem:[%s2844_s1 + $0x1] sm:$0x1] %vm2044_vm9, %v2041_v21 }
 0xbf8   : > { %2506 = shalt.err (!%p2503_p4)
}
 0xbf9   : > { %s2507_s1 = scalar_lea.hbm %s3025_s24, 32  ;;  %s2511_s26 = scalar_lea.hbm %s3095_s21, 64 }
 0xbfa   : > { %p2508_p7 = scmp.ne.s32.totalorder %s3025_s24, %s2507_s1  ;;  %p2512_p10 = scmp.lt.u32.totalorder %s3025_s24, %s3095_s21 }
 0xbfb   : > { %p2513_p11 = scmp.lt.u32.totalorder %s2511_s26, %s2507_s1  ;;  %p2515_p13 = scmp.lt.u32.totalorder %s2507_s1, %s3025_s24 }
 0xbfc   : > { %p2509_p8 = pnand %p2508_p7, %p2728_p5 }
 0xbfd   : > { %p2514_p12 = por %p2513_p11, %p2512_p10 }
 0xbfe   : > { %p2510_p9 = pneg %p2509_p8 }
 0xbff   : > { %p2516_p0 = por %p2515_p13, %p2514_p12 }
 0xc01   : > { %p2517_p1 = pnand %p2516_p0, %p2510_p9 }
 0xc03   : > { %2520 = shalt.err (!%p2517_p1)
}
 0xc04   : > { %s2578_s3 = smov 16   ;;  %s2579_s10 = smov 1  }
 0xc05   : > { %2390 = dma.vmem_to_hbm [thread:$0]  (%p2728_p5), %s3027_s0, 32, %s3025_s24, %s3033_s29, %s2578_s3, %s2578_s3, %s2579_s10  }
 0xc06 PF: > { %p2396_p2 = scmp.ge.s32.totalorder %s2559_s27, 2  ;;  %s2076_s4 = sand.u32 1, %s2547_s2  }
 0xc07   : > { %s2077_s1 = scalar_lea.sflag [#allocation7], %s2076_s4 }
 0xc08   : > { %p2393_p3 = pnand %p2396_p2, %p2732_p6 }
 0xc0a   : > { %2542 = dma.done.wait (!%p2393_p3), %s2077_s1, 32  }
 0xc0b   : > { %2544 = vsyncadd (!%p2393_p3), %s2077_s1, 4294967264  ;;  %s3125_s27 = sld [smem:[#allocation10_spill]]  ;;  %s3126_s30 = sld [smem:[#allocation9_spill]] }
 0xc0c   : > { %s3127_s26 = sld [smem:[#allocation11_spill]]  ;;  %s3128_s2 = smov %s2551_s25 }
 0xc11   : > { %p31_p4 = scmp.ge.s32.totalorder %s3125_s27, 4   ;;  %s3129_s25 = smov %s3126_s30 }
 0xc13   :  { %33 = sbr.rel (!%p31_p4) target bundleno = 12 (0xc), region = 170 }
 0xc1a   :  { %2082 = vsyncpa [#allocation7], 1 }
 0xc1b   :  { %2084 = vsyncpa [#allocation7 + $0x1], 1 }

// kernel: vit_forward.4
= control target key start
LH: loop header
LB: loop body
LE: loop exit
PB: predicated region body
PF: predicated region fallthrough
CT: control target
= control target key end

     0   :  { %s2327_s27 = smov 0   ;;  %s2595_s0 = inlined_call_operand.vmem [shape: f32[4,8,32], index: 0, kind: input, shape index: {}]   ;;  %s2596_s1 = inlined_call_operand.vmem [shape: f32[1,8,32], index: 1, kind: input, shape index: {}]   ;;  %s2597_s2 = inlined_call_operand.vmem [shape: f32[1,32], index: 2, kind: input, shape index: {}]   ;;  %s2598_s3 = inlined_call_operand.vmem [shape: f32[1,32], index: 3, kind: input, shape index: {}]   ;;  %s2599_s4 = inlined_call_operand.vmem [shape: bf16[32,32], index: 4, kind: input, shape index: {}]   ;;  %s2600_s5 = inlined_call_operand.vmem [shape: f32[1,32], index: 5, kind: input, shape index: {}]   ;;  %s2601_s6 = inlined_call_operand.vmem [shape: bf16[32,32], index: 6, kind: input, shape index: {}]   ;;  %s2602_s7 = inlined_call_operand.vmem [shape: f32[1,32], index: 7, kind: input, shape index: {}]   ;;  %s2603_s8 = inlined_call_operand.vmem [shape: bf16[32,32], index: 8, kind: input, shape index: {}]   ;;  %s2604_s9 = inlined_call_operand.vmem [shape: f32[1,32], index: 9, kind: input, shape index: {}]   ;;  %s2605_s10 = inlined_call_operand.vmem [shape: bf16[32,32], index: 10, kind: input, shape index: {}]   ;;  %s2606_s11 = inlined_call_operand.vmem [shape: f32[1,32], index: 11, kind: input, shape index: {}]   ;;  %s2607_s12 = inlined_call_operand.vmem [shape: f32[1,32], index: 12, kind: input, shape index: {}]   ;;  %s2608_s13 = inlined_call_operand.vmem [shape: f32[1,32], index: 13, kind: input, shape index: {}]   ;;  %s2609_s14 = inlined_call_operand.vmem [shape: bf16[32,128], index: 14, kind: input, shape index: {}]   ;;  %s2610_s15 = inlined_call_operand.vmem [shape: f32[1,128], index: 15, kind: input, shape index: {}]   ;;  %s2611_s16 = inlined_call_operand.vmem [shape: bf16[128,32], index: 16, kind: input, shape index: {}]   ;;  %s2612_s17 = inlined_call_operand.vmem [shape: f32[1,32], index: 17, kind: input, shape index: {}]   ;;  %s2613_s18 = inlined_call_operand.vmem [shape: f32[4,8,32], index: 18, kind: output, shape index: {}]  }
   0x1   :  { %2614 = sst [smem:[#allocation6_spill]] %s2595_s0 }
   0x2   :  { %2615 = sst [smem:[#allocation7_spill]] %s2596_s1 }
   0x3   :  { %2616 = sst [smem:[#allocation8_spill]] %s2597_s2 }
   0x4 LB: > { %s1881_s28 = sadd.s32 4294967295, %s2215_s27   ;;  %p1885_p0 = scmp.ge.s32.totalorder %s2215_s27, 1  ;;  %s2215_s27 = sphi %s2327_s27, %s28_s27  }
   0x5   : > { %p513_p1 = scmp.lt.s32.totalorder %s2215_s27, 3 }
   0x7   : > { %p514_p2 = pnand %p1885_p0, %p513_p1 }
   0x8   : > { %s1886_s29 = sshll.u32 (!%p514_p2), %s1881_s28, 1  ;;  %s2617_s1 = sld [smem:[#allocation7_spill]] (!%p514_p2)  ;;  %vm587_vm0 = vcmask (!%p514_p2), 261120   ;;  %v1910_v2 = vld [vmem:[%s2606_s11] ss:$0 sm:$0xff] (!%p514_p2)  ;;  %v2221_v22 = vmov (!%p514_p2), 0.0  }
   0x9   : > { %517 = sbr.rel (%p514_p2) target bundleno = 2497 (0x9c1), region = 92  ;;  %p568_p3 = scmp.lt.s32.totalorder (!%p514_p2), %s1886_s29, 3  ;;  %v2157_v20 = vld [vmem:[%s2599_s4] sm:$0xff] (!%p514_p2)   ;;  %1998 = vmatprep.subr.bf16.mxu0 (!%p514_p2), %v2221_v22  ;;  %2006 = vmatprep.subr.bf16.mxu1 (!%p514_p2), %v2221_v22  ;;  %v2159_v23 = vld [vmem:[%s2599_s4 + $0x8] sm:$0xff] (!%p514_p2)   ;;  %vm2222_vm1 = vmmov (!%p514_p2), 0   ;;  %vm839_vm2 = vcmask (!%p514_p2), 60416  }
   0xa   : > { %s2618_s22 = sld [smem:[#allocation6_spill]] (!%p514_p2)  ;;  %v2158_v21 = vld [vmem:[%s2601_s6] sm:$0xff] (!%p514_p2)   ;;  %1999 = vmatpush3.bf16.msra.mxu0 (!%p514_p2), %v2157_v20  ;;  %v2160_v24 = vld [vmem:[%s2601_s6 + $0x8] sm:$0xff] (!%p514_p2)   ;;  %2002 = vmatprep.mubr.msk.bf16.mxu0 (!%p514_p2), %vm2222_vm1, %v2221_v22  ;;  %s2619_s24 = sld [smem:[#allocation8_spill]] (!%p514_p2) }
   0xb   : > { %2007 = vmatpush3.bf16.msra.mxu1 (!%p514_p2), %v2158_v21  ;;  %2000 = vmatprep.subr.bf16.mxu0 (!%p514_p2), %v2221_v22  ;;  %v1891_v37 = vld [vmem:[%s2598_s3] ss:$0 sm:$0xff] (!%p514_p2)  ;;  %v2162_v43 = vld [vmem:[%s2603_s8 + $0x8] sm:$0xff] (!%p514_p2)   ;;  %s2224_s23 = smov (!%p514_p2), 120   ;;  %s2225_s28 = smov (!%p514_p2), 104  }
   0xc   : > { %2008 = vmatprep.subr.bf16.mxu1 (!%p514_p2), %v2221_v22  ;;  %2010 = vmatprep.mubr.msk.bf16.mxu1 (!%p514_p2), %vm2222_vm1, %v2221_v22  ;;  %v2161_v41 = vld [vmem:[%s2603_s8] sm:$0xff] (!%p514_p2)  }
   0xd   : > { %v1892_v44 = vld [vmem:[%s2600_s5] ss:$0 sm:$0xff] (!%p514_p2) }
   0xe   : > { %v582_v0 = vld [vmem:[%s2617_s1] sm:$0xff] (!%p514_p2)  ;;  %2001 = vmatpush3.bf16.msra.mxu0 (!%p514_p2), %v2159_v23 }
   0xf   : > { %2009 = vmatpush3.bf16.msra.mxu1 (!%p514_p2), %v2160_v24  ;;  %2014 = vmatprep.subr.bf16.mxu0 (!%p514_p2), %v2221_v22  ;;  %v1896_v45 = vld [vmem:[%s2602_s7] ss:$0 sm:$0xff] (!%p514_p2) }
  0x10   : > { %s2621_s29 = smov (!%p568_p3, %s1886_s29), 3  ;;  %v1890_v33 = vld [vmem:[%s2619_s24] ss:$0 sm:$0xff] }
  0x11   : > { %s1887_s30 = sshll.u32 %s2621_s29, 3  ;;  %v1900_v63 = vld [vmem:[%s2604_s9] ss:$0 sm:$0xff]  ;;  %s2441_s29 = smov 0  }
  0x12   : > { %s571_s2 = scalar_lea.vmem %s2618_s22, %s1887_s30  ;;  %s2344_s25 = scalar_lea.vmem %s2613_s18, %s1887_s30 }
  0x13   : > { %v580_v1 = vld [vmem:[%s571_s2] sm:$0xff]  ;;  %v581_v3 = vld [vmem:[%s571_s2 + $0x8] sm:$0xff]  ;;  %s2223_s2 = smov 112  }
  0x14   : > { %v583_v4 = vadd.f32 %v582_v0, %v580_v1  ;;  %v584_v5 = vadd.f32 %v582_v0, %v581_v3 }
  0x16   : > { %v588_v6 = vsel %vm587_vm0, %v583_v4, 0.0  ;;  %v952_v7 = vadd.f32 %v1910_v2, %v583_v4  ;;  %v953_v8 = vadd.f32 %v1910_v2, %v584_v5  ;;  %v591_v9 = vsel %vm587_vm0, %v584_v5, 0.0 }
  0x17   : > { %589 = vadd.xlane.f32.xlu0 %v588_v6 }
  0x18   : > { %954 = vst.msk [vmem:[#allocation5] sm:$0xff] %vm587_vm0, %v952_v7  ;;  %955 = vst.msk [vmem:[#allocation5 + $0x8] sm:$0xff] %vm587_vm0, %v953_v8 }
  0x1b   : > { %592 = vadd.xlane.f32.xlu0 %v591_v9  ;;  %v941_v9 = vlaneseq }
  0xa4   : > { %v590_v10 = vpop.xlane.xlu0 %589 }
  0xa5   : > { %v595_v11 = vmul.f32 0.03125, %v590_v10  ;;  %v942_v10 = vand.u32 127, %v941_v9 }
  0xa7   : > { %v597_v12 = vsub.f32 %v583_v4, %v595_v11  ;;  %vm943_vm3 = vcmp.lt.s32.totalorder %v942_v10, 5  ;;  %v2226_v11 = vmov -1e+30  }
  0xa8   : > { %v593_v13 = vpop.xlane.xlu0 %592 }
  0xa9   : > { %v596_v14 = vmul.f32 0.03125, %v593_v13  ;;  %v599_v15 = vmul.f32 %v597_v12, %v597_v12 }
  0xab   : > { %v598_v16 = vsub.f32 %v584_v5, %v596_v14  ;;  %v601_v17 = vsel %vm587_vm0, %v599_v15, 0.0 }
  0xac   : > { %602 = vadd.xlane.f32.xlu1 %v601_v17 }
  0xad   : > { %v600_v18 = vmul.f32 %v598_v16, %v598_v16 }
  0xaf   : > { %v604_v19 = vsel %vm587_vm0, %v600_v18, 0.0 }
  0xb0   : > { %605 = vadd.xlane.f32.xlu1 %v604_v19 }
 0x139   : > { %v603_v25 = vpop.xlane.xlu1 %602 }
 0x13a   : > { %v607_v26 = vmul.f32 0.03125, %v603_v25 }
 0x13c   : > { %v609_v27 = vadd.f32 1e-06, %v607_v26 }
 0x13d   : > { %v606_v28 = vpop.xlane.xlu1 %605 }
 0x13e   : > { %2163 = vrsqrt.f32 %v609_v27  ;;  %v608_v29 = vmul.f32 0.03125, %v606_v28 }
 0x140   : > { %v610_v30 = vadd.f32 1e-06, %v608_v29 }
 0x142   : > { %2165 = vrsqrt.f32 %v610_v30 }
 0x148   : > { %v2164_v31 = vpop.eup %2163 }
 0x149   : > { %v613_v32 = vmul.f32 %v2164_v31, %v597_v12  ;;  %v2418_v12 = vsel %vm943_vm3, 0.0, %v2226_v11 }
 0x14b   : > { %v621_v36 = vmul.f32 %v1890_v33, %v613_v32 }
 0x14c   : > { %v2166_v34 = vpop.eup %2165 }
 0x14d   : > { %v614_v35 = vmul.f32 %v2166_v34, %v598_v16  ;;  %v629_v39 = vadd.f32 %v1891_v37, %v621_v36 }
 0x14f   : > { %v622_v38 = vmul.f32 %v1890_v33, %v614_v35 }
 0x151   : > { %v630_v40 = vadd.f32 %v1891_v37, %v622_v38 }
 0x153   : > { %v631_v42 = vpack.c.bf16 %v630_v40, %v629_v39 }
 0x155   : > { %2003 = vmatmul.mubr.msk.bf16.vlgmr.msra.gmra.mrb[0].mxu0 %vm587_vm0, %v631_v42  ;;  %2011 = vmatmul.mubr.msk.bf16.vlgmr.msra.gmra.mrb[0].mxu1 %vm587_vm0, %v631_v42 }
 0x156   : > { %2015 = vmatpush3.bf16.msra.mxu0 %v2161_v41  ;;  %2018 = vmatprep.mubr.msk.bf16.mxu0 %vm2222_vm1, %v2221_v22 }
 0x157   : > { %2016 = vmatprep.subr.bf16.mxu0 %v2221_v22 }
 0x15a   : > { %2017 = vmatpush3.bf16.msra.mxu0 %v2162_v43 }
 0x15d   : > { %2019 = vmatmul.mubr.msk.bf16.vlgmr.msra.gmra.mrb[4].mxu0 %vm587_vm0, %v631_v42 }
 0x228   : > { %v692_v46 = vpop.f32.mrb[0].mxu0  ;;  %v759_v47 = vpop.f32.mrb[0].mxu1 }
 0x229   : > { %v693_v48 = vadd.f32 %v1892_v44, %v692_v46  ;;  %v760_v49 = vadd.f32 %v1896_v45, %v759_v47  ;;  %v2004_v50 = vpop.f32.mrb[1].mxu0  ;;  %v2012_v51 = vpop.f32.mrb[1].mxu1 }
 0x22a   : > { %v695_v52 = vpop.f32.mrb[2].mxu0  ;;  %v762_v53 = vpop.f32.mrb[2].mxu1 }
 0x22b   : > { %v699_v54 = vmul.f32 0.35355338, %v693_v48  ;;  %v1948_v55 = vpack.c.bf16 %v760_v49, %v760_v49  ;;  %v696_v56 = vadd.f32 %v1892_v44, %v695_v52  ;;  %v763_v57 = vadd.f32 %v1896_v45, %v762_v53  ;;  %v2005_v58 = vpop.f32.mrb[3].mxu0  ;;  %v2013_v59 = vpop.f32.mrb[3].mxu1 }
 0x22d   : > { %v1946_v60 = vpack.c.bf16 %v699_v54, %v699_v54  ;;  %849 = vst.msk [vmem:[#allocation3] sm:$0xf] %vm839_vm2, %v1948_v55  ;;  %v700_v61 = vmul.f32 0.35355338, %v696_v56  ;;  %v1949_v62 = vpack.c.bf16 %v763_v57, %v763_v57  ;;  %896 = vrot.lane.b32.xlu0 %v1948_v55, %s2223_s2  ;;  %869 = vrot.lane.b32.xlu1 %v1948_v55, %s2224_s23 }
 0x22f   : > { %840 = vst.msk [vmem:[#allocation2] sm:$0xf] %vm839_vm2, %v1946_v60  ;;  %v1947_v0 = vpack.c.bf16 %v700_v61, %v700_v61  ;;  %850 = vst.msk [vmem:[#allocation3 + $0x4] sm:$0xf] %vm839_vm2, %v1949_v62 }
 0x230   : > { %v824_v1 = vpop.f32.mrb[4].mxu0 }
 0x231   : > { %841 = vst.msk [vmem:[#allocation2 + $0x4] sm:$0xf] %vm839_vm2, %v1947_v0  ;;  %v825_v2 = vadd.f32 %v1900_v63, %v824_v1  ;;  %923 = vrot.lane.b32.xlu0 %v1948_v55, %s2225_s28  ;;  %871 = vrot.lane.b32.xlu1 %v1949_v62, %s2224_s23  ;;  %v2020_v3 = vpop.f32.mrb[5].mxu0 }
 0x232   : > { %v827_v4 = vpop.f32.mrb[6].mxu0 }
 0x233   : > { %v1950_v5 = vpack.c.bf16 %v825_v2, %v825_v2  ;;  %v828_v6 = vadd.f32 %v1900_v63, %v827_v4  ;;  %v2021_v7 = vpop.f32.mrb[7].mxu0 }
 0x235   : > { %858 = vst.msk [vmem:[#allocation4] sm:$0xf] %vm839_vm2, %v1950_v5  ;;  %v1951_v8 = vpack.c.bf16 %v828_v6, %v828_v6  ;;  %898 = vrot.lane.b32.xlu1 %v1949_v62, %s2223_s2  ;;  %860 = vrot.lane.b32.xlu0 %v1946_v60, %s2224_s23 }
 0x237   : > { %859 = vst.msk [vmem:[#allocation4 + $0x4] sm:$0xf] %vm839_vm2, %v1951_v8 }
 0x239   : > { %925 = vrot.lane.b32.xlu1 %v1949_v62, %s2225_s28  ;;  %887 = vrot.lane.b32.xlu0 %v1946_v60, %s2223_s2 }
 0x23d   : > { %914 = vrot.lane.b32.xlu0 %v1946_v60, %s2225_s28  ;;  %862 = vrot.lane.b32.xlu1 %v1947_v0, %s2224_s23 }
 0x241   : > { %889 = vrot.lane.b32.xlu1 %v1947_v0, %s2223_s2  ;;  %878 = vrot.lane.b32.xlu0 %v1950_v5, %s2224_s23 }
 0x245   : > { %916 = vrot.lane.b32.xlu1 %v1947_v0, %s2225_s28  ;;  %905 = vrot.lane.b32.xlu0 %v1950_v5, %s2223_s2 }
 0x249   : > { %932 = vrot.lane.b32.xlu0 %v1950_v5, %s2225_s28  ;;  %880 = vrot.lane.b32.xlu1 %v1951_v8, %s2224_s23 }
 0x24d   : > { %907 = vrot.lane.b32.xlu1 %v1951_v8, %s2223_s2 }
 0x251   : > { %934 = vrot.lane.b32.xlu1 %v1951_v8, %s2225_s28 }
 0x29f   : > { %v897_v13 = vpop.permute.xlu0 %896  ;;  %v870_v14 = vpop.permute.xlu1 %869 }
 0x2a0   : > { %903 = vst.msk [vmem:[#allocation3 + $0x10] sm:$0xf] %vm839_vm2, %v897_v13  ;;  %876 = vst.msk [vmem:[#allocation3 + $0x8] sm:$0xf] %vm839_vm2, %v870_v14 }
 0x2a3   : > { %v924_v15 = vpop.permute.xlu0 %923  ;;  %v872_v16 = vpop.permute.xlu1 %871 }
 0x2a4   : > { %930 = vst.msk [vmem:[#allocation3 + $0x18] sm:$0xf] %vm839_vm2, %v924_v15  ;;  %877 = vst.msk [vmem:[#allocation3 + $0xc] sm:$0xf] %vm839_vm2, %v872_v16 }
 0x2a7   : > { %v899_v17 = vpop.permute.xlu1 %898  ;;  %v861_v18 = vpop.permute.xlu0 %860 }
 0x2a8   : > { %904 = vst.msk [vmem:[#allocation3 + $0x14] sm:$0xf] %vm839_vm2, %v899_v17  ;;  %867 = vst.msk [vmem:[#allocation2 + $0x8] sm:$0xf] %vm839_vm2, %v861_v18 }
 0x2ab   : > { %v926_v19 = vpop.permute.xlu1 %925  ;;  %v888_v20 = vpop.permute.xlu0 %887 }
 0x2ac   : > { %931 = vst.msk [vmem:[#allocation3 + $0x1c] sm:$0xf] %vm839_vm2, %v926_v19  ;;  %894 = vst.msk [vmem:[#allocation2 + $0x10] sm:$0xf] %vm839_vm2, %v888_v20 }
 0x2af   : > { %v915_v21 = vpop.permute.xlu0 %914  ;;  %v863_v23 = vpop.permute.xlu1 %862 }
 0x2b0   : > { %921 = vst.msk [vmem:[#allocation2 + $0x18] sm:$0xf] %vm839_vm2, %v915_v21  ;;  %868 = vst.msk [vmem:[#allocation2 + $0xc] sm:$0xf] %vm839_vm2, %v863_v23 }
 0x2b3   : > { %v890_v24 = vpop.permute.xlu1 %889  ;;  %v879_v25 = vpop.permute.xlu0 %878 }
 0x2b4   : > { %895 = vst.msk [vmem:[#allocation2 + $0x14] sm:$0xf] %vm839_vm2, %v890_v24  ;;  %885 = vst.msk [vmem:[#allocation4 + $0x8] sm:$0xf] %vm839_vm2, %v879_v25 }
 0x2b7   : > { %v917_v26 = vpop.permute.xlu1 %916  ;;  %v906_v27 = vpop.permute.xlu0 %905 }
 0x2b8   : > { %922 = vst.msk [vmem:[#allocation2 + $0x1c] sm:$0xf] %vm839_vm2, %v917_v26  ;;  %912 = vst.msk [vmem:[#allocation4 + $0x10] sm:$0xf] %vm839_vm2, %v906_v27 }
 0x2bb   : > { %v933_v28 = vpop.permute.xlu0 %932  ;;  %v881_v29 = vpop.permute.xlu1 %880 }
 0x2bc   : > { %939 = vst.msk [vmem:[#allocation4 + $0x18] sm:$0xf] %vm839_vm2, %v933_v28  ;;  %886 = vst.msk [vmem:[#allocation4 + $0xc] sm:$0xf] %vm839_vm2, %v881_v29 }
 0x2bf   : > { %v908_v30 = vpop.permute.xlu1 %907 }
 0x2c0   : > { %913 = vst.msk [vmem:[#allocation4 + $0x14] sm:$0xf] %vm839_vm2, %v908_v30 }
 0x2c3   : > { %v935_v31 = vpop.permute.xlu1 %934 }
 0x2c4   : > { %940 = vst.msk [vmem:[#allocation4 + $0x1c] sm:$0xf] %vm839_vm2, %v935_v31 }
 0x2c5 LB: >> { %v2227_v32 = vmov 0.0   ;;  %s2449_s30 = sshll.u32 %s2219_s29, 3  ;;  %vm976_vm4 = vcmask 64512   ;;  %vm2228_vm5 = vmmov 0   ;;  %vm1096_vm6 = vcmask 1043456   ;;  %v1186_v21 = vld [vmem:[#allocation5] sm:$0xff]  ;;  %s2219_s29 = sphi %s2441_s29, %s961_s29  }
 0x2c6   : >> { %2022 = vmatprep.subr.bf16.mxu0 %v2227_v32  ;;  %2028 = vmatprep.subr.bf16.mxu1 %v2227_v32  ;;  %s969_s0 = scalar_lea.vmem [#allocation3], %s2449_s30  ;;  %s965_s19 = scalar_lea.vmem [#allocation2], %s2449_s30  ;;  %v1187_v24 = vld [vmem:[#allocation5 + $0x8] sm:$0xff] }
 0x2c7   : >> { %2024 = vmatprep.mubr.msk.bf16.mxu0 %vm2228_vm5, %v2227_v32  ;;  %2030 = vmatprep.mubr.msk.bf16.mxu1 %vm2228_vm5, %v2227_v32  ;;  %v970_v33 = vld [vmem:[%s969_s0] sm:$0xf]  ;;  %v971_v34 = vld [vmem:[%s969_s0 + $0x4] sm:$0xf]  ;;  %s973_s1 = scalar_lea.vmem [#allocation4], %s2449_s30  ;;  %s1189_s20 = sshra.s32 %s2449_s30, 3 }
 0x2c8   : >> { %v981_v35 = vsel %vm976_vm4, %v970_v33, 0  ;;  %v1027_v36 = vsel %vm976_vm4, %v971_v34, 0  ;;  %v966_v37 = vld [vmem:[%s965_s19] sm:$0xf]  ;;  %v967_v38 = vld [vmem:[%s965_s19 + $0x4] sm:$0xf] }
 0x2c9   : >> { %2023 = vmatpush3.bf16.xpose.msra.mxu0 %v981_v35  ;;  %2029 = vmatpush3.bf16.xpose.msra.mxu1 %v1027_v36  ;;  %s1920_s21 = sshll.u32 %s1189_s20, 2  ;;  %s961_s29 = sadd.s32 1, %s2219_s29  }
 0x2ca   : >> { %2034 = vmatprep.subr.bf16.mxu0 %v2227_v32  ;;  %2040 = vmatprep.subr.bf16.mxu1 %v2227_v32  ;;  %s1192_s23 = scalar_lea.vmem %s2605_s10, %s1920_s21  ;;  %p958_p4 = scmp.ge.s32.totalorder %s961_s29, 4  }
 0x2cb   : >> { %v974_v61 = vld [vmem:[%s973_s1] sm:$0xf]  ;;  %v975_v63 = vld [vmem:[%s973_s1 + $0x4] sm:$0xf]  ;;  %s2229_s28 = smov (%p958_p4), 96   ;;  %v2176_v34 = vld [vmem:[%s2609_s14 + $0x8] sm:$0xff] (%p958_p4)  }
 0x2cc   : >> { %v1098_v62 = vsel %vm1096_vm6, %v974_v61, 0  ;;  %v1144_v0 = vsel %vm1096_vm6, %v975_v63, 0  ;;  %v1193_v4 = vld [vmem:[%s1192_s23] sm:$0xf]  ;;  %s2230_s0 = smov (%p958_p4), 32   ;;  %s2231_s19 = smov (%p958_p4), 64  }
 0x2cd   : >> { %v1198_v7 = vsel %vm1096_vm6, %v1193_v4, 0 }
 0x2d0   : >> { %2025 = vmatmul.mubr.msk.bf16.vlgmr.msra.gmra.mrb[0].mxu0 %vm976_vm4, %v966_v37  ;;  %2031 = vmatmul.mubr.msk.bf16.vlgmr.msra.gmra.mrb[0].mxu1 %vm976_vm4, %v967_v38 }
 0x2d1   : >> { %2036 = vmatprep.mubr.msk.bf16.mxu0 %vm2228_vm5, %v2227_v32  ;;  %2042 = vmatprep.mubr.msk.bf16.mxu1 %vm2228_vm5, %v2227_v32 }
 0x2d2   : >> { %2035 = vmatpush3.bf16.msra.mxu0 %v1098_v62  ;;  %2041 = vmatpush3.bf16.msra.mxu1 %v1144_v0 }
 0x2d3   : >> { %2046 = vmatprep.subr.bf16.mxu0 %v2227_v32  ;;  %2060 = vmatprep.subr.bf16.mxu1 (%p958_p4), %v2221_v22 }
 0x3a3   : >> { %v1017_v39 = vpop.f32.mrb[0].mxu0  ;;  %v1063_v40 = vpop.f32.mrb[0].mxu1 }
 0x3a4   : >> { %v1018_v41 = vadd.f32 %v1017_v39, %v2418_v12  ;;  %v2026_v42 = vpop.f32.mrb[1].mxu0  ;;  %v1064_v43 = vadd.f32 %v1063_v40, %v2418_v12  ;;  %v2032_v44 = vpop.f32.mrb[1].mxu1  ;;  %v2175_v12 = vld [vmem:[%s2609_s14] sm:$0xff] (%p958_p4)  }
 0x3a5   : >> { %v1020_v45 = vpop.f32.mrb[2].mxu0  ;;  %v1066_v46 = vpop.f32.mrb[2].mxu1 }
 0x3a6   : >> { %v2027_v47 = vpop.f32.mrb[3].mxu0  ;;  %v2033_v48 = vpop.f32.mrb[3].mxu1  ;;  %v1069_v49 = vsel %vm976_vm4, %v1018_v41, -inf  ;;  %v1072_v50 = vsel %vm976_vm4, %v1064_v43, -inf  ;;  %v1925_v45 = vld [vmem:[%s2610_s15] ss:$0 sm:$0xff] (%p958_p4) }
 0x3a7   : >> { %1070 = vmax.xlane.f32.xlu0 %v1069_v49 }
 0x3ab   : >> { %1073 = vmax.xlane.f32.xlu0 %v1072_v50 }
 0x434   : >> { %v1071_v51 = vpop.xlane.xlu0 %1070 }
 0x435   : >> { %v1075_v52 = vsub.f32 %v1018_v41, %v1071_v51 }
 0x437   : >> { %v1077_v53 = vmul.f32 1.442695, %v1075_v52 }
 0x438   : >> { %v1074_v54 = vpop.xlane.xlu0 %1073 }
 0x439   : >> { %2167 = vpow2.f32 %v1077_v53  ;;  %v1076_v55 = vsub.f32 %v1064_v43, %v1074_v54  ;;  %v1922_v54 = vld [vmem:[%s2607_s12] ss:$0 sm:$0xff] (%p958_p4) }
 0x43b   : >> { %v1079_v56 = vmul.f32 1.442695, %v1076_v55 }
 0x43d   : >> { %2169 = vpow2.f32 %v1079_v56 }
 0x443   : >> { %v2168_v57 = vpop.eup %2167 }
 0x444   : >> { %v1081_v58 = vsel %vm976_vm4, %v2168_v57, 0.0 }
 0x445   : >> { %1082 = vadd.xlane.f32.xlu1 %v1081_v58  ;;  %v1923_v58 = vld [vmem:[%s2608_s13] ss:$0 sm:$0xff] (%p958_p4) }
 0x447   : >> { %v2170_v59 = vpop.eup %2169 }
 0x448   : >> { %v1084_v60 = vsel %vm976_vm4, %v2170_v59, 0.0 }
 0x449   : >> { %1085 = vadd.xlane.f32.xlu1 %v1084_v60 }
 0x4d2   : >> { %v1083_v1 = vpop.xlane.xlu1 %1082 }
 0x4d3   : >> { %2171 = vrcp.f32 %v1083_v1 }
 0x4d6   : >> { %v1086_v2 = vpop.xlane.xlu1 %1085 }
 0x4d7   : >> { %2173 = vrcp.f32 %v1086_v2 }
 0x4dd   : >> { %v2172_v3 = vpop.eup %2171 }
 0x4de   : >> { %v1089_v5 = vmul.f32 %v2172_v3, %v2168_v57 }
 0x4e0   : >> { %v1091_v6 = vpack.c.bf16 %v1089_v5, %v1089_v5  ;;  %v2177_v5 = vld [vmem:[%s2611_s16] sm:$0xff] (%p958_p4)  }
 0x4e1   : >> { %v2174_v8 = vpop.eup %2173 }
 0x4e2   : >> { %v1090_v9 = vmul.f32 %v2174_v8, %v2170_v59  ;;  %2037 = vmatmul.mubr.msk.bf16.vlgmr.msra.gmra.mrb[4].mxu0 %vm976_vm4, %v1091_v6  ;;  %v2178_v6 = vld [vmem:[%s2611_s16 + $0x8] sm:$0xff] (%p958_p4)  }
 0x4e3   : >> { %2047 = vmatpush3.bf16.msra.mxu0 %v1198_v7  ;;  %2048 = vmatprep.mubr.msk.bf16.mxu0 %vm2228_vm5, %v2227_v32 }
 0x4e4   : >> { %v1092_v10 = vpack.c.bf16 %v1090_v9, %v1090_v9  ;;  %2052 = vmatprep.subr.bf16.mxu0 (%p958_p4), %v2221_v22 }
 0x4e6   : >> { %2043 = vmatmul.mubr.msk.bf16.vlgmr.msra.gmra.mrb[4].mxu1 %vm976_vm4, %v1092_v10 }
 0x4e7   : > { %2064 = vmatprep.mubr.msk.bf16.mxu1 (%p958_p4), %vm2222_vm1, %v2221_v22  ;;  %2061 = vmatpush3.bf16.msra.mxu1 (%p958_p4), %v2177_v5 }
 0x4e8   : > { %2062 = vmatprep.subr.bf16.mxu1 (%p958_p4), %v2221_v22 }
 0x4eb   : > { %2063 = vmatpush3.bf16.msra.mxu1 (%p958_p4), %v2178_v6 }
 0x4ec   : > { %2076 = vmatprep.subr.bf16.mxu1 (%p958_p4), %v2221_v22 }
 0x5b5   : >> { %v1134_v11 = vpop.f32.mrb[4].mxu0 }
 0x5b6   : >> { %v2038_v13 = vpop.f32.mrb[5].mxu0 }
 0x5b7   : >> { %v1137_v14 = vpop.f32.mrb[6].mxu0 }
 0x5b8   : >> { %v2039_v15 = vpop.f32.mrb[7].mxu0 }
 0x5b9   : >> { %v1180_v16 = vpop.f32.mrb[4].mxu1 }
 0x5ba   : >> { %v1188_v17 = vpack.c.bf16 %v1180_v16, %v1134_v11  ;;  %v2044_v18 = vpop.f32.mrb[5].mxu1 }
 0x5bb   : >> { %v1183_v19 = vpop.f32.mrb[6].mxu1 }
 0x5bc   : >> { %v2045_v20 = vpop.f32.mrb[7].mxu1  ;;  %2049 = vmatmul.mubr.msk.bf16.vlgmr.msra.gmra.mrb[8].mxu0 %vm976_vm4, %v1188_v17 }
 0x5bd   : > { %2056 = vmatprep.mubr.msk.bf16.mxu0 (%p958_p4), %vm2222_vm1, %v2221_v22  ;;  %2053 = vmatpush3.bf16.msra.mxu0 (%p958_p4), %v2175_v12 }
 0x5be   : > { %2054 = vmatprep.subr.bf16.mxu0 (%p958_p4), %v2221_v22 }
 0x5c1   : > { %2055 = vmatpush3.bf16.msra.mxu0 (%p958_p4), %v2176_v34 }
 0x5c2   : > { %2068 = vmatprep.subr.bf16.mxu0 (%p958_p4), %v2221_v22 }
 0x68e   : > { %960 = sbr.rel (!%p958_p4) target bundleno = 709 (0x2c5), region = 142 }
 0x68f   : >> { %v1234_v23 = vpop.f32.mrb[8].mxu0 }
 0x690   : >> { %v1241_v25 = vadd.f32 %v1234_v23, %v1186_v21  ;;  %v2050_v26 = vpop.f32.mrb[9].mxu0 }
 0x691   : >> { %v1237_v27 = vpop.f32.mrb[10].mxu0 }
 0x692   : >> { %1243 = vst.msk [vmem:[#allocation5] sm:$0xff] %vm587_vm0, %v1241_v25  ;;  %v1242_v28 = vadd.f32 %v1237_v27, %v1187_v24  ;;  %v2051_v29 = vpop.f32.mrb[11].mxu0 }
 0x694   : >> { %1244 = vst.msk [vmem:[#allocation5 + $0x8] sm:$0xff] %vm587_vm0, %v1242_v28 }
 0x699   : > { %v2492_v30 = vld [vmem:[#allocation5] sm:$0xff] }
 0x69a   : > { %v1249_v32 = vsel %vm587_vm0, %v2492_v30, 0.0 }
 0x69b   : > { %v2494_v31 = vld [vmem:[#allocation5 + $0x8] sm:$0xff]  ;;  %1250 = vadd.xlane.f32.xlu0 %v1249_v32 }
 0x69c   : > { %v1252_v33 = vsel %vm587_vm0, %v2494_v31, 0.0 }
 0x69f   : > { %1253 = vadd.xlane.f32.xlu0 %v1252_v33 }
 0x6b5   : > { %1441 = vrot.lane.b32.xlu0 %v2175_v12, %s2229_s28 }
 0x6b9   : > { %1687 = vrot.lane.b32.xlu0 %v2175_v12, %s2230_s0 }
 0x6bd   : > { %1447 = vrot.lane.b32.xlu0 %v1925_v45, %s2229_s28 }
 0x6c1   : > { %1693 = vrot.lane.b32.xlu0 %v1925_v45, %s2230_s0 }
 0x728   : > { %v1251_v35 = vpop.xlane.xlu0 %1250 }
 0x729   : > { %v1255_v36 = vmul.f32 0.03125, %v1251_v35 }
 0x72b   : > { %v1257_v37 = vsub.f32 %v2492_v30, %v1255_v36 }
 0x72c   : > { %v1254_v38 = vpop.xlane.xlu0 %1253 }
 0x72d   : > { %v1256_v39 = vmul.f32 0.03125, %v1254_v38  ;;  %v1259_v40 = vmul.f32 %v1257_v37, %v1257_v37 }
 0x72f   : > { %v1258_v41 = vsub.f32 %v2494_v31, %v1256_v39  ;;  %v1261_v42 = vsel %vm587_vm0, %v1259_v40, 0.0 }
 0x730   : > { %1262 = vadd.xlane.f32.xlu1 %v1261_v42  ;;  %v1442_v63 = vpop.permute.xlu0 %1441 }
 0x731   : > { %v1260_v43 = vmul.f32 %v1258_v41, %v1258_v41 }
 0x733   : > { %v1264_v44 = vsel %vm587_vm0, %v1260_v43, 0.0 }
 0x734   : > { %1265 = vadd.xlane.f32.xlu1 %v1264_v44  ;;  %v1688_v3 = vpop.permute.xlu0 %1687  ;;  %v2179_v44 = vld [vmem:[%s2611_s16 + $0x10] sm:$0xff]  }
 0x738   : > { %v1448_v16 = vpop.permute.xlu0 %1447 }
 0x745   : > { %1443 = vrot.lane.b32.xlu1 %v2176_v34, %s2229_s28 }
 0x749   : > { %1564 = vrot.lane.b32.xlu1 %v2175_v12, %s2231_s19 }
 0x74d   : > { %1566 = vrot.lane.b32.xlu1 %v2176_v34, %s2231_s19 }
 0x751   : > { %1689 = vrot.lane.b32.xlu1 %v2176_v34, %s2230_s0 }
 0x755   : > { %1570 = vrot.lane.b32.xlu1 %v1925_v45, %s2231_s19 }
 0x7bd   : > { %v1263_v46 = vpop.xlane.xlu1 %1262 }
 0x7be   : > { %v1267_v47 = vmul.f32 0.03125, %v1263_v46  ;;  %v1694_v46 = vpop.permute.xlu0 %1693 }
 0x7c0   : > { %v1269_v48 = vadd.f32 1e-06, %v1267_v47 }
 0x7c1   : > { %v1266_v49 = vpop.xlane.xlu1 %1265 }
 0x7c2   : > { %2185 = vrsqrt.f32 %v1269_v48  ;;  %v1268_v50 = vmul.f32 0.03125, %v1266_v49 }
 0x7c4   : > { %v1270_v51 = vadd.f32 1e-06, %v1268_v50 }
 0x7c5   : > { %v1444_v0 = vpop.permute.xlu1 %1443 }
 0x7c6   : > { %2187 = vrsqrt.f32 %v1270_v51 }
 0x7c9   : > { %v1565_v1 = vpop.permute.xlu1 %1564 }
 0x7cc   : > { %v2186_v52 = vpop.eup %2185 }
 0x7cd   : > { %v1273_v53 = vmul.f32 %v2186_v52, %v1257_v37  ;;  %v1567_v2 = vpop.permute.xlu1 %1566 }
 0x7cf   : > { %v1281_v57 = vmul.f32 %v1922_v54, %v1273_v53  ;;  %v2180_v53 = vld [vmem:[%s2611_s16 + $0x18] sm:$0xff]  }
 0x7d0   : > { %v2188_v55 = vpop.eup %2187 }
 0x7d1   : > { %v1274_v56 = vmul.f32 %v2188_v55, %v1258_v41  ;;  %v1289_v60 = vadd.f32 %v1923_v58, %v1281_v57  ;;  %v1690_v4 = vpop.permute.xlu1 %1689 }
 0x7d3   : > { %v1282_v59 = vmul.f32 %v1922_v54, %v1274_v56 }
 0x7d5   : > { %v1290_v61 = vadd.f32 %v1923_v58, %v1282_v59  ;;  %v1571_v26 = vpop.permute.xlu1 %1570 }
 0x7d7   : > { %v1291_v62 = vpack.c.bf16 %v1290_v61, %v1289_v60 }
 0x7d9   : > { %2057 = vmatmul.mubr.msk.bf16.vlgmr.msra.gmra.mrb[0].mxu0 %vm587_vm0, %v1291_v62 }
 0x7da   : > { %2069 = vmatpush3.bf16.msra.mxu0 %v1442_v63  ;;  %2072 = vmatprep.mubr.msk.bf16.mxu0 %vm2222_vm1, %v2221_v22 }
 0x7db   : > { %2070 = vmatprep.subr.bf16.mxu0 %v2221_v22 }
 0x7de   : > { %2071 = vmatpush3.bf16.msra.mxu0 %v1444_v0 }
 0x7df   : > { %2084 = vmatprep.subr.bf16.mxu0 %v2221_v22 }
 0x7e1   : > { %2073 = vmatmul.mubr.msk.bf16.vlgmr.msra.gmra.mrb[4].mxu0 %vm587_vm0, %v1291_v62 }
 0x7e2   : > { %2085 = vmatpush3.bf16.msra.mxu0 %v1565_v1  ;;  %2088 = vmatprep.mubr.msk.bf16.mxu0 %vm2222_vm1, %v2221_v22 }
 0x7e3   : > { %2086 = vmatprep.subr.bf16.mxu0 %v2221_v22 }
 0x7e6   : > { %2087 = vmatpush3.bf16.msra.mxu0 %v1567_v2 }
 0x7e7   : > { %2100 = vmatprep.subr.bf16.mxu0 %v2221_v22 }
 0x7e9   : > { %2089 = vmatmul.mubr.msk.bf16.vlgmr.msra.gmra.mrb[8].mxu0 %vm587_vm0, %v1291_v62 }
 0x7ea   : > { %2101 = vmatpush3.bf16.msra.mxu0 %v1688_v3  ;;  %2104 = vmatprep.mubr.msk.bf16.mxu0 %vm2222_vm1, %v2221_v22 }
 0x7eb   : > { %2102 = vmatprep.subr.bf16.mxu0 %v2221_v22 }
 0x7ee   : > { %2103 = vmatpush3.bf16.msra.mxu0 %v1690_v4  ;;  %v2181_v4 = vld [vmem:[%s2611_s16 + $0x20] sm:$0xff]  }
 0x7f1   : > { %2105 = vmatmul.mubr.msk.bf16.vlgmr.msra.gmra.mrb[12].mxu0 %vm587_vm0, %v1291_v62 }
 0x8ac   : > { %v1361_v7 = vpop.f32.mrb[0].mxu0 }
 0x8ad   : > { %v1362_v8 = vadd.f32 %v1925_v45, %v1361_v7  ;;  %v2058_v9 = vpop.f32.mrb[1].mxu0 }
 0x8ae   : > { %v1364_v10 = vpop.f32.mrb[2].mxu0 }
 0x8af   : > { %v1370_v11 = vmul.f32 0.70710677, %v1362_v8  ;;  %v1365_v13 = vadd.f32 %v1925_v45, %v1364_v10  ;;  %v2059_v14 = vpop.f32.mrb[3].mxu0  ;;  %v1368_v34 = vmul.f32 0.5, %v1362_v8  ;;  %v2182_v10 = vld [vmem:[%s2611_s16 + $0x28] sm:$0xff]  }
 0x8b1   : > { %2189 = verf.f32 %v1370_v11  ;;  %v1371_v15 = vmul.f32 0.70710677, %v1365_v13  ;;  %v1369_v35 = vmul.f32 0.5, %v1365_v13 }
 0x8b3   : > { %2191 = verf.f32 %v1371_v15 }
 0x8b4   : > { %v1484_v17 = vpop.f32.mrb[4].mxu0 }
 0x8b5   : > { %v1485_v18 = vadd.f32 %v1484_v17, %v1448_v16  ;;  %v2074_v19 = vpop.f32.mrb[5].mxu0 }
 0x8b6   : > { %v1487_v20 = vpop.f32.mrb[6].mxu0 }
 0x8b7   : > { %v1493_v21 = vmul.f32 0.70710677, %v1485_v18  ;;  %v1488_v23 = vadd.f32 %v1487_v20, %v1448_v16  ;;  %v2075_v24 = vpop.f32.mrb[7].mxu0  ;;  %v1491_v54 = vmul.f32 0.5, %v1485_v18 }
 0x8b8   : > { %v2184_v24 = vld [vmem:[%s2611_s16 + $0x38] sm:$0xff]  }
 0x8b9   : > { %2193 = verf.f32 %v1493_v21  ;;  %v1494_v25 = vmul.f32 0.70710677, %v1488_v23  ;;  %v1492_v55 = vmul.f32 0.5, %v1488_v23  ;;  %v2183_v21 = vld [vmem:[%s2611_s16 + $0x30] sm:$0xff]  }
 0x8bb   : > { %v2190_v27 = vpop.eup %2189  ;;  %2195 = verf.f32 %v1494_v25  ;;  %v1924_v25 = vld [vmem:[%s2612_s17] ss:$0 sm:$0xff] }
 0x8bc   : > { %v1374_v28 = vadd.f32 1.0, %v2190_v27  ;;  %v1607_v29 = vpop.f32.mrb[8].mxu0  ;;  %v1300_v27 = vadd.f32 %v1924_v25, %v2494_v31 }
 0x8bd   : > { %v2192_v32 = vpop.eup %2191  ;;  %v1608_v33 = vadd.f32 %v1607_v29, %v1571_v26  ;;  %v2090_v12 = vpop.f32.mrb[9].mxu0 }
 0x8be   : > { %v1375_v36 = vadd.f32 1.0, %v2192_v32  ;;  %v1610_v37 = vpop.f32.mrb[10].mxu0  ;;  %v1376_v41 = vmul.f32 %v1374_v28, %v1368_v34 }
 0x8bf   : > { %v1616_v38 = vmul.f32 0.70710677, %v1608_v33  ;;  %v1611_v39 = vadd.f32 %v1610_v37, %v1571_v26  ;;  %v2091_v40 = vpop.f32.mrb[11].mxu0  ;;  %v1614_v5 = vmul.f32 0.5, %v1608_v33  ;;  %v1299_v26 = vadd.f32 %v1924_v25, %v2492_v30 }
 0x8c0   : > { %v1377_v42 = vmul.f32 %v1375_v36, %v1369_v35 }
 0x8c1   : > { %2197 = verf.f32 %v1616_v38  ;;  %v1617_v43 = vmul.f32 0.70710677, %v1611_v39  ;;  %v1615_v6 = vmul.f32 0.5, %v1611_v39 }
 0x8c2   : > { %v1378_v45 = vpack.c.bf16 %v1377_v42, %v1376_v41 }
 0x8c3   : > { %v2194_v47 = vpop.eup %2193  ;;  %2199 = verf.f32 %v1617_v43 }
 0x8c4   : > { %v1497_v48 = vadd.f32 1.0, %v2194_v47  ;;  %2065 = vmatmul.mubr.msk.bf16.vlgmr.msra.gmra.mrb[0].mxu1 %vm587_vm0, %v1378_v45  ;;  %v1730_v49 = vpop.f32.mrb[12].mxu0 }
 0x8c5   : > { %v2196_v50 = vpop.eup %2195  ;;  %2077 = vmatpush3.bf16.msra.mxu1 %v2179_v44  ;;  %v1731_v51 = vadd.f32 %v1730_v49, %v1694_v46  ;;  %v2106_v52 = vpop.f32.mrb[13].mxu0  ;;  %2080 = vmatprep.mubr.msk.bf16.mxu1 %vm2222_vm1, %v2221_v22 }
 0x8c6   : > { %v1498_v56 = vadd.f32 1.0, %v2196_v50  ;;  %v1733_v57 = vpop.f32.mrb[14].mxu0  ;;  %2078 = vmatprep.subr.bf16.mxu1 %v2221_v22  ;;  %v1499_v61 = vmul.f32 %v1497_v48, %v1491_v54 }
 0x8c7   : > { %v1739_v58 = vmul.f32 0.70710677, %v1731_v51  ;;  %v1734_v59 = vadd.f32 %v1733_v57, %v1694_v46  ;;  %v2107_v60 = vpop.f32.mrb[15].mxu0  ;;  %v1737_v16 = vmul.f32 0.5, %v1731_v51 }
 0x8c8   : > { %v1500_v62 = vmul.f32 %v1498_v56, %v1492_v55 }
 0x8c9   : > { %2201 = verf.f32 %v1739_v58  ;;  %v1740_v63 = vmul.f32 0.70710677, %v1734_v59  ;;  %2079 = vmatpush3.bf16.msra.mxu1 %v2180_v53  ;;  %v1738_v17 = vmul.f32 0.5, %v1734_v59 }
 0x8ca   : > { %v1501_v0 = vpack.c.bf16 %v1500_v62, %v1499_v61  ;;  %2092 = vmatprep.subr.bf16.mxu1 %v2221_v22 }
 0x8cb   : > { %v2198_v1 = vpop.eup %2197  ;;  %2203 = verf.f32 %v1740_v63 }
 0x8cc   : > { %v1620_v2 = vadd.f32 1.0, %v2198_v1 }
 0x8cd   : > { %v2200_v3 = vpop.eup %2199 }
 0x8ce   : > { %v1621_v7 = vadd.f32 1.0, %v2200_v3  ;;  %v1622_v8 = vmul.f32 %v1620_v2, %v1614_v5 }
 0x8d0   : > { %v1623_v9 = vmul.f32 %v1621_v7, %v1615_v6  ;;  %2081 = vmatmul.mubr.msk.bf16.vlgmr.msra.gmra.mrb[0].mxu1 %vm587_vm0, %v1501_v0 }
 0x8d1   : > { %2093 = vmatpush3.bf16.msra.mxu1 %v2181_v4  ;;  %2096 = vmatprep.mubr.msk.bf16.mxu1 %vm2222_vm1, %v2221_v22 }
 0x8d2   : > { %v1624_v11 = vpack.c.bf16 %v1623_v9, %v1622_v8  ;;  %2094 = vmatprep.subr.bf16.mxu1 %v2221_v22 }
 0x8d3   : > { %v2202_v13 = vpop.eup %2201 }
 0x8d4   : > { %v1743_v14 = vadd.f32 1.0, %v2202_v13 }
 0x8d5   : > { %v2204_v15 = vpop.eup %2203  ;;  %2095 = vmatpush3.bf16.msra.mxu1 %v2182_v10 }
 0x8d6   : > { %v1744_v18 = vadd.f32 1.0, %v2204_v15  ;;  %2108 = vmatprep.subr.bf16.mxu1 %v2221_v22  ;;  %v1745_v19 = vmul.f32 %v1743_v14, %v1737_v16 }
 0x8d8   : > { %v1746_v20 = vmul.f32 %v1744_v18, %v1738_v17 }
 0x8da   : > { %v1747_v23 = vpack.c.bf16 %v1746_v20, %v1745_v19 }
 0x8dc   : > { %2097 = vmatmul.mubr.msk.bf16.vlgmr.msra.gmra.mrb[0].mxu1 %vm587_vm0, %v1624_v11 }
 0x8dd   : > { %2109 = vmatpush3.bf16.msra.mxu1 %v2183_v21  ;;  %2112 = vmatprep.mubr.msk.bf16.mxu1 %vm2222_vm1, %v2221_v22 }
 0x8de   : > { %2110 = vmatprep.subr.bf16.mxu1 %v2221_v22 }
 0x8e1   : > { %2111 = vmatpush3.bf16.msra.mxu1 %v2184_v24 }
 0x8e8   : > { %2113 = vmatmul.mubr.msk.bf16.vlgmr.msra.gmra.mrb[0].mxu1 %vm587_vm0, %v1747_v23 }
 0x9bb   : > { %v1801_v28 = vpop.f32.mrb[0].mxu1 }
 0x9bc   : > { %v2116_v29 = vadd.f32 %v1801_v28, %v1299_v26  ;;  %v2114_v32 = vpop.f32.mrb[1].mxu1 }
 0x9bd   : > { %v1804_v33 = vpop.f32.mrb[2].mxu1 }
 0x9be   : > { %1810 = vst.msk [vmem:[%s2344_s25] sm:$0xff] %vm587_vm0, %v2116_v29  ;;  %v2117_v12 = vadd.f32 %v1804_v33, %v1300_v27  ;;  %v2115_v34 = vpop.f32.mrb[3].mxu1 }
 0x9c0   : > { %1811 = vst.msk [vmem:[%s2344_s25 + $0x8] sm:$0xff] %vm587_vm0, %v2117_v12 }
 0x9c1 PF: > { %s28_s27 = sadd.s32 1, %s2215_s27  }
 0x9c2   : > { %p25_p5 = scmp.ge.s32.totalorder %s28_s27, 4  }
 0x9c4   :  { %27 = sbr.rel (!%p25_p5) target bundleno = 4 (0x4), region = 153 }

</bundles_post_ra>
